<compile_context>
chip_gen: v6e
topology: v6e:2x2x1
jax: 0.10.0
libtpu: 0.0.40
codegen_flags: <defaults>
</compile_context>

<pallas_src>
import numpy as np
import jax
import jax.numpy as jnp
from jax.experimental import pallas as pl
from jax.experimental.pallas import tpu as pltpu

# Deterministic "parameter" from the module __init__ (icosahedral basis P),
# stored as (3, 21) because the torch code takes .T of the (21, 3) list.
_P_LIST = [
    [0.8506508, 0, 0.5257311], [0.809017, 0.5, 0.309017], [0.5257311, 0.8506508, 0],
    [1, 0, 0], [0.809017, 0.5, -0.309017], [0.8506508, 0, -0.5257311],
    [0.309017, 0.809017, -0.5], [0, 0.5257311, -0.8506508], [0.5, 0.309017, -0.809017],
    [0, 1, 0], [-0.5257311, 0.8506508, 0], [-0.309017, 0.809017, -0.5],
    [0, 0.5257311, 0.8506508], [-0.309017, 0.809017, 0.5], [0.309017, 0.809017, 0.5],
    [0.5, 0.309017, 0.809017], [0.5, -0.309017, 0.809017], [0, 0, 1],
    [-0.5, 0.309017, 0.809017], [-0.809017, 0.5, 0.309017], [-0.809017, 0.5, -0.309017],
]
P_MATRIX = np.asarray(_P_LIST, dtype=np.float32).T  # (3, 21)

_SUB_ROWS = 512  # in-kernel row sub-tile: bounds intermediate live ranges


def _make_kernel(include_input: bool, use_covs: bool, in_dim: int, DF: int,
                 sub: int, n_sub: int):
    def kernel(*refs):
        if use_covs:
            xd_ref, m_ref, m2_ref, o_ref = refs
        else:
            xd_ref, m_ref, o_ref = refs

        m = m_ref[...]                               # (in_dim, DF): loaded once / grid step
        m2 = m2_ref[...] if use_covs else None       # (in_dim, in_dim*F)

        def do_rows(r0):
            xd = xd_ref[pl.ds(r0, sub), :]           # (sub, in_dim) or (sub, 2*in_dim)
            x = xd[:, 0:in_dim]
            # VPU MAC chain: K == in_dim == 3, an MXU matmul would be ~98% idle.
            scaled = x[:, 0:1] * m[0:1, :]
            for d in range(1, in_dim):
                scaled = scaled + x[:, d:d + 1] * m[d:d + 1, :]
            if use_covs:
                diag = xd[:, in_dim:2 * in_dim]
                var = diag[:, 0:1] * m2[0:1, :]
                for d in range(1, in_dim):
                    var = var + diag[:, d:d + 1] * m2[d:d + 1, :]
                g = jnp.exp(-0.5 * var)              # one exp of width DF, reused twice
            # Store the sin half BEFORE computing the cos half (bounds liveness).
            s = jnp.sin(scaled)
            if use_covs:
                s = g * s
            o_ref[pl.ds(r0, sub), 0:DF] = s.astype(o_ref.dtype)
            c = jnp.cos(scaled)                      # == sin(scaled + pi/2)
            if use_covs:
                c = g * c
            o_ref[pl.ds(r0, sub), DF:2 * DF] = c.astype(o_ref.dtype)
            if include_input:
                o_ref[pl.ds(r0, sub), 2 * DF:2 * DF + in_dim] = x.astype(o_ref.dtype)

        if n_sub == 1:
            do_rows(0)                               # fully static offsets
        else:
            @pl.loop(0, n_sub)
            def _(si):
                do_rows(pl.multiple_of(si * sub, 8))

    return kernel


def nerf_encoding_pallas(
    in_tensor,
    covs=None,
    *,
    num_frequencies: int,
    min_freq_exp: float,
    max_freq_exp: float,
    include_input: bool = False,
    off_axis: bool = False,
    block_rows: int | None = None,       # None -> auto (scaled with output width)
    out_dtype=jnp.float32,               # jnp.bfloat16 halves write bytes if tolerable
):
    """Pallas implementation of NeRFEncoding.forward."""
    x = jnp.asarray(in_tensor, jnp.float32)
    orig_batch = x.shape[:-1]
    in_dim = x.shape[-1]
    N = int(np.prod(orig_batch)) if orig_batch else 1
    x = x.reshape(N, in_dim)

    freqs = (2.0 ** np.linspace(min_freq_exp, max_freq_exp,
                                num_frequencies)).astype(np.float32)      # (F,)
    basis = P_MATRIX if off_axis else np.eye(in_dim, dtype=np.float32)    # (in_dim, dims)
    dims = basis.shape[1]
    F = num_frequencies
    DF = dims * F
    # scaled_inputs[n, p*F + f] = (x @ basis)[n, p] * freqs[f] == (x @ M)[n, p*F+f]
    M = jnp.asarray((basis[:, :, None] * freqs[None, None, :])
                    .reshape(in_dim, DF).astype(np.float32))

    use_covs = covs is not None
    if use_covs:
        if off_axis:
            # TODO(synk): off_axis + covs would shape-error in the torch code too.
            raise NotImplementedError("off_axis with covariances is not supported")
        covs = jnp.asarray(covs, jnp.float32)
        diag = jnp.diagonal(covs, axis1=-2, axis2=-1).reshape(N, in_dim)
        # One concatenated (N, 2*in_dim) input -> one double-buffered block.
        xd = jnp.concatenate([x, diag], axis=-1)
        M2 = jnp.asarray((np.eye(in_dim, dtype=np.float32)[:, :, None]
                          * (freqs[None, None, :] ** 2))
                         .reshape(in_dim, in_dim * F).astype(np.float32))
    else:
        xd = x

    out_dim = 2 * DF + (in_dim if include_input else 0)
    out_bytes = jnp.dtype(out_dtype).itemsize

    # ---- row tiling (no row/lane padding of the arrays themselves) ----
    n8 = ((N + 7) // 8) * 8
    if block_rows is None:
        per_buf = 3 << 20                          # ~3 MiB per output buffer (x2 double-buffered)
        block_rows = per_buf // max(1, out_dim * out_bytes)
        block_rows = max(_SUB_ROWS, min(4096, block_rows))
        # keep >= ~8 grid steps on large inputs (v7x megacore / pipelining)
        block_rows = min(block_rows, max(_SUB_ROWS, -(-N // 8)))
    block_rows = min(int(block_rows), n8)
    if block_rows > _SUB_ROWS:
        block_rows = (block_rows // _SUB_ROWS) * _SUB_ROWS
        sub = _SUB_ROWS
    else:
        block_rows = ((block_rows + 7) // 8) * 8
        sub = block_rows
    n_sub = block_rows // sub

    grid = (pl.cdiv(N, block_rows),)               # final block may be partial
    xd_spec = pl.BlockSpec((block_rows, xd.shape[1]), lambda i: (i, 0))
    const_spec = lambda a: pl.BlockSpec(a.shape, lambda i: (0, 0))

    if use_covs:
        in_specs = [xd_spec, const_spec(M), const_spec(M2)]
        args = (xd, M, M2)
    else:
        in_specs = [xd_spec, const_spec(M)]
        args = (xd, M)

    kernel = _make_kernel(include_input, use_covs, in_dim, DF, sub, n_sub)

    out = pl.pallas_call(
        kernel,
        out_shape=jax.ShapeDtypeStruct((N, out_dim), out_dtype),
        grid_spec=pltpu.PrefetchScalarGridSpec(
            num_scalar_prefetch=0,
            grid=grid,
            in_specs=in_specs,
            out_specs=pl.BlockSpec((block_rows, out_dim), lambda i: (i, 0)),
        ),
        compiler_params=pltpu.CompilerParams(
            dimension_semantics=("parallel",),
            vmem_limit_bytes=32 * 1024 * 1024,
        ),
    )(*args)

    return out.reshape(*orig_batch, out_dim)


def nerf_encoding_ref(in_tensor, covs=None, *, num_frequencies, min_freq_exp,
                      max_freq_exp, include_input=False, off_axis=False):
    """Pure-JAX reference mirroring the torch forward (full-f32 projection)."""
    x = jnp.asarray(in_tensor, jnp.float32)
    freqs = 2.0 ** jnp.linspace(min_freq_exp, max_freq_exp, num_frequencies,
                                dtype=jnp.float32)
    if off_axis:
        P = jnp.asarray(P_MATRIX)
        # Explicit f32 broadcast-sum (avoids reduced-precision matmul units).
        proj = jnp.sum(x[..., :, None] * P, axis=-2)
        scaled = proj[..., None] * freqs
    else:
        scaled = x[..., None] * freqs
    scaled = scaled.reshape(*scaled.shape[:-2], -1)
    if covs is None:
        enc = jnp.sin(jnp.concatenate([scaled, scaled + jnp.pi / 2.0], axis=-1))
    else:
        var = jnp.diagonal(jnp.asarray(covs, jnp.float32), axis1=-2, axis2=-1)[..., :, None] \
              * freqs[None, :] ** 2
        var = var.reshape(*var.shape[:-2], -1)
        enc = jnp.exp(-0.5 * jnp.concatenate([var, var], axis=-1)) * jnp.sin(
            jnp.concatenate([scaled, scaled + jnp.pi / 2.0], axis=-1))
    if include_input:
        enc = jnp.concatenate([enc, x], axis=-1)
    return enc


if __name__ == "__main__":
    key = jax.random.PRNGKey(0)
    k1, k2, k3 = jax.random.split(key, 3)

    # Module config: in_dim=3, 8 frequencies, exponents [0, 7].
    cfg = dict(num_frequencies=8, min_freq_exp=0.0, max_freq_exp=7.0)

    # Ragged row count (2*61 = 122 rows): exercises the no-pad / partial-final-
    # block path that replaced the wrapper jnp.pad + out[:N] copies.
    x = jax.random.uniform(k1, (2, 61, 3), dtype=jnp.float32)
    diag_vals = jax.random.uniform(k2, (2, 61, 3), dtype=jnp.float32) * 0.1
    covs = diag_vals[..., :, None] * jnp.eye(3, dtype=jnp.float32)

    # 1) plain encoding + include_input
    out1 = nerf_encoding_pallas(x, include_input=True, off_axis=False, **cfg)
    ref1 = nerf_encoding_ref(x, include_input=True, off_axis=False, **cfg)
    # 2) off-axis (icosahedral P projection) encoding, unpadded 336-lane output
    out2 = nerf_encoding_pallas(x, include_input=False, off_axis=True, **cfg)
    ref2 = nerf_encoding_ref(x, include_input=False, off_axis=True, **cfg)
    # 3) integrated positional encoding (covariances provided)
    out3 = nerf_encoding_pallas(x, covs, include_input=True, off_axis=False, **cfg)
    ref3 = nerf_encoding_ref(x, covs, include_input=True, off_axis=False, **cfg)
    # 4) multi-sub-tile path (block_rows > 512 -> in-kernel pl.loop) + ragged tail
    x4 = jax.random.uniform(k3, (1530, 3), dtype=jnp.float32)
    out4 = nerf_encoding_pallas(x4, include_input=False, off_axis=False,
                                block_rows=1536, **cfg)
    ref4 = nerf_encoding_ref(x4, include_input=False, off_axis=False, **cfg)
    # 5) bf16 output writeback (kernel is write-bound: halves HBM write bytes)
    out5 = nerf_encoding_pallas(x, include_input=True, off_axis=False,
                                out_dtype=jnp.bfloat16, **cfg)

    jax.block_until_ready((out1, out2, out3, out4, out5))

    assert out1.shape == (2, 61, 3 * 8 * 2 + 3)
    assert out2.shape == (2, 61, 21 * 8 * 2)
    assert out3.shape == (2, 61, 3 * 8 * 2 + 3)
    assert out4.shape == (1530, 3 * 8 * 2)
    assert out5.shape == (2, 61, 3 * 8 * 2 + 3) and out5.dtype == jnp.bfloat16

    # Tolerance: sin/cos arguments reach ~2^7 * |x @ P| ~ 2.5e2, so f32 argument
    # rounding (and accumulation-order differences) alone produce ~1e-4 absolute
    # differences after sin; 5e-4 keeps the check meaningful (layout bugs give
    # O(0.1..2) errors) while being robust.
    assert jnp.allclose(out1, ref1, atol=5e-4, rtol=1e-4)
    assert jnp.allclose(out2, ref2, atol=5e-4, rtol=1e-4)
    assert jnp.allclose(out3, ref3, atol=5e-4, rtol=1e-4)
    assert jnp.allclose(out4, ref4, atol=5e-4, rtol=1e-4)
    # bf16 output: ~2^-8 relative precision on values in [-1, 1].
    assert jnp.allclose(out5.astype(jnp.float32), ref1, atol=2e-2, rtol=2e-2)

    print("KERNEL_OK")
</pallas_src>

<mosaic_0001>
module attributes {stable_mosaic.version = 11 : i64} {
  func.func @kernel(%arg0: i32, %arg1: memref<128x3xf32, #tpu.memory_space<vmem>>, %arg2: memref<3x24xf32, #tpu.memory_space<vmem>>, %arg3: memref<128x51xf32, #tpu.memory_space<vmem>>) attributes {dimension_semantics = [#tpu.dimension_semantics<parallel>], iteration_bounds = array<i64: 1>, scalar_prefetch = 0 : i64, scratch_operands = 0 : i64, tpu.core_type = #tpu.core_type<tc>, window_params = [{transform_indices = @transform_0, window_bounds = array<i64: 128, 3>}, {pipeline_mode = #tpu.pipeline_mode<synchronous>, transform_indices = @transform_1, window_bounds = array<i64: 3, 24>}, {transform_indices = @transform_2, window_bounds = array<i64: 128, 51>}]} {
    %c0 = arith.constant 0 : index
    %c0_0 = arith.constant 0 : index
    %0 = vector.load %arg2[%c0, %c0_0] : memref<3x24xf32, #tpu.memory_space<vmem>>, vector<3x24xf32>
    %c0_1 = arith.constant 0 : index
    %c0_2 = arith.constant 0 : index
    %1 = vector.load %arg1[%c0_1, %c0_2] : memref<128x3xf32, #tpu.memory_space<vmem>>, vector<128x3xf32>
    %2 = vector.extract_strided_slice %1 {offsets = [0, 0], sizes = [128, 1], strides = [1, 1]} : vector<128x3xf32> to vector<128x1xf32>
    %3 = vector.extract_strided_slice %0 {offsets = [0, 0], sizes = [1, 24], strides = [1, 1]} : vector<3x24xf32> to vector<1x24xf32>
    %4 = vector.broadcast %2 : vector<128x1xf32> to vector<128x24xf32>
    %5 = vector.broadcast %3 : vector<1x24xf32> to vector<128x24xf32>
    %6 = arith.mulf %4, %5 : vector<128x24xf32>
    %7 = vector.extract_strided_slice %1 {offsets = [0, 1], sizes = [128, 1], strides = [1, 1]} : vector<128x3xf32> to vector<128x1xf32>
    %8 = vector.extract_strided_slice %0 {offsets = [1, 0], sizes = [1, 24], strides = [1, 1]} : vector<3x24xf32> to vector<1x24xf32>
    %9 = vector.broadcast %7 : vector<128x1xf32> to vector<128x24xf32>
    %10 = vector.broadcast %8 : vector<1x24xf32> to vector<128x24xf32>
    %11 = arith.mulf %9, %10 : vector<128x24xf32>
    %12 = arith.addf %6, %11 : vector<128x24xf32>
    %13 = vector.extract_strided_slice %1 {offsets = [0, 2], sizes = [128, 1], strides = [1, 1]} : vector<128x3xf32> to vector<128x1xf32>
    %14 = vector.extract_strided_slice %0 {offsets = [2, 0], sizes = [1, 24], strides = [1, 1]} : vector<3x24xf32> to vector<1x24xf32>
    %15 = vector.broadcast %13 : vector<128x1xf32> to vector<128x24xf32>
    %16 = vector.broadcast %14 : vector<1x24xf32> to vector<128x24xf32>
    %17 = arith.mulf %15, %16 : vector<128x24xf32>
    %18 = arith.addf %12, %17 : vector<128x24xf32>
    %19 = math.sin %18 : vector<128x24xf32>
    %c0_3 = arith.constant 0 : index
    %c0_4 = arith.constant 0 : index
    %20 = vector.load %arg3[%c0_3, %c0_4] : memref<128x51xf32, #tpu.memory_space<vmem>>, vector<128x24xf32>
    tpu.vector_store %arg3[%c0_3, %c0_4], %19 {strides = array<i32>} : memref<128x51xf32, #tpu.memory_space<vmem>>, vector<128x24xf32>,
    %21 = math.cos %18 : vector<128x24xf32>
    %c0_5 = arith.constant 0 : index
    %c24 = arith.constant 24 : index
    %22 = vector.load %arg3[%c0_5, %c24] : memref<128x51xf32, #tpu.memory_space<vmem>>, vector<128x24xf32>
    tpu.vector_store %arg3[%c0_5, %c24], %21 {strides = array<i32>} : memref<128x51xf32, #tpu.memory_space<vmem>>, vector<128x24xf32>,
    %c0_6 = arith.constant 0 : index
    %c48 = arith.constant 48 : index
    %23 = vector.load %arg3[%c0_6, %c48] : memref<128x51xf32, #tpu.memory_space<vmem>>, vector<128x3xf32>
    tpu.vector_store %arg3[%c0_6, %c48], %1 {strides = array<i32>} : memref<128x51xf32, #tpu.memory_space<vmem>>, vector<128x3xf32>,
    return
  }
  func.func @transform_0(%arg0: i32) -> (i32, i32) {
    %c0_i32 = arith.constant 0 : i32
    %c0_i32_0 = arith.constant 0 : i32
    return %arg0, %c0_i32 : i32, i32
  }
  func.func @transform_1(%arg0: i32) -> (i32, i32) {
    %c0_i32 = arith.constant 0 : i32
    %c0_i32_0 = arith.constant 0 : i32
    %c0_i32_1 = arith.constant 0 : i32
    return %c0_i32, %c0_i32_0 : i32, i32
  }
  func.func @transform_2(%arg0: i32) -> (i32, i32) {
    %c0_i32 = arith.constant 0 : i32
    %c0_i32_0 = arith.constant 0 : i32
    return %arg0, %c0_i32 : i32, i32
  }
}

</mosaic_0001>

<bundles_post_ra>
// kernel: tpu_custom_call.1
= control target key start
LH: loop header
LB: loop body
LE: loop exit
PB: predicated region body
PF: predicated region fallthrough
CT: control target
= control target key end

     0   :  { %v4082_v0 = vmov 0   ;;  %v4083_v17 = vmov 1   ;;  %v4084_v18 = vmov 2   ;;  %v108_v19 = vlaneseq  ;;  %s4092_s15 = smov 24   ;;  %s6808_s0 = inlined_call_operand.vmem [shape: f32[122,3], index: 0, kind: input, shape index: {}]   ;;  %s6809_s1 = inlined_call_operand.vmem [shape: f32[3,24], index: 1, kind: input, shape index: {}]   ;;  %s6810_s2 = inlined_call_operand.vmem [shape: f32[122,51], index: 2, kind: output, shape index: {}]  }
   0x1   :  { %4011 = vset.pattern.permute.xlu1 %v4082_v0  ;;  %4010 = vset.pattern.permute.xlu0 %v4082_v0  ;;  %v4111_v1 = vld [vmem:[%s6808_s0 + $0x10] sm:$0xff]  ;;  %v4116_v2 = vld [vmem:[%s6808_s0] sm:$0xff]  ;;  %v4123_v3 = vld [vmem:[%s6808_s0 + $0x18] sm:$0xff] }
   0x2   :  { %40 = vperm.xlu1 %4011, %v4111_v1   ;;  %30 = vperm.xlu0 %4010, %v4116_v2   ;;  %v4128_v4 = vld [vmem:[%s6808_s0 + $0x8] sm:$0xff]  ;;  %v4140_v6 = vld [vmem:[%s6808_s0 + $0x20] sm:$0xff]  ;;  %v4147_v7 = vld [vmem:[%s6808_s0 + $0x38] sm:$0xff]  ;;  %v4226_v20 = vshrl.u32 %v108_v19, 7 }
   0x3   :  { %v4135_v5 = vld [vmem:[%s6808_s0 + $0x28] sm:$0xff]  ;;  %v4152_v8 = vld [vmem:[%s6808_s0 + $0x30] sm:$0xff]  ;;  %v4164_v10 = vld [vmem:[%s6808_s0 + $0x40] sm:$0xff] }
   0x4   :  { %v4159_v9 = vld [vmem:[%s6808_s0 + $0x48] sm:$0xff]  ;;  %v4171_v11 = vld [vmem:[%s6808_s0 + $0x58] sm:$0xff]  ;;  %v4176_v12 = vld [vmem:[%s6808_s0 + $0x50] sm:$0xff]  ;;  %v110_v23 = vsub.s32 0, %v4226_v20  ;;  %v194_v52 = vsub.s32 1, %v4226_v20 }
   0x5   :  { %v4183_v13 = vld [vmem:[%s6808_s0 + $0x68] sm:$0xff]  ;;  %v4188_v14 = vld [vmem:[%s6808_s0 + $0x60] sm:$0xff]  ;;  %v27_v15 = vld [vmem:[%s6808_s0 + $0x78] sm:$0xff] }
   0x6   :  { %45 = vperm.xlu1 %4011, %v4123_v3   ;;  %35 = vperm.xlu0 %4010, %v4128_v4   ;;  %v26_v16 = vld [vmem:[%s6808_s0 + $0x70] sm:$0xff]  ;;  %v4236_v24 = vld [vmem:[%s6809_s1] sm:$0x7]  ;;  %s4085_s1 = smov 48  }
   0x7   :  { %v4241_v27 = vrot.slane %v4236_v24, %v110_v23  ;;  %v4265_v55 = vrot.slane %v4236_v24, %v194_v52 }
   0xa   :  { %55 = vperm.xlu1 %4011, %v4135_v5   ;;  %50 = vperm.xlu0 %4010, %v4140_v6  }
   0xe   :  { %65 = vperm.xlu1 %4011, %v4147_v7   ;;  %60 = vperm.xlu0 %4010, %v4152_v8  }
  0x12   :  { %75 = vperm.xlu1 %4011, %v4159_v9   ;;  %70 = vperm.xlu0 %4010, %v4164_v10  }
  0x16   :  { %85 = vperm.xlu1 %4011, %v4171_v11   ;;  %80 = vperm.xlu0 %4010, %v4176_v12  }
  0x1a   :  { %95 = vperm.xlu1 %4011, %v4183_v13   ;;  %90 = vperm.xlu0 %4010, %v4188_v14  }
  0x1e   :  { %105 = vperm.xlu1 %4011, %v27_v15   ;;  %100 = vperm.xlu0 %4010, %v26_v16  }
  0x22   :  { %4013 = vset.pattern.permute.xlu1 %v4083_v17  ;;  %4012 = vset.pattern.permute.xlu0 %v4083_v17 }
  0x23   :  { %133 = vperm.xlu1 %4013, %v4128_v4   ;;  %129 = vperm.xlu0 %4012, %v4116_v2  }
  0x27   :  { %137 = vperm.xlu1 %4013, %v4111_v1   ;;  %141 = vperm.xlu0 %4012, %v4123_v3  }
  0x2b   :  { %145 = vperm.xlu1 %4013, %v4140_v6   ;;  %149 = vperm.xlu0 %4012, %v4135_v5  }
  0x2f   :  { %153 = vperm.xlu1 %4013, %v4152_v8   ;;  %157 = vperm.xlu0 %4012, %v4147_v7  }
  0x33   :  { %161 = vperm.xlu1 %4013, %v4164_v10   ;;  %165 = vperm.xlu0 %4012, %v4159_v9  }
  0x37   :  { %169 = vperm.xlu1 %4013, %v4176_v12   ;;  %173 = vperm.xlu0 %4012, %v4171_v11  }
  0x3b   :  { %177 = vperm.xlu1 %4013, %v4188_v14   ;;  %181 = vperm.xlu0 %4012, %v4183_v13  }
  0x3f   :  { %185 = vperm.xlu1 %4013, %v26_v16   ;;  %189 = vperm.xlu0 %4012, %v27_v15  }
  0x43   :  { %4014 = vset.pattern.permute.xlu1 %v4084_v18  ;;  %4015 = vset.pattern.permute.xlu0 %v4084_v18 }
  0x44   :  { %229 = vperm.xlu1 %4014, %v4116_v2   ;;  %233 = vperm.xlu0 %4015, %v4128_v4  }
  0x48   :  { %237 = vperm.xlu1 %4014, %v4111_v1   ;;  %245 = vperm.xlu0 %4015, %v4140_v6  }
  0x4c   :  { %241 = vperm.xlu1 %4014, %v4123_v3   ;;  %253 = vperm.xlu0 %4015, %v4152_v8  }
  0x50   :  { %249 = vperm.xlu1 %4014, %v4135_v5   ;;  %261 = vperm.xlu0 %4015, %v4164_v10  }
  0x54   :  { %257 = vperm.xlu1 %4014, %v4147_v7   ;;  %269 = vperm.xlu0 %4015, %v4176_v12  }
  0x58   :  { %265 = vperm.xlu1 %4014, %v4159_v9   ;;  %277 = vperm.xlu0 %4015, %v4188_v14  }
  0x5c   :  { %273 = vperm.xlu1 %4014, %v4171_v11   ;;  %285 = vperm.xlu0 %4015, %v26_v16  }
  0x60   :  { %281 = vperm.xlu1 %4014, %v4183_v13   ;;  %3738 = vrot.lane.b32.xlu0 %v4116_v2, %s4085_s1 }
  0x64   :  { %289 = vperm.xlu1 %4014, %v27_v15   ;;  %3742 = vrot.lane.b32.xlu0 %v4111_v1, %s4085_s1 }
  0x68   :  { %3740 = vrot.lane.b32.xlu1 %v4128_v4, %s4085_s1  ;;  %3746 = vrot.lane.b32.xlu0 %v4140_v6, %s4085_s1 }
  0x6c   :  { %3744 = vrot.lane.b32.xlu1 %v4123_v3, %s4085_s1  ;;  %3750 = vrot.lane.b32.xlu0 %v4152_v8, %s4085_s1 }
  0x70   :  { %3748 = vrot.lane.b32.xlu1 %v4135_v5, %s4085_s1  ;;  %3754 = vrot.lane.b32.xlu0 %v4164_v10, %s4085_s1 }
  0x74   :  { %3752 = vrot.lane.b32.xlu1 %v4147_v7, %s4085_s1  ;;  %3758 = vrot.lane.b32.xlu0 %v4176_v12, %s4085_s1 }
  0x78   :  { %3756 = vrot.lane.b32.xlu1 %v4159_v9, %s4085_s1  ;;  %3762 = vrot.lane.b32.xlu0 %v4188_v14, %s4085_s1 }
  0x7c   :  { %3760 = vrot.lane.b32.xlu1 %v4171_v11, %s4085_s1 }
  0x7d   :  { %v4228_v21 = vpop.permute.xlu1 %40  ;;  %v4230_v22 = vpop.permute.xlu0 %30 }
  0x80   :  { %3764 = vrot.lane.b32.xlu1 %v4183_v13, %s4085_s1 }
  0x81   :  { %v46_v25 = vpop.permute.xlu1 %45  ;;  %v4238_v26 = vpop.permute.xlu0 %35 }
  0x82   :  { %v115_v58 = vmul.f32 %v4241_v27, %v46_v25 }
  0x85   :  { %v56_v28 = vpop.permute.xlu1 %55  ;;  %v51_v29 = vpop.permute.xlu0 %50 }
  0x86   :  { %v117_v30 = vmul.f32 %v4241_v27, %v56_v28  ;;  %v116_v31 = vmul.f32 %v4241_v27, %v51_v29 }
  0x89   :  { %v66_v32 = vpop.permute.xlu1 %65  ;;  %v61_v33 = vpop.permute.xlu0 %60 }
  0x8a   :  { %v119_v34 = vmul.f32 %v4241_v27, %v66_v32  ;;  %v118_v35 = vmul.f32 %v4241_v27, %v61_v33 }
  0x8d   :  { %v76_v36 = vpop.permute.xlu1 %75  ;;  %v71_v37 = vpop.permute.xlu0 %70 }
  0x8e   :  { %v121_v38 = vmul.f32 %v4241_v27, %v76_v36  ;;  %v120_v39 = vmul.f32 %v4241_v27, %v71_v37  ;;  %v294_v37 = vsub.s32 2, %v4226_v20 }
  0x91   :  { %v86_v40 = vpop.permute.xlu1 %85  ;;  %v81_v41 = vpop.permute.xlu0 %80 }
  0x92   :  { %v123_v42 = vmul.f32 %v4241_v27, %v86_v40  ;;  %v122_v43 = vmul.f32 %v4241_v27, %v81_v41  ;;  %v4327_v41 = vrot.slane %v4236_v24, %v294_v37 }
  0x95   :  { %v96_v44 = vpop.permute.xlu1 %95  ;;  %v91_v45 = vpop.permute.xlu0 %90 }
  0x96   :  { %v125_v46 = vmul.f32 %v4241_v27, %v96_v44  ;;  %v124_v47 = vmul.f32 %v4241_v27, %v91_v45 }
  0x99   :  { %v106_v48 = vpop.permute.xlu1 %105  ;;  %v101_v49 = vpop.permute.xlu0 %100 }
  0x9a   :  { %v127_v50 = vmul.f32 %v4241_v27, %v106_v48  ;;  %v126_v51 = vmul.f32 %v4241_v27, %v101_v49  ;;  %v113_v48 = vmul.f32 %v4241_v27, %v4238_v26 }
  0x9e   :  { %v134_v53 = vpop.permute.xlu1 %133  ;;  %v130_v54 = vpop.permute.xlu0 %129 }
  0x9f   :  { %v197_v44 = vmul.f32 %v4265_v55, %v134_v53 }
  0xa2   :  { %v4267_v56 = vpop.permute.xlu1 %137  ;;  %v142_v57 = vpop.permute.xlu0 %141 }
  0xa3   :  { %v199_v59 = vmul.f32 %v4265_v55, %v142_v57 }
  0xa5   :  { %v4275_v60 = vadd.f32 %v199_v59, %v115_v58  ;;  %v198_v58 = vmul.f32 %v4265_v55, %v4267_v56 }
  0xa6   :  { %v146_v61 = vpop.permute.xlu1 %145  ;;  %v150_v62 = vpop.permute.xlu0 %149 }
  0xa7   :  { %v200_v63 = vmul.f32 %v4265_v55, %v146_v61  ;;  %v201_v0 = vmul.f32 %v4265_v55, %v150_v62  ;;  %v114_v61 = vmul.f32 %v4241_v27, %v4228_v21 }
  0xa9   :  { %v216_v1 = vadd.f32 %v200_v63, %v116_v31  ;;  %v4283_v2 = vadd.f32 %v201_v0, %v117_v30  ;;  %v214_v0 = vadd.f32 %v198_v58, %v114_v61 }
  0xaa   :  { %v154_v3 = vpop.permute.xlu1 %153  ;;  %v158_v4 = vpop.permute.xlu0 %157 }
  0xab   :  { %v202_v5 = vmul.f32 %v4265_v55, %v154_v3  ;;  %v203_v6 = vmul.f32 %v4265_v55, %v158_v4 }
  0xad   :  { %v218_v7 = vadd.f32 %v202_v5, %v118_v35  ;;  %v4291_v8 = vadd.f32 %v203_v6, %v119_v34 }
  0xae   :  { %v162_v15 = vpop.permute.xlu1 %161  ;;  %v166_v16 = vpop.permute.xlu0 %165 }
  0xaf   :  { %v204_v9 = vmul.f32 %v4265_v55, %v162_v15  ;;  %v205_v17 = vmul.f32 %v4265_v55, %v166_v16 }
  0xb1   :  { %v4299_v10 = vadd.f32 %v204_v9, %v120_v39  ;;  %v4301_v18 = vadd.f32 %v205_v17, %v121_v38 }
  0xb2   :  { %v170_v19 = vpop.permute.xlu1 %169  ;;  %v174_v23 = vpop.permute.xlu0 %173 }
  0xb3   :  { %v206_v11 = vmul.f32 %v4265_v55, %v170_v19  ;;  %v207_v12 = vmul.f32 %v4265_v55, %v174_v23 }
  0xb5   :  { %v4309_v25 = vadd.f32 %v206_v11, %v122_v43  ;;  %v4311_v28 = vadd.f32 %v207_v12, %v123_v42  ;;  %v196_v43 = vmul.f32 %v4265_v55, %v130_v54 }
  0xb6   :  { %v178_v29 = vpop.permute.xlu1 %177  ;;  %v182_v30 = vpop.permute.xlu0 %181 }
  0xb7   :  { %v208_v31 = vmul.f32 %v4265_v55, %v178_v29  ;;  %v209_v32 = vmul.f32 %v4265_v55, %v182_v30 }
  0xb9   :  { %v4315_v33 = vadd.f32 %v208_v31, %v124_v47  ;;  %v4317_v13 = vadd.f32 %v209_v32, %v125_v46  ;;  %v112_v46 = vmul.f32 %v4241_v27, %v4230_v22 }
  0xba   :  { %v186_v34 = vpop.permute.xlu1 %185  ;;  %v190_v14 = vpop.permute.xlu0 %189 }
  0xbb   :  { %v210_v35 = vmul.f32 %v4265_v55, %v186_v34  ;;  %v211_v36 = vmul.f32 %v4265_v55, %v190_v14  ;;  %v212_v24 = vadd.f32 %v196_v43, %v112_v46 }
  0xbd   :  { %v4322_v38 = vadd.f32 %v210_v35, %v126_v51  ;;  %v4324_v39 = vadd.f32 %v211_v36, %v127_v50  ;;  %v213_v51 = vadd.f32 %v197_v44, %v113_v48 }
  0xbf   :  { %v234_v40 = vpop.permute.xlu0 %233  ;;  %v230_v42 = vpop.permute.xlu1 %229 }
  0xc0   :  { %v296_v47 = vmul.f32 %v4327_v41, %v230_v42  ;;  %v297_v49 = vmul.f32 %v4327_v41, %v234_v40 }
  0xc2   :  { %v4340_v54 = vadd.f32 %v296_v47, %v212_v24  ;;  %v4342_v53 = vadd.f32 %v297_v49, %v213_v51 }
  0xc3   :  { %v246_v45 = vpop.permute.xlu0 %245  ;;  %v238_v57 = vpop.permute.xlu1 %237 }
  0xc4   :  { %v300_v20 = vmul.f32 %v4327_v41, %v246_v45  ;;  %v331_v26 = vand.u32 2139095040, %v4340_v54  ;;  %v435_v62 = vand.u32 2139095040, %v4342_v53  ;;  %v298_v63 = vmul.f32 %v4327_v41, %v238_v57 }
  0xc5   :  { %v6812_v35 = vand.u32 2147483647, %v4340_v54  ;;  %v6811_v45 = vand.u32 2147483647, %v4342_v53 }
  0xc6   :  { %v4338_v50 = vadd.f32 %v300_v20, %v216_v1  ;;  %v332_v1 = vshrl.u32 %v331_v26, 23  ;;  %v436_v3 = vshrl.u32 %v435_v62, 23  ;;  %v4354_v4 = vadd.f32 %v298_v63, %v214_v0 }
  0xc7   :  { %v254_v52 = vpop.permute.xlu0 %253  ;;  %v242_v5 = vpop.permute.xlu1 %241  ;;  %v4388_v48 = vand.u32 8388607, %v6812_v35  ;;  %v4399_v26 = vand.u32 8388607, %v6811_v45 }
  0xc8   :  { %6911 = vst [vmem:[#allocation2_spill] sm:$0xff] %v4338_v50  ;;  %v302_v22 = vmul.f32 %v4327_v41, %v254_v52  ;;  %v3807_v6 = vadd.s32 4294967169, %v332_v1  ;;  %v3811_v15 = vadd.s32 4294967169, %v436_v3  ;;  %v539_v55 = vand.u32 2139095040, %v4354_v4 }
  0xc9   :  { %v299_v9 = vmul.f32 %v4327_v41, %v242_v5  ;;  %v747_v17 = vand.u32 2139095040, %v4338_v50  ;;  %v6813_v3 = vmov 2102212464  }
  0xca   :  { %v4347_v59 = vadd.f32 %v302_v22, %v218_v7  ;;  %v338_v16 = vadd.s32 1, %v3807_v6  ;;  %v442_v21 = vadd.s32 1, %v3811_v15  ;;  %v540_v27 = vshrl.u32 %v539_v55, 23 }
  0xcb   :  { %v250_v56 = vpop.permute.xlu1 %249  ;;  %v262_v7 = vpop.permute.xlu0 %261  ;;  %v4362_v11 = vadd.f32 %v299_v9, %v4275_v60  ;;  %v748_v14 = vshrl.u32 %v747_v17, 23  ;;  %v6817_v55 = vmov 920167782  }
  0xcc   :  { %6912 = vst [vmem:[#allocation3_spill] sm:$0xff] %v4347_v59  ;;  %v301_v19 = vmul.f32 %v4327_v41, %v250_v56  ;;  %v304_v23 = vmul.f32 %v4327_v41, %v262_v7  ;;  %vm339_vm0 = vcmp.gt.s32.totalorder %v338_v16, 0  ;;  %vm443_vm1 = vcmp.gt.s32.totalorder %v442_v21, 0 }
  0xcd   :  { %v3815_v12 = vadd.s32 4294967169, %v540_v27  ;;  %v340_v34 = vsel %vm339_vm0, %v338_v16, 0  ;;  %v444_v36 = vsel %vm443_vm1, %v442_v21, 0  ;;  %v643_v37 = vand.u32 2139095040, %v4362_v11 }
  0xce   :  { %v4365_v29 = vadd.f32 %v301_v19, %v4283_v2  ;;  %v4368_v30 = vadd.f32 %v304_v23, %v4299_v10  ;;  %v955_v2 = vand.u32 2139095040, %v4347_v59  ;;  %v4375_v43 = vand.u32 31, %v340_v34 }
  0xcf   :  { %v258_v31 = vpop.permute.xlu1 %257  ;;  %v270_v32 = vpop.permute.xlu0 %269  ;;  %v546_v42 = vadd.s32 1, %v3815_v12  ;;  %v4377_v10 = vand.u32 31, %v444_v36  ;;  %v3823_v44 = vadd.s32 4294967169, %v748_v14  ;;  %v644_v46 = vshrl.u32 %v643_v37, 23 }
  0xd0   :  { %6913 = vst [vmem:[#allocation4_spill] sm:$0xff] %v4365_v29  ;;  %6914 = vst [vmem:[#allocation5_spill] sm:$0xff] %v4368_v30  ;;  %v303_v60 = vmul.f32 %v4327_v41, %v258_v31  ;;  %v306_v40 = vmul.f32 %v4327_v41, %v270_v32  ;;  %v956_v49 = vshrl.u32 %v955_v2, 23  ;;  %v4391_v52 = vsub.s32 32, %v4375_v43 }
  0xd1   :  { %vm547_vm2 = vcmp.gt.s32.totalorder %v546_v42, 0  ;;  %v4394_v22 = vsub.s32 32, %v4377_v10  ;;  %v754_v57 = vadd.s32 1, %v3823_v44  ;;  %v3819_v58 = vadd.s32 4294967169, %v644_v46 }
  0xd2   :  { %v4381_v47 = vadd.f32 %v303_v60, %v4291_v8  ;;  %v4384_v20 = vadd.f32 %v306_v40, %v4309_v25  ;;  %v548_v8 = vsel %vm547_vm2, %v546_v42, 0  ;;  %v3831_v61 = vadd.s32 4294967169, %v956_v49 }
  0xd3   :  { %v266_v24 = vpop.permute.xlu1 %265  ;;  %v278_v51 = vpop.permute.xlu0 %277  ;;  %v851_v62 = vand.u32 2139095040, %v4365_v29  ;;  %v4404_v1 = vshrl.u32 %v340_v34, 5  ;;  %v354_v5 = vshll.u32 %v6813_v3, %v4375_v43  ;;  %v4408_v6 = vshrl.u32 %v444_v36, 5 }
  0xd4   :  { %6915 = vst [vmem:[#allocation6_spill] sm:$0xff] %v4381_v47  ;;  %6916 = vst [vmem:[#allocation7_spill] sm:$0xff] %v4384_v20  ;;  %v305_v63 = vmul.f32 %v4327_v41, %v266_v24  ;;  %v308_v0 = vmul.f32 %v4327_v41, %v278_v51  ;;  %v1163_v15 = vand.u32 2139095040, %v4368_v30  ;;  %v355_v56 = vshrl.u32 %v6817_v55, %v4391_v52 }
  0xd5   :  { %v6815_v7 = vmov 1326507024   ;;  %v459_v9 = vshrl.u32 %v6817_v55, %v4394_v22  ;;  %vm755_vm3 = vcmp.gt.s32.totalorder %v754_v57, 0  ;;  %v4417_v21 = vand.u32 31, %v548_v8 }
  0xd6   :  { %v358_v16 = vshrl.u32 %v6815_v7, %v4391_v52  ;;  %v650_v27 = vadd.s32 1, %v3819_v58  ;;  %v4420_v17 = vadd.f32 %v305_v63, %v4301_v18  ;;  %v4423_v19 = vadd.f32 %v308_v0, %v4315_v33 }
  0xd7   :  { %v274_v23 = vpop.permute.xlu1 %273  ;;  %v357_v12 = vshll.u32 %v6817_v55, %v4375_v43  ;;  %v962_v31 = vadd.s32 1, %v3831_v61  ;;  %v852_v32 = vshrl.u32 %v851_v62, 23  ;;  %v1059_v34 = vand.u32 2139095040, %v4381_v47 }
  0xd8   :  { %6917 = vst [vmem:[#allocation8_spill] sm:$0xff] %v4420_v17  ;;  %6918 = vst [vmem:[#allocation9_spill] sm:$0xff] %v4423_v19  ;;  %v458_v14 = vshll.u32 %v6813_v3, %v4377_v10  ;;  %v462_v36 = vshrl.u32 %v6815_v7, %v4394_v22  ;;  %v756_v37 = vsel %vm755_vm3, %v754_v57, 0  ;;  %v1164_v18 = vshrl.u32 %v1163_v15, 23 }
  0xd9   :  { %v4432_v60 = vor.u32 %v355_v56, %v354_v5  ;;  %vm363_vm4 = vcmp.lt.s32.totalorder %v4404_v1, 4  ;;  %v461_v33 = vshll.u32 %v6817_v55, %v4377_v10  ;;  %v1371_v40 = vand.u32 2139095040, %v4384_v20 }
  0xda   :  { %v359_v42 = vor.u32 %v358_v16, %v357_v12  ;;  %v4438_v2 = vor.u32 %v459_v9, %v458_v14  ;;  %v4441_v44 = vsub.s32 32, %v4417_v21  ;;  %vm651_vm5 = vcmp.gt.s32.totalorder %v650_v27, 0 }
  0xdb   :  { %v4443_v46 = vand.u32 31, %v756_v37  ;;  %vm963_vm6 = vcmp.gt.s32.totalorder %v962_v31, 0  ;;  %v3827_v49 = vadd.s32 4294967169, %v852_v32  ;;  %v1060_v24 = vshrl.u32 %v1059_v34, 23  ;;  %v282_v61 = vpop.permute.xlu1 %281  ;;  %v286_v34 = vpop.permute.xlu0 %285 }
  0xdc   :  { %v463_v51 = vor.u32 %v462_v36, %v461_v33  ;;  %vm467_vm7 = vcmp.lt.s32.totalorder %v4408_v6, 4  ;;  %v4446_v57 = vshrl.u32 %v548_v8, 5  ;;  %v3839_v58 = vadd.s32 4294967169, %v1164_v18 }
  0xdd   :  { %6919 = vst [vmem:[#allocation10_spill] sm:$0xff] %v4443_v46  ;;  %v4451_v62 = vsel %vm363_vm4, %v4432_v60, 920167782  ;;  %v4453_v63 = vshrl.u32 %v756_v37, 5  ;;  %v652_v0 = vsel %vm651_vm5, %v650_v27, 0  ;;  %v1372_v5 = vshrl.u32 %v1371_v40, 23 }
  0xde   :  { %v4457_v15 = vsel %vm363_vm4, %v359_v42, 1326507024  ;;  %v562_v56 = vshll.u32 %v6813_v3, %v4417_v21  ;;  %v563_v8 = vshrl.u32 %v6817_v55, %v4441_v44  ;;  %v964_v16 = vsel %vm963_vm6, %v962_v31, 0 }
  0xdf   :  { %6920 = vst [vmem:[#allocation11_spill] sm:$0xff] %v4453_v63  ;;  %v4466_v9 = vsel %vm467_vm7, %v4438_v2, 920167782  ;;  %v4469_v12 = vsub.s32 32, %v4443_v46  ;;  %v858_v27 = vadd.s32 1, %v3827_v49  ;;  %v3835_v32 = vadd.s32 4294967169, %v1060_v24  ;;  %v290_v45 = vpop.permute.xlu1 %289 }
  0xe0   :  { %v4473_v14 = vsel %vm467_vm7, %v463_v51, 1326507024  ;;  %v565_v36 = vshll.u32 %v6817_v55, %v4417_v21  ;;  %v4477_v37 = vand.u32 31, %v652_v0  ;;  %v1170_v31 = vadd.s32 1, %v3839_v58 }
  0xe1   :  { %6921 = vst [vmem:[#allocation12_spill] sm:$0xff] %v4469_v12  ;;  %v566_v18 = vshrl.u32 %v6815_v7, %v4441_v44  ;;  %vm571_vm8 = vcmp.lt.s32.totalorder %v4446_v57, 4  ;;  %v4482_v33 = vand.u32 31, %v964_v16  ;;  %v3847_v40 = vadd.s32 4294967169, %v1372_v5 }
  0xe2   :  { %v4484_v42 = vor.u32 %v563_v8, %v562_v56  ;;  %v770_v49 = vshll.u32 %v6813_v3, %v4443_v46  ;;  %v307_v24 = vmul.f32 %v4327_v41, %v274_v23  ;;  %v310_v51 = vmul.f32 %v4327_v41, %v286_v34 }
  0xe3   :  { %6922 = vst [vmem:[#allocation13_spill] sm:$0xff] %v4482_v33  ;;  %v771_v58 = vshrl.u32 %v6817_v55, %v4469_v12  ;;  %v774_v35 = vshrl.u32 %v6815_v7, %v4469_v12  ;;  %vm859_vm9 = vcmp.gt.s32.totalorder %v858_v27, 0  ;;  %v1066_v25 = vadd.s32 1, %v3835_v32 }
  0xe4   :  { %v4495_v5 = vsub.s32 32, %v4477_v37  ;;  %vm1171_vm10 = vcmp.gt.s32.totalorder %v1170_v31, 0  ;;  %v4498_v56 = vadd.f32 %v307_v24, %v4311_v28  ;;  %v4501_v23 = vadd.f32 %v310_v51, %v4322_v38 }
  0xe5   :  { %v4504_v8 = vsub.s32 32, %v4482_v33  ;;  %v1378_v34 = vadd.s32 1, %v3847_v40  ;;  %v309_v3 = vmul.f32 %v4327_v41, %v282_v61  ;;  %v311_v7 = vmul.f32 %v4327_v41, %v290_v45 }
  0xe6   :  { %6923 = vst [vmem:[#allocation14_spill] sm:$0xff] %v4498_v56  ;;  %6924 = vst [vmem:[#allocation15_spill] sm:$0xff] %v4501_v23  ;;  %v567_v55 = vor.u32 %v566_v18, %v565_v36  ;;  %v6926_v32 = vmov 920167782   ;;  %vm779_vm11 = vcmp.lt.s32.totalorder %v4453_v63, 4  ;;  %v860_v30 = vsel %vm859_vm9, %v858_v27, 0 }
  0xe7   :  { %6925 = vst [vmem:[#allocation16_spill] sm:$0xff] %v4504_v8  ;;  %v773_v20 = vshll.u32 %v6926_v32, %v4443_v46  ;;  %v1172_v28 = vsel %vm1171_vm10, %v1170_v31, 0  ;;  %vm1067_vm12 = vcmp.gt.s32.totalorder %v1066_v25, 0  ;;  %v4512_v38 = vadd.f32 %v309_v3, %v4317_v13 }
  0xe8   :  { %v4515_v24 = vadd.f32 %v311_v7, %v4324_v39  ;;  %v4520_v61 = vsel %vm571_vm8, %v4484_v42, 920167782  ;;  %v4522_v41 = vor.u32 %v771_v58, %v770_v49  ;;  %v667_v45 = vshrl.u32 %v6926_v32, %v4495_v5 }
  0xe9   :  { %6927 = vst [vmem:[#allocation17_spill] sm:$0xff] %v4512_v38  ;;  %v6930_v27 = vmov 1326507024   ;;  %v775_v31 = vor.u32 %v774_v35, %v773_v20  ;;  %v979_v13 = vshrl.u32 %v6926_v32, %v4504_v8  ;;  %v4530_v3 = vand.u32 31, %v860_v30 }
  0xea   :  { %6928 = vst [vmem:[#allocation18_spill] sm:$0xff] %v4515_v24  ;;  %6929 = vst [vmem:[#allocation19_spill] sm:$0xff] %v4522_v41  ;;  %v670_v36 = vshrl.u32 %v6930_v27, %v4495_v5  ;;  %vm1379_vm13 = vcmp.gt.s32.totalorder %v1378_v34, 0  ;;  %v6932_v39 = vmov 2102212464   ;;  %v669_v18 = vshll.u32 %v6926_v32, %v4477_v37 }
  0xeb   :  { %6931 = vst [vmem:[#allocation20_spill] sm:$0xff] %v4530_v3  ;;  %v666_v7 = vshll.u32 %v6932_v39, %v4477_v37  ;;  %v4536_v40 = vand.u32 31, %v1172_v28  ;;  %v1068_v49 = vsel %vm1067_vm12, %v1066_v25, 0  ;;  %v4540_v51 = vsel %vm571_vm8, %v567_v55, 1326507024 }
  0xec   :  { %v4542_v35 = vshrl.u32 %v652_v0, 5  ;;  %v978_v20 = vshll.u32 %v6932_v39, %v4482_v33  ;;  %v982_v58 = vshrl.u32 %v6930_v27, %v4504_v8  ;;  %v671_v59 = vor.u32 %v670_v36, %v669_v18 }
  0xed   :  { %6933 = vst [vmem:[#allocation21_spill] sm:$0xff] %v4536_v40  ;;  %v4548_v47 = vor.u32 %v667_v45, %v666_v7  ;;  %v4550_v29 = vshrl.u32 %v964_v16, 5  ;;  %v1380_v46 = vsel %vm1379_vm13, %v1378_v34, 0  ;;  %v981_v25 = vshll.u32 %v6926_v32, %v4482_v33 }
  0xee   :  { %v4552_v12 = vor.u32 %v979_v13, %v978_v20  ;;  %v4557_v55 = vsub.s32 32, %v4530_v3  ;;  %v4559_v0 = vand.u32 31, %v1068_v49  ;;  %v4564_v8 = vsel %vm779_vm11, %v4522_v41, 920167782 }
  0xef   :  { %6934 = vst [vmem:[#allocation22_spill] sm:$0xff] %v4548_v47  ;;  %6935 = vst [vmem:[#allocation23_spill] sm:$0xff] %v4550_v29  ;;  %v4568_v16 = vsel %vm779_vm11, %v775_v31, 1326507024  ;;  %v4571_v34 = vsub.s32 32, %v4536_v40  ;;  %v1267_v45 = vand.u32 2139095040, %v4420_v17  ;;  %v983_v36 = vor.u32 %v982_v58, %v981_v25 }
  0xf0   :  { %6936 = vst [vmem:[#allocation24_spill] sm:$0xff] %v4552_v12  ;;  %6937 = vst [vmem:[#allocation25_spill] sm:$0xff] %v4557_v55  ;;  %vm675_vm14 = vcmp.lt.s32.totalorder %v4542_v35, 4  ;;  %v4575_v13 = vand.u32 31, %v1380_v46  ;;  %v1579_v7 = vand.u32 2139095040, %v4423_v19  ;;  %vm987_vm15 = vcmp.lt.s32.totalorder %v4550_v29, 4 }
  0xf1   :  { %6938 = vst [vmem:[#allocation26_spill] sm:$0xff] %v4559_v0  ;;  %6939 = vst [vmem:[#allocation27_spill] sm:$0xff] %v4564_v8  ;;  %v4581_v18 = vsel %vm675_vm14, %v4548_v47, 920167782  ;;  %v4585_v31 = vsel %vm675_vm14, %v671_v59, 1326507024  ;;  %v875_v19 = vshrl.u32 %v6926_v32, %v4557_v55  ;;  %v878_v59 = vshrl.u32 %v6930_v27, %v4557_v55 }
  0xf2   :  { %6940 = vst [vmem:[#allocation28_spill] sm:$0xff] %v4568_v16  ;;  %6941 = vst [vmem:[#allocation29_spill] sm:$0xff] %v4571_v34  ;;  %v6943_v20 = vor.u32 8388608, %v4388_v48  ;;  %v4595_v58 = vsel %vm987_vm15, %v4552_v12, 920167782  ;;  %v4597_v25 = vshrl.u32 %v860_v30, 5  ;;  %v1187_v48 = vshrl.u32 %v6926_v32, %v4571_v34 }
  0xf3   :  { %6942 = vst [vmem:[#allocation30_spill] sm:$0xff] %v4575_v13  ;;  %6944 = vst [vmem:[#allocation31_spill] sm:$0xff] %v4595_v58  ;;  %v4602_v33 = vsub.s32 32, %v4559_v0  ;;  %v1268_v8 = vshrl.u32 %v1267_v45, 23  ;;  %v4612_v30 = vsel %vm987_vm15, %v983_v36, 1326507024  ;;  %v874_v58 = vshll.u32 %v6932_v39, %v4530_v3 }
  0xf4   :  { %v4590_v17 = vshll.u32 %v6943_v20, 8  ;;  %v1190_v20 = vshrl.u32 %v6930_v27, %v4571_v34  ;;  %6946 = vst [vmem:[#allocation33_spill] sm:$0xff] %v4612_v30  ;;  %v4617_v12 = vsub.s32 32, %v4575_v13  ;;  %v1580_v41 = vshrl.u32 %v1579_v7, 23 }
  0xf5   :  { %6945 = vst [vmem:[#allocation32_spill] sm:$0xff] %v4602_v33  ;;  %v877_v55 = vshll.u32 %v6926_v32, %v4530_v3  ;;  %v4621_v16 = vshrl.u32 %v1172_v28, 5  ;;  %v1186_v34 = vshll.u32 %v6932_v39, %v4536_v40  ;;  %v1189_v45 = vshll.u32 %v6926_v32, %v4536_v40 }
  0xf6   :  { %6947 = vst [vmem:[#allocation34_spill] sm:$0xff] %v4617_v12  ;;  %v4627_v36 = vor.u32 %v875_v19, %v874_v58  ;;  %vm883_vm0 = vcmp.lt.s32.totalorder %v4597_v25, 4  ;;  %v1083_v30 = vshrl.u32 %v6926_v32, %v4602_v33  ;;  %v1086_v7 = vshrl.u32 %v6930_v27, %v4602_v33 }
  0xf7   :  { %6948 = vst [vmem:[#allocation35_spill] sm:$0xff] %v4621_v16  ;;  %v879_v29 = vor.u32 %v878_v59, %v877_v55  ;;  %v4634_v3 = vor.u32 %v1187_v48, %v1186_v34  ;;  %v1191_v28 = vor.u32 %v1190_v20, %v1189_v45  ;;  %v3843_v63 = vadd.s32 4294967169, %v1268_v8 }
  0xf8   :  { %v1082_v50 = vshll.u32 %v6932_v39, %v4559_v0  ;;  %v1085_v19 = vshll.u32 %v6926_v32, %v4559_v0  ;;  %v1395_v58 = vshrl.u32 %v6926_v32, %v4617_v12  ;;  %v3855_v40 = vadd.s32 4294967169, %v1580_v41 }
  0xf9   :  { %6949 = vst [vmem:[#allocation36_spill] sm:$0xff] %v4634_v3  ;;  %vm6902_vm1 = vcmp.lt.s32.totalorder %v4621_v16, 4  ;;  %v4643_v47 = vshrl.u32 %v1068_v49, 5  ;;  %v4645_v33 = vshrl.u32 %v1380_v46, 5  ;;  %v1398_v55 = vshrl.u32 %v6930_v27, %v4617_v12 }
  0xfa   :  { %v4652_v8 = vsel %vm883_vm0, %v4627_v36, 920167782  ;;  %v4654_v34 = vor.u32 %v1083_v30, %v1082_v50  ;;  %v1087_v59 = vor.u32 %v1086_v7, %v1085_v19  ;;  %v1394_v41 = vshll.u32 %v6932_v39, %v4575_v13 }
  0xfb   :  { %6950 = vst [vmem:[#allocation37_spill] sm:$0xff] %v4643_v47  ;;  %6951 = vst [vmem:[#allocation38_spill] sm:$0xff] %v4645_v33  ;;  %v4660_v49 = vsel %vm883_vm0, %v879_v29, 1326507024  ;;  %v1397_v46 = vshll.u32 %v6926_v32, %v4575_v13  ;;  %v1274_v48 = vadd.s32 1, %v3843_v63  ;;  %v1586_v29 = vadd.s32 1, %v3855_v40 }
  0xfc   :  { %6952 = vst [vmem:[#allocation39_spill] sm:$0xff] %v4654_v34  ;;  %v6862_v20 = vmov 2475754826   ;;  %v4669_v50 = vsel %vm6902_vm1, %v4634_v3, 920167782  ;;  %v4675_v7 = vor.u32 %v1395_v58, %v1394_v41  ;;  %vm6903_vm2 = vcmp.lt.s32.totalorder %v4643_v47, 4 }
  0xfd   :  { %v346_v45 = vshrl.u32 %v6862_v20, %v4391_v52  ;;  %6953 = vst [vmem:[#allocation40_spill] sm:$0xff] %v4669_v50  ;;  %v4673_v30 = vsel %vm6902_vm1, %v1191_v28, 1326507024  ;;  %v1399_v19 = vor.u32 %v1398_v55, %v1397_v46  ;;  %v1475_v63 = vand.u32 2139095040, %v4498_v56 }
  0xfe   :  { %6954 = vst [vmem:[#allocation41_spill] sm:$0xff] %v4673_v30  ;;  %6955 = vst [vmem:[#allocation42_spill] sm:$0xff] %v4675_v7  ;;  %v6866_v13 = vmov 683565275   ;;  %v4684_v12 = vsel %vm6903_vm2, %v4654_v34, 920167782 }
  0xff   :  { %v345_v20 = vshll.u32 %v6866_v13, %v4375_v43  ;;  %6956 = vst [vmem:[#allocation43_spill] sm:$0xff] %v4684_v12  ;;  %v4688_v28 = vsel %vm6903_vm2, %v1087_v59, 1326507024  ;;  %vm6896_vm3 = vcmp.lt.s32.totalorder %v4645_v33, 4  ;;  %v1787_v40 = vand.u32 2139095040, %v4501_v23 }
 0x100   :  { %6957 = vst [vmem:[#allocation44_spill] sm:$0xff] %v4688_v28  ;;  %vm1275_vm5 = vcmp.gt.s32.totalorder %v1274_v48, 0  ;;  %v6958_v55 = vmov 2475754826   ;;  %v6877_v46 = vmov 2131351028   ;;  %v352_v23 = vshrl.u32 %v6932_v39, %v4391_v52 }
 0x101   :  { %v347_v58 = vor.u32 %v346_v45, %v345_v20  ;;  %v348_v41 = vshll.u32 %v6958_v55, %v4375_v43  ;;  %v349_v13 = vshrl.u32 %v6877_v46, %v4391_v52  ;;  %v4699_v56 = vsel %vm6896_vm3, %v4675_v7, 920167782 }
 0x102   :  { %6959 = vst [vmem:[#allocation45_spill] sm:$0xff] %v4699_v56  ;;  %vm1587_vm6 = vcmp.gt.s32.totalorder %v1586_v29, 0  ;;  %v351_v59 = vshll.u32 %v6877_v46, %v4375_v43  ;;  %v4707_v20 = vsel %vm6896_vm3, %v1399_v19, 1326507024  ;;  %v1476_v45 = vshrl.u32 %v1475_v63, 23 }
 0x103   :  { %6960 = vst [vmem:[#allocation46_spill] sm:$0xff] %v4707_v20  ;;  %v6961_v3 = vmov 683565275   ;;  %v350_v50 = vor.u32 %v349_v13, %v348_v41  ;;  %v1276_v16 = vsel %vm1275_vm5, %v1274_v48, 0  ;;  %v1788_v34 = vshrl.u32 %v1787_v40, 23 }
 0x104   :  { %v344_v30 = vshrl.u32 %v6961_v3, %v4391_v52  ;;  %v353_v7 = vor.u32 %v352_v23, %v351_v59  ;;  %vm360_vm9 = vcmp.lt.s32.totalorder %v4404_v1, 1  ;;  %v1588_v56 = vsel %vm1587_vm6, %v1586_v29, 0 }
 0x105   :  { %v1683_v43 = vand.u32 2139095040, %v4512_v38  ;;  %v1891_v46 = vand.u32 2139095040, %v4515_v24  ;;  %vm361_vm10 = vcmp.lt.s32.totalorder %v4404_v1, 2  ;;  %vm362_vm12 = vcmp.lt.s32.totalorder %v4404_v1, 3 }
 0x106   :  { %v364_v28 = vsel %vm360_vm9, %v344_v30, %v347_v58  ;;  %v365_v19 = vsel %vm363_vm4, %v353_v7, 2102212464  ;;  %v368_v52 = vsel %vm360_vm9, %v347_v58, %v350_v50  ;;  %v370_v48 = vsel %vm362_vm12, %v353_v7, %v4451_v62 }
 0x107   :  { %v366_v13 = vsel %vm362_vm12, %v350_v50, %v365_v19  ;;  %v372_v23 = vsel %vm360_vm9, %v350_v50, %v353_v7  ;;  %v374_v29 = vsel %vm362_vm12, %v4432_v60, %v4457_v15  ;;  %v4721_v63 = vshrl.u32 %v1276_v16, 5 }
 0x108   :  { %v367_v40 = vsel %vm361_vm10, %v364_v28, %v366_v13  ;;  %v371_v41 = vsel %vm361_vm10, %v368_v52, %v370_v48  ;;  %v375_v30 = vsel %vm361_vm10, %v372_v23, %v374_v29  ;;  %v4732_v58 = vand.u32 31, %v1276_v16 }
 0x109   :  { %v4724_v59 = vmul.u32.u64.low %v4590_v17, %v375_v30  ;;  %v4725_v24 = vmul.u32.u64.high %v4590_v17, %v375_v30, %v4724_v59  ;;  %v4728_v1 = vmul.u32.u64.low %v4590_v17, %v371_v41  ;;  %v4729_v38 = vmul.u32.u64.high %v4590_v17, %v371_v41, %v4728_v1 }
 0x10a   :  { %6962 = vst [vmem:[#allocation47_spill] sm:$0xff] %v4732_v58  ;;  %v4734_v62 = vshrl.u32 %v1588_v56, 5  ;;  %v4736_v50 = vand.u32 31, %v1588_v56  ;;  %v4738_v60 = vadd.s32 4294967169, %v1476_v45  ;;  %v4740_v15 = vadd.s32 4294967169, %v1788_v34 }
 0x10b   :  { %v449_v7 = vshll.u32 %v6961_v3, %v4377_v10  ;;  %v450_v28 = vshrl.u32 %v6958_v55, %v4394_v22  ;;  %v6964_v19 = vmov 2131351028   ;;  %v383_v16 = vmul.u32 %v4590_v17, %v367_v40 }
 0x10c   :  { %6963 = vst [vmem:[#allocation48_spill] sm:$0xff] %v4736_v50  ;;  %v453_v52 = vshrl.u32 %v6964_v19, %v4394_v22  ;;  %v452_v13 = vshll.u32 %v6958_v55, %v4377_v10  ;;  %v455_v56 = vshll.u32 %v6964_v19, %v4377_v10  ;;  %v456_v34 = vshrl.u32 %v6932_v39, %v4394_v22 }
 0x10d   :  { %vm385_vm4 = vc.u32 %v4725_v24, %v4728_v1  ;;  %v386_v45 = vadd.s32 1, %v4729_v38  ;;  %v440_v48 = vor.u32 8388608, %v4399_v26  ;;  %v451_v23 = vor.u32 %v450_v28, %v449_v7 }
 0x10e   :  { %v448_v17 = vshrl.u32 %v6961_v3, %v4394_v22  ;;  %v454_v29 = vor.u32 %v453_v52, %v452_v13  ;;  %v457_v40 = vor.u32 %v456_v34, %v455_v56  ;;  %vm466_vm13 = vcmp.lt.s32.totalorder %v4408_v6, 3 }
 0x10f   :  { %v387_v10 = vsel %vm385_vm4, %v386_v45, %v4729_v38  ;;  %vm464_vm5 = vcmp.lt.s32.totalorder %v4408_v6, 1  ;;  %vm465_vm6 = vcmp.lt.s32.totalorder %v4408_v6, 2  ;;  %v478_v41 = vsel %vm466_vm13, %v4438_v2, %v4473_v14 }
 0x110   :  { %v388_v30 = vadd.s32 %v387_v10, %v383_v16  ;;  %v469_v26 = vsel %vm467_vm7, %v457_v40, 2102212464  ;;  %v472_v59 = vsel %vm464_vm5, %v451_v23, %v454_v29  ;;  %v474_v22 = vsel %vm466_vm13, %v457_v40, %v4466_v9 }
 0x111   :  { %v1684_v7 = vshrl.u32 %v1683_v43, 23  ;;  %v475_v28 = vsel %vm465_vm6, %v472_v59, %v474_v22  ;;  %v476_v52 = vsel %vm464_vm5, %v454_v29, %v457_v40  ;;  %v480_v38 = vshll.u32 %v440_v48, 8 }
 0x112   :  { %v389_v13 = vadd.s32 536870912, %v388_v30  ;;  %v468_v56 = vsel %vm464_vm5, %v448_v17, %v451_v23  ;;  %v470_v34 = vsel %vm466_vm13, %v454_v29, %v469_v26  ;;  %v479_v45 = vsel %vm465_vm6, %v476_v52, %v478_v41 }
 0x113   :  { %v4774_v2 = vmul.u32.u64.low %v480_v38, %v479_v45  ;;  %v4775_v14 = vmul.u32.u64.high %v480_v38, %v479_v45, %v4774_v2  ;;  %v4777_v16 = vmul.u32.u64.low %v480_v38, %v475_v28  ;;  %v4778_v10 = vmul.u32.u64.high %v480_v38, %v475_v28, %v4777_v16 }
 0x114   :  { %v4782_v9 = vsub.s32 32, %v4732_v58  ;;  %v1892_v43 = vshrl.u32 %v1891_v46, 23  ;;  %v4784_v59 = vshrl.u32 %v389_v13, 30  ;;  %v6889_v48 = vand.u32 2147483647, %v4354_v4 }
 0x115   :  { %v1290_v23 = vshll.u32 %v6932_v39, %v4732_v58  ;;  %v4791_v17 = vshll.u32 %v6926_v32, %v4732_v58  ;;  %v4794_v29 = vsub.s32 32, %v4736_v50  ;;  %v471_v40 = vsel %vm465_vm6, %v468_v56, %v470_v34 }
 0x116   :  { %6965 = vst [vmem:[#allocation49_spill] sm:$0xff] %v4782_v9  ;;  %v4800_v46 = vshll.u32 %v6932_v39, %v4736_v50  ;;  %v4804_v41 = vshll.u32 %v6926_v32, %v4736_v50  ;;  %v391_v26 = vshll.u32 %v4784_v59, 30  ;;  %v554_v22 = vshrl.u32 %v6958_v55, %v4441_v44 }
 0x117   :  { %6966 = vst [vmem:[#allocation50_spill] sm:$0xff] %v4794_v29  ;;  %vm489_vm7 = vc.u32 %v4775_v14, %v4777_v16  ;;  %v490_v28 = vadd.s32 1, %v4778_v10  ;;  %v557_v6 = vshrl.u32 %v6964_v19, %v4441_v44  ;;  %v560_v52 = vshrl.u32 %v6932_v39, %v4441_v44 }
 0x118   :  { %v1291_v13 = vshrl.u32 %v6926_v32, %v4782_v9  ;;  %v4818_v56 = vsub.s32 %v388_v30, %v391_v26  ;;  %v487_v34 = vmul.u32 %v480_v38, %v471_v40  ;;  %v543_v45 = vand.u32 8388607, %v6889_v48 }
 0x119   :  { %v491_v2 = vsel %vm489_vm7, %v490_v28, %v4778_v10  ;;  %v553_v50 = vshll.u32 %v6961_v3, %v4417_v21  ;;  %v556_v20 = vshll.u32 %v6958_v55, %v4417_v21  ;;  %v559_v33 = vshll.u32 %v6964_v19, %v4417_v21 }
 0x11a   :  { %v4831_v58 = vshrl.u32 %v6930_v27, %v4782_v9  ;;  %v1482_v30 = vadd.s32 1, %v4738_v60  ;;  %v394_v38 = vsub.s32 0, %v4818_v56  ;;  %v492_v40 = vadd.s32 %v491_v2, %v487_v34 }
 0x11b   :  { %v1794_v10 = vadd.s32 1, %v4740_v15  ;;  %v555_v26 = vor.u32 %v554_v22, %v553_v50  ;;  %v558_v28 = vor.u32 %v557_v6, %v556_v20  ;;  %v561_v48 = vor.u32 %v560_v52, %v559_v33 }
 0x11c   :  { %v1603_v12 = vshrl.u32 %v6926_v32, %v4794_v29  ;;  %v4840_v21 = vshrl.u32 %v6930_v27, %v4794_v29  ;;  %v3808_v9 = vmin.u32 %v394_v38, %v4818_v56  ;;  %v544_v47 = vor.u32 8388608, %v543_v45 }
 0x11d   :  { %v4843_v0 = vor.u32 %v1291_v13, %v1290_v23  ;;  %v4845_v60 = vadd.s32 4294967169, %v1684_v7  ;;  %v4847_v34 = vadd.s32 4294967169, %v1892_v43  ;;  %v493_v15 = vadd.s32 536870912, %v492_v40 }
 0x11e   :  { %v1295_v33 = vor.u32 %v4831_v58, %v4791_v17  ;;  %v396_v20 = vclz %v3808_v9  ;;  %vm568_vm9 = vcmp.lt.s32.totalorder %v4446_v57, 1  ;;  %vm569_vm10 = vcmp.lt.s32.totalorder %v4446_v57, 2 }
 0x11f   :  { %6967 = vst [vmem:[#allocation51_spill] sm:$0xff] %v4843_v0  ;;  %v4853_v50 = vshrl.u32 %v493_v15, 30  ;;  %vm570_vm12 = vcmp.lt.s32.totalorder %v4446_v57, 3  ;;  %v576_v23 = vsel %vm568_vm9, %v555_v26, %v558_v28  ;;  %v580_v7 = vsel %vm568_vm9, %v558_v28, %v561_v48 }
 0x120   :  { %vm6901_vm4 = vcmp.lt.s32.totalorder %v4721_v63, 4  ;;  %vm330_vm13 = vcmp.lt.s32.totalorder %v4340_v54, 0  ;;  %v3809_v58 = vadd.s32 4294967294, %v396_v20  ;;  %v578_v9 = vsel %vm570_vm12, %v561_v48, %v4520_v61 }
 0x121   :  { %v582_v43 = vsel %vm570_vm12, %v4484_v42, %v4540_v51  ;;  %v584_v17 = vshll.u32 %v544_v47, 8  ;;  %vm1483_vm5 = vcmp.gt.s32.totalorder %v1482_v30, 0  ;;  %vm1795_vm6 = vcmp.gt.s32.totalorder %v1794_v10, 0 }
 0x122   :  { %v495_v22 = vshll.u32 %v4853_v50, 30  ;;  %v583_v6 = vsel %vm569_vm10, %v580_v7, %v582_v43  ;;  %vm3810_vm7 = vcmp.lt.s32.totalorder %v3809_v58, 0  ;;  %v573_v52 = vsel %vm571_vm8, %v561_v48, 2102212464 }
 0x123   :  { %v4874_v13 = vmul.u32.u64.low %v584_v17, %v583_v6  ;;  %v4875_v45 = vmul.u32.u64.high %v584_v17, %v583_v6, %v4874_v13  ;;  %v6968_v61 = vand.u32 2147483647, %v4340_v54  ;;  %v399_v47 = vsel %vm3810_vm7, 0, %v3809_v58 }
 0x124   :  { %v4883_v42 = vsub.s32 %v492_v40, %v495_v22  ;;  %v552_v51 = vshrl.u32 %v6961_v3, %v4441_v44  ;;  %v579_v38 = vsel %vm569_vm10, %v576_v23, %v578_v9  ;;  %v384_v48 = vadd.s32 %v4728_v1, %v4725_v24 }
 0x125   :  { %vm4879_vm3 = vcmp.le.f32.partialorder %v6968_v61, 0.7853982  ;;  %v400_v15 = vsub.s32 32, %v399_v47  ;;  %v404_v20 = vsub.s32 4294967266, %v399_v47  ;;  %v414_v7 = vsub.s32 4, %v4784_v59 }
 0x126   :  { %v401_v43 = vshll.u32 %v4818_v56, %v399_v47  ;;  %v498_v6 = vsub.s32 0, %v4883_v42  ;;  %v572_v40 = vsel %vm568_vm9, %v552_v51, %v555_v26  ;;  %v574_v44 = vsel %vm570_vm12, %v558_v28, %v573_v52 }
 0x127   :  { %v402_v58 = vshrl.u32 %v384_v48, %v400_v15  ;;  %v405_v22 = vadd.s32 127, %v404_v20  ;;  %v4898_v23 = vmul.u32.u64.low %v584_v17, %v579_v38  ;;  %v4899_v9 = vmul.u32.u64.high %v584_v17, %v579_v38, %v4898_v23 }
 0x128   :  { %v4903_v24 = vor.u32 %v1603_v12, %v4800_v46  ;;  %v4908_v56 = vsel %vm1483_vm5, %v1482_v30, 0  ;;  %v3812_v26 = vmin.u32 %v498_v6, %v4883_v42  ;;  %v4912_v13 = vsel %vm1795_vm6, %v1794_v10, 0 }
 0x129   :  { %v403_v28 = vor.u32 %v402_v58, %v401_v43  ;;  %v406_v52 = vshll.u32 %v405_v22, 23  ;;  %v575_v61 = vsel %vm569_vm10, %v572_v40, %v574_v44  ;;  %v4919_v12 = vsel %vm6901_vm4, %v4843_v0, 920167782 }
 0x12a   :  { %6971 = vst [vmem:[#allocation52_spill] sm:$0xff] %v4919_v12  ;;  %v415_v46 = vsel %vm330_vm13, %v414_v7, %v4784_v59  ;;  %v500_v30 = vclz %v3812_v26  ;;  %v6897_v47 = vand.u32 2147483647, %v4362_v11  ;;  %v4927_v10 = vsel %vm6901_vm4, %v1295_v33, 1326507024 }
 0x12b   :  { %v407_v51 = vor.u32 4788187, %v406_v52  ;;  %vm593_vm8 = vc.u32 %v4875_v45, %v4898_v23  ;;  %v594_v57 = vadd.s32 1, %v4899_v9  ;;  %v4933_v38 = vshrl.u32 %v4908_v56, 5 }
 0x12c   :  { %vm434_vm9 = vcmp.lt.s32.totalorder %v4342_v53, 0  ;;  %v488_v59 = vadd.s32 %v4777_v16, %v4775_v14  ;;  %v3813_v48 = vadd.s32 4294967294, %v500_v30  ;;  %v591_v15 = vmul.u32 %v584_v17, %v575_v61 }
 0x12d   :  { %v408_v20 = vand.u32 2147483647, %v407_v51  ;;  %v410_v7 = vcvt.s32.f32 %v403_v28  ;;  %v417_v33 = vsel %vm4879_vm3, 0, %v415_v46  ;;  %v595_v43 = vsel %vm593_vm8, %v594_v57, %v4899_v9 }
 0x12e   :  { %vm3814_vm10 = vcmp.lt.s32.totalorder %v3813_v48, 0  ;;  %v518_v6 = vsub.s32 4, %v4853_v50  ;;  %v596_v40 = vadd.s32 %v595_v43, %v591_v15  ;;  %v647_v44 = vand.u32 8388607, %v6897_v47 }
 0x12f   :  { %v411_v58 = vmul.f32 %v410_v7, %v408_v20  ;;  %v503_v22 = vsel %vm3814_vm10, 0, %v3813_v48  ;;  %v658_v14 = vshrl.u32 %v6958_v55, %v4495_v5  ;;  %v661_v16 = vshrl.u32 %v6964_v19, %v4495_v5 }
 0x130   :  { %v6972_v17 = vand.u32 2147483647, %v4342_v53  ;;  %v504_v9 = vsub.s32 32, %v503_v22  ;;  %v508_v28 = vsub.s32 4294967266, %v503_v22  ;;  %v597_v52 = vadd.s32 536870912, %v596_v40 }
 0x131   :  { %v657_v61 = vshll.u32 %v6961_v3, %v4477_v37  ;;  %v412_v46 = vxor.u32 2147483648, %v411_v58  ;;  %v660_v30 = vshll.u32 %v6958_v55, %v4477_v37  ;;  %v663_v51 = vshll.u32 %v6964_v19, %v4477_v37 }
 0x132   :  { %vm4950_vm12 = vcmp.le.f32.partialorder %v6972_v17, 0.7853982  ;;  %v664_v57 = vshrl.u32 %v6932_v39, %v4495_v5  ;;  %v505_v48 = vshll.u32 %v4883_v42, %v503_v22  ;;  %v506_v15 = vshrl.u32 %v488_v59, %v504_v9 }
 0x133   :  { %v509_v20 = vadd.s32 127, %v508_v28  ;;  %v4963_v7 = vshrl.u32 %v597_v52, 30  ;;  %v413_v43 = vsel %vm330_vm13, %v412_v46, %v411_v58  ;;  %v659_v17 = vor.u32 %v658_v14, %v657_v61 }
 0x134   :  { %v662_v1 = vor.u32 %v661_v16, %v660_v30  ;;  %v665_v47 = vor.u32 %v664_v57, %v663_v51  ;;  %v416_v29 = vsel %vm4879_vm3, %v4340_v54, %v413_v43  ;;  %v507_v37 = vor.u32 %v506_v15, %v505_v48 }
 0x135   :  { %v510_v12 = vshll.u32 %v509_v20, 23  ;;  %v599_v0 = vshll.u32 %v4963_v7, 30  ;;  %4016 = vcosq.f32 %v416_v29  ;;  %v421_v42 = vadd.s32 3, %v417_v33 }
 0x136   :  { %v519_v59 = vsel %vm434_vm9, %v518_v6, %v4853_v50  ;;  %v648_v22 = vor.u32 8388608, %v647_v44  ;;  %4018 = vsinq.f32 %v416_v29  ;;  %vm672_vm13 = vcmp.lt.s32.totalorder %v4542_v35, 1 }
 0x137   :  { %v511_v58 = vor.u32 4788187, %v510_v12  ;;  %v4974_v14 = vsub.s32 %v596_v40, %v599_v0  ;;  %v4977_v16 = vand.u32 3, %v417_v33  ;;  %vm674_vm3 = vcmp.lt.s32.totalorder %v4542_v35, 3  ;;  %v6975_v33 = vld [vmem:[#allocation22_spill] sm:$0xff] }
 0x138   :  { %v680_v2 = vsel %vm672_vm13, %v659_v17, %v662_v1  ;;  %v684_v9 = vsel %vm672_vm13, %v662_v1, %v665_v47  ;;  %v514_v52 = vcvt.s32.f32 %v507_v37  ;;  %v682_v0 = vsel %vm674_vm3, %v665_v47, %v4581_v18 }
 0x139   :  { %v512_v28 = vand.u32 2147483647, %v511_v58  ;;  %v602_v50 = vsub.s32 0, %v4974_v14  ;;  %v521_v29 = vsel %vm4950_vm12, 0, %v519_v59  ;;  %vm673_vm5 = vcmp.lt.s32.totalorder %v4542_v35, 2 }
 0x13a   :  { %v677_v12 = vsel %vm675_vm14, %v665_v47, 2102212464  ;;  %v686_v6 = vsel %vm674_vm3, %v6975_v33, %v4585_v31  ;;  %v688_v18 = vshll.u32 %v648_v22, 8  ;;  %v5001_v46 = vand.u32 31, %v4908_v56 }
 0x13b   :  { %v515_v40 = vmul.f32 %v514_v52, %v512_v28  ;;  %v3816_v44 = vmin.u32 %v602_v50, %v4974_v14  ;;  %v687_v61 = vsel %vm673_vm5, %v684_v9, %v686_v6  ;;  %v422_v30 = vand.u32 3, %v421_v42 }
 0x13c   :  { %v656_v51 = vshrl.u32 %v6961_v3, %v4495_v5  ;;  %v683_v47 = vsel %vm673_vm5, %v680_v2, %v682_v0  ;;  %v5007_v31 = vmul.u32.u64.low %v688_v18, %v687_v61  ;;  %v5008_v15 = vmul.u32.u64.high %v688_v18, %v687_v61, %v5007_v31 }
 0x13d   :  { %v516_v57 = vxor.u32 2147483648, %v515_v40  ;;  %v604_v48 = vclz %v3816_v44  ;;  %vm2104_vm14 = vcmp.eq.s32.totalorder %v4977_v16, 0  ;;  %vm2107_vm6 = vcmp.eq.s32.totalorder %v4977_v16, 2 }
 0x13e   :  { %v525_v20 = vadd.s32 3, %v521_v29  ;;  %v676_v56 = vsel %vm672_vm13, %v656_v51, %v659_v17  ;;  %v678_v43 = vsel %vm674_vm3, %v662_v1, %v677_v12  ;;  %vm1992_vm7 = vcmask 195584  }
 0x13f   :  { %vm2103_vm8 = vcmp.lt.s32.totalorder %v4977_v16, 2  ;;  %v517_v5 = vsel %vm434_vm9, %v516_v57, %v515_v40  ;;  %v3817_v37 = vadd.s32 4294967294, %v604_v48  ;;  %vm420_vm10 = vweird.f32 %v4340_v54 }
 0x140   :  { %v5019_v42 = vmul.u32.u64.low %v688_v18, %v683_v47  ;;  %v5020_v59 = vmul.u32.u64.high %v688_v18, %v683_v47, %v5019_v42  ;;  %vm423_vm4 = vcmp.lt.s32.totalorder %v422_v30, 2  ;;  %vm424_vm1 = vcmp.eq.s32.totalorder %v422_v30, 0  ;;  %v6976_v47 = vld [vmem:[#allocation2_spill] sm:$0xff] }
 0x141   :  { %vm427_vm2 = vcmp.eq.s32.totalorder %v422_v30, 2  ;;  %v520_v1 = vsel %vm4950_vm12, %v4342_v53, %v517_v5  ;;  %v5027_v17 = vand.u32 3, %v521_v29  ;;  %vm538_vm13 = vcmp.lt.s32.totalorder %v4354_v4, 0 }
 0x142   :  { %4020 = vcosq.f32 %v520_v1  ;;  %vm3818_vm9 = vcmp.lt.s32.totalorder %v3817_v37, 0  ;;  %v679_v22 = vsel %vm673_vm5, %v676_v56, %v678_v43  ;;  %v5032_v58 = vand.u32 3, %v525_v20  ;;  %v4017_v9 = vpop.eup %4016 }
 0x143   :  { %4022 = vsinq.f32 %v520_v1  ;;  %v607_v2 = vsel %vm3818_vm9, 0, %v3817_v37  ;;  %vm697_vm3 = vc.u32 %v5008_v15, %v5019_v42  ;;  %v592_v26 = vadd.s32 %v4898_v23, %v4875_v45  ;;  %v4019_v0 = vpop.eup %4018 }
 0x144   :  { %v608_v28 = vsub.s32 32, %v607_v2  ;;  %v612_v52 = vsub.s32 4294967266, %v607_v2  ;;  %v698_v50 = vadd.s32 1, %v5020_v59  ;;  %v428_v29 = vxor.u32 2147483648, %v4017_v9 }
 0x145   :  { %v609_v35 = vshll.u32 %v4974_v14, %v607_v2  ;;  %v622_v12 = vsub.s32 4, %v4963_v7  ;;  %v695_v33 = vmul.u32 %v688_v18, %v679_v22  ;;  %v425_v6 = vxor.u32 2147483648, %v4019_v0 }
 0x146   :  { %v610_v40 = vshrl.u32 %v592_v26, %v608_v28  ;;  %v613_v44 = vadd.s32 127, %v612_v52  ;;  %v699_v61 = vsel %vm697_vm3, %v698_v50, %v5020_v59  ;;  %v2109_v51 = vsel %vm2107_vm6, %v428_v29, %v4019_v0  ;;  %v6980_v26 = vld [vmem:[#allocation12_spill] sm:$0xff] }
 0x147   :  { %v429_v45 = vsel %vm427_vm2, %v428_v29, %v4019_v0  ;;  %v700_v23 = vadd.s32 %v699_v61, %v695_v33  ;;  %v744_v57 = vand.u32 2147483647, %v6976_v47  ;;  %v2106_v48 = vsel %vm2104_vm14, %v4017_v9, %v425_v6 }
 0x148   :  { %v426_v14 = vsel %vm424_vm1, %v4017_v9, %v425_v6  ;;  %v611_v31 = vor.u32 %v610_v40, %v609_v35  ;;  %v614_v18 = vshll.u32 %v613_v44, 23  ;;  %v2110_v20 = vsel %vm2103_vm8, %v2106_v48, %v2109_v51  ;;  %v6981_v35 = vld [vmem:[#allocation10_spill] sm:$0xff] }
 0x149   :  { %v430_v56 = vsel %vm423_vm4, %v426_v14, %v429_v45  ;;  %v6977_v43 = vand.u32 2147483647, %v4354_v4  ;;  %v701_v37 = vadd.s32 536870912, %v700_v23  ;;  %v2111_v59 = vsel %vm420_vm10, nan, %v2110_v20 }
 0x14a   :  { %v431_v1 = vsel %vm420_vm10, nan, %v430_v56  ;;  %vm2207_vm1 = vcmp.eq.s32.totalorder %v5027_v17, 0  ;;  %vm2210_vm2 = vcmp.eq.s32.totalorder %v5027_v17, 2  ;;  %v615_v16 = vor.u32 4788187, %v614_v18  ;;  %3673 = vrot.lane.b32.xlu0 %v2111_v59, %s4092_s15 }
 0x14b   :  { %vm5054_vm12 = vcmp.le.f32.partialorder %v6977_v43, 0.7853982  ;;  %1993 = vst.msk [vmem:[%s6810_s2] sm:$0xff] %vm1992_vm7, %v431_v1  ;;  %vm527_vm4 = vcmp.lt.s32.totalorder %v5032_v58, 2  ;;  %vm2206_vm5 = vcmp.lt.s32.totalorder %v5027_v17, 2  ;;  %v623_v54 = vsel %vm538_vm13, %v622_v12, %v4963_v7 }
 0x14c   :  { %v5074_v30 = vshrl.u32 %v701_v37, 30  ;;  %v751_v22 = vand.u32 8388607, %v744_v57  ;;  %vm524_vm14 = vweird.f32 %v4342_v53  ;;  %v616_v2 = vand.u32 2147483647, %v615_v16  ;;  %v6982_v37 = vld [vmem:[#allocation11_spill] sm:$0xff] }
 0x14d   :  { %v618_v9 = vcvt.s32.f32 %v611_v31  ;;  %v762_v28 = vshrl.u32 %v6958_v55, %v6980_v26  ;;  %v768_v52 = vshrl.u32 %v6932_v39, %v6980_v26  ;;  %vm528_vm6 = vcmp.eq.s32.totalorder %v5032_v58, 0 }
 0x14e   :  { %vm531_vm8 = vcmp.eq.s32.totalorder %v5032_v58, 2  ;;  %v703_v7 = vshll.u32 %v5074_v30, 30  ;;  %v765_v50 = vshrl.u32 %v6964_v19, %v6980_v26  ;;  %v625_v29 = vsel %vm5054_vm12, 0, %v623_v54 }
 0x14f   :  { %v619_v0 = vmul.f32 %v618_v9, %v616_v2  ;;  %v761_v12 = vshll.u32 %v6961_v3, %v6981_v35  ;;  %v767_v33 = vshll.u32 %v6964_v19, %v6981_v35  ;;  %v4021_v6 = vpop.eup %4020  ;;  %v752_v44 = vor.u32 8388608, %v751_v22 }
 0x150   :  { %v5094_v40 = vsub.s32 %v700_v23, %v703_v7  ;;  %v760_v61 = vshrl.u32 %v6961_v3, %v6980_v26  ;;  %v764_v51 = vshll.u32 %v6958_v55, %v6981_v35  ;;  %v4023_v45 = vpop.eup %4022  ;;  %v532_v48 = vxor.u32 2147483648, %v4021_v6  ;;  %v6986_v35 = vld [vmem:[#allocation28_spill] sm:$0xff] }
 0x151   :  { %v620_v14 = vxor.u32 2147483648, %v619_v0  ;;  %v763_v31 = vor.u32 %v762_v28, %v761_v12  ;;  %v769_v18 = vor.u32 %v768_v52, %v767_v33  ;;  %v529_v20 = vxor.u32 2147483648, %v4023_v45  ;;  %v6987_v12 = vld [vmem:[#allocation19_spill] sm:$0xff] }
 0x152   :  { %v706_v56 = vsub.s32 0, %v5094_v40  ;;  %v766_v43 = vor.u32 %v765_v50, %v764_v51  ;;  %vm776_vm10 = vcmp.lt.s32.totalorder %v6982_v37, 1  ;;  %v2212_v23 = vsel %vm2210_vm2, %v532_v48, %v4023_v45 }
 0x153   :  { %v533_v59 = vsel %vm531_vm8, %v532_v48, %v4023_v45  ;;  %v621_v1 = vsel %vm538_vm13, %v620_v14, %v619_v0  ;;  %vm642_vm9 = vcmp.lt.s32.totalorder %v4362_v11, 0  ;;  %vm778_vm3 = vcmp.lt.s32.totalorder %v6982_v37, 3  ;;  %v6988_v48 = vld [vmem:[#allocation27_spill] sm:$0xff] }
 0x154   :  { %v2209_v16 = vsel %vm2207_vm1, %v4021_v6, %v529_v20  ;;  %v530_v54 = vsel %vm528_vm6, %v4021_v6, %v529_v20  ;;  %v624_v22 = vsel %vm5054_vm12, %v4354_v4, %v621_v1  ;;  %v3820_v2 = vmin.u32 %v706_v56, %v5094_v40  ;;  %v6989_v1 = vld [vmem:[#allocation4_spill] sm:$0xff] }
 0x155   :  { %v2213_v9 = vsel %vm2206_vm5, %v2209_v16, %v2212_v23  ;;  %v534_v26 = vsel %vm527_vm4, %v530_v54, %v533_v59  ;;  %4024 = vcosq.f32 %v624_v22  ;;  %v781_v28 = vsel %vm779_vm11, %v769_v18, 2102212464 }
 0x156   :  { %v2214_v52 = vsel %vm524_vm14, nan, %v2213_v9  ;;  %v535_v7 = vsel %vm524_vm14, nan, %v534_v26  ;;  %4026 = vsinq.f32 %v624_v22  ;;  %v6983_v5 = vand.u32 2147483647, %v4362_v11 }
 0x157   :  { %v708_v17 = vclz %v3820_v2  ;;  %3675 = vrot.lane.b32.xlu1 %v2214_v52, %s4092_s15  ;;  %1994 = vst.msk [vmem:[%s6810_s2 + $0x8] sm:$0xff] %vm1992_vm7, %v535_v7  ;;  %v629_v58 = vadd.s32 3, %v625_v29  ;;  %v5139_v0 = vand.u32 3, %v625_v29  ;;  %v784_v53 = vsel %vm776_vm10, %v763_v31, %v766_v43 }
 0x158   :  { %vm5130_vm13 = vcmp.le.f32.partialorder %v6983_v5, 0.7853982  ;;  %v790_v33 = vsel %vm778_vm3, %v6987_v12, %v6986_v35  ;;  %v726_v51 = vsub.s32 4, %v5074_v30  ;;  %vm777_vm11 = vcmp.lt.s32.totalorder %v6982_v37, 2  ;;  %v6990_v5 = vld [vmem:[#allocation25_spill] sm:$0xff] }
 0x159   :  { %v3821_v6 = vadd.s32 4294967294, %v708_v17  ;;  %v780_v45 = vsel %vm776_vm10, %v760_v61, %v763_v31  ;;  %v782_v29 = vsel %vm778_vm3, %v766_v43, %v781_v28  ;;  %v786_v14 = vsel %vm778_vm3, %v769_v18, %v6988_v48 }
 0x15a   :  { %v788_v20 = vsel %vm776_vm10, %v766_v43, %v769_v18  ;;  %v792_v56 = vshll.u32 %v752_v44, 8  ;;  %v787_v23 = vsel %vm777_vm11, %v784_v53, %v786_v14  ;;  %v848_v61 = vand.u32 2147483647, %v6989_v1 }
 0x15b   :  { %vm3822_vm12 = vcmp.lt.s32.totalorder %v3821_v6, 0  ;;  %v791_v59 = vsel %vm777_vm11, %v788_v20, %v790_v33  ;;  %v630_v31 = vand.u32 3, %v629_v58  ;;  %vm2313_vm1 = vcmp.eq.s32.totalorder %v5139_v0, 2  ;;  %v6991_v58 = vld [vmem:[#allocation20_spill] sm:$0xff] }
 0x15c   :  { %v711_v16 = vsel %vm3822_vm12, 0, %v3821_v6  ;;  %v5163_v54 = vmul.u32.u64.low %v792_v56, %v791_v59  ;;  %v5164_v22 = vmul.u32.u64.high %v792_v56, %v791_v59, %v5163_v54  ;;  %v696_v18 = vadd.s32 %v5019_v42, %v5008_v15 }
 0x15d   :  { %v712_v44 = vsub.s32 32, %v711_v16  ;;  %v716_v43 = vsub.s32 4294967266, %v711_v16  ;;  %v727_v2 = vsel %vm642_vm9, %v726_v51, %v5074_v30  ;;  %vm2310_vm2 = vcmp.eq.s32.totalorder %v5139_v0, 0 }
 0x15e   :  { %v713_v9 = vshll.u32 %v5094_v40, %v711_v16  ;;  %v783_v26 = vsel %vm777_vm11, %v780_v45, %v782_v29  ;;  %v5176_v28 = vmul.u32.u64.low %v792_v56, %v787_v23  ;;  %v5177_v52 = vmul.u32.u64.high %v792_v56, %v787_v23, %v5176_v28 }
 0x15f   :  { %vm2309_vm4 = vcmp.lt.s32.totalorder %v5139_v0, 2  ;;  %v714_v15 = vshrl.u32 %v696_v18, %v712_v44  ;;  %v717_v42 = vadd.s32 127, %v716_v43  ;;  %v855_v7 = vand.u32 8388607, %v848_v61 }
 0x160   :  { %v866_v30 = vshrl.u32 %v6958_v55, %v6990_v5  ;;  %vm628_vm5 = vweird.f32 %v4354_v4  ;;  %vm631_vm14 = vcmp.lt.s32.totalorder %v630_v31, 2  ;;  %vm632_vm6 = vcmp.eq.s32.totalorder %v630_v31, 0 }
 0x161   :  { %vm635_vm8 = vcmp.eq.s32.totalorder %v630_v31, 2  ;;  %v5188_v40 = vsel %vm5130_vm13, 0, %v727_v2  ;;  %v715_v37 = vor.u32 %v714_v15, %v713_v9  ;;  %v718_v17 = vshll.u32 %v717_v42, 23 }
 0x162   :  { %vm801_vm10 = vc.u32 %v5164_v22, %v5176_v28  ;;  %v865_v53 = vshll.u32 %v6961_v3, %v6991_v58  ;;  %vm6908_vm3 = vcmp.lt.s32.totalorder %v4734_v62, 4  ;;  %v799_v35 = vmul.u32 %v792_v56, %v783_v26  ;;  %v4025_v51 = vpop.eup %4024 }
 0x163   :  { %v802_v12 = vadd.s32 1, %v5177_v52  ;;  %v869_v33 = vshrl.u32 %v6964_v19, %v6990_v5  ;;  %v872_v6 = vshrl.u32 %v6932_v39, %v6990_v5  ;;  %v719_v45 = vor.u32 4788187, %v718_v17  ;;  %v4027_v20 = vpop.eup %4026 }
 0x164   :  { %v856_v29 = vor.u32 8388608, %v855_v7  ;;  %v867_v48 = vor.u32 %v866_v30, %v865_v53  ;;  %v868_v14 = vshll.u32 %v6958_v55, %v6991_v58  ;;  %v636_v23 = vxor.u32 2147483648, %v4025_v51 }
 0x165   :  { %v803_v59 = vsel %vm801_vm10, %v802_v12, %v5177_v52  ;;  %v871_v56 = vshll.u32 %v6964_v19, %v6991_v58  ;;  %vm880_vm11 = vcmp.lt.s32.totalorder %v4597_v25, 1  ;;  %v633_v16 = vxor.u32 2147483648, %v4027_v20 }
 0x166   :  { %v720_v54 = vand.u32 2147483647, %v719_v45  ;;  %v722_v18 = vcvt.s32.f32 %v715_v37  ;;  %v804_v44 = vadd.s32 %v803_v59, %v799_v35  ;;  %v637_v43 = vsel %vm635_vm8, %v636_v23, %v4027_v20 }
 0x167   :  { %v2315_v2 = vsel %vm2313_vm1, %v636_v23, %v4027_v20  ;;  %v870_v9 = vor.u32 %v869_v33, %v868_v14  ;;  %v873_v26 = vor.u32 %v872_v6, %v871_v56  ;;  %v634_v15 = vsel %vm632_vm6, %v4025_v51, %v633_v16 }
 0x168   :  { %v2312_v52 = vsel %vm2310_vm2, %v4025_v51, %v633_v16  ;;  %v723_v42 = vmul.f32 %v722_v18, %v720_v54  ;;  %v805_v7 = vadd.s32 536870912, %v804_v44  ;;  %v638_v30 = vsel %vm631_vm14, %v634_v15, %v637_v43 }
 0x169   :  { %v2316_v37 = vsel %vm2309_vm4, %v2312_v52, %v2315_v2  ;;  %vm881_vm12 = vcmp.lt.s32.totalorder %v4597_v25, 2  ;;  %vm882_vm8 = vcmp.lt.s32.totalorder %v4597_v25, 3  ;;  %v639_v17 = vsel %vm628_vm5, nan, %v638_v30 }
 0x16a   :  { %v2317_v58 = vsel %vm628_vm5, nan, %v2316_v37  ;;  %v724_v53 = vxor.u32 2147483648, %v723_v42  ;;  %v806_v35 = vshrl.u32 %v805_v7, 30  ;;  %1995 = vst.msk [vmem:[%s6810_s2 + $0x10] sm:$0xff] %vm1992_vm7, %v639_v17  ;;  %v888_v0 = vsel %vm880_vm11, %v867_v48, %v870_v9 }
 0x16b   :  { %3677 = vrot.lane.b32.xlu0 %v2317_v58, %s4092_s15  ;;  %v890_v31 = vsel %vm882_vm8, %v873_v26, %v4652_v8  ;;  %v892_v4 = vsel %vm880_vm11, %v870_v9, %v873_v26  ;;  %v894_v12 = vsel %vm882_vm8, %v4627_v36, %v4660_v49  ;;  %v5240_v33 = vsel %vm6908_vm3, %v4903_v24, 920167782 }
 0x16c   :  { %v725_v6 = vsel %vm642_vm9, %v724_v53, %v723_v42  ;;  %v807_v51 = vshll.u32 %v806_v35, 30  ;;  %v895_v8 = vsel %vm881_vm12, %v892_v4, %v894_v12  ;;  %v733_v14 = vadd.s32 3, %v5188_v40  ;;  %v6995_v12 = vld [vmem:[#allocation16_spill] sm:$0xff] }
 0x16d   :  { %v728_v45 = vsel %vm5130_vm13, %v4362_v11, %v725_v6  ;;  %v885_v36 = vsel %vm883_vm0, %v873_v26, 2102212464  ;;  %v896_v49 = vshll.u32 %v856_v29, 8  ;;  %v864_v23 = vshrl.u32 %v6961_v3, %v6990_v5 }
 0x16e   :  { %4028 = vcosq.f32 %v728_v45  ;;  %v5252_v20 = vsub.s32 %v804_v44, %v807_v51  ;;  %v891_v59 = vsel %vm881_vm12, %v888_v0, %v890_v31  ;;  %v5259_v56 = vand.u32 31, %v4912_v13  ;;  %v6993_v44 = vld [vmem:[#allocation3_spill] sm:$0xff] }
 0x16f   :  { %4030 = vsinq.f32 %v728_v45  ;;  %v5261_v50 = vmul.u32.u64.low %v896_v49, %v895_v8  ;;  %v5262_v16 = vmul.u32.u64.high %v896_v49, %v895_v8, %v5261_v50  ;;  %v884_v29 = vsel %vm880_vm11, %v864_v23, %v867_v48 }
 0x170   :  { %6992 = vst [vmem:[#allocation22_spill] sm:$0xff] %v5259_v56  ;;  %v810_v54 = vsub.s32 0, %v5252_v20  ;;  %v886_v18 = vsel %vm882_vm8, %v870_v9, %v885_v36  ;;  %v952_v5 = vand.u32 2147483647, %v6993_v44  ;;  %v6994_v43 = vor.u32 %v4840_v21, %v4804_v41  ;;  %v6996_v36 = vld [vmem:[#allocation13_spill] sm:$0xff] }
 0x171   :  { %v5277_v26 = vand.u32 3, %v733_v14  ;;  %v5279_v15 = vmul.u32.u64.low %v896_v49, %v891_v59  ;;  %v5280_v52 = vmul.u32.u64.high %v896_v49, %v891_v59, %v5279_v15  ;;  %v5284_v48 = vsub.s32 32, %v5001_v46 }
 0x172   :  { %v5275_v2 = vsel %vm6908_vm3, %v6994_v43, 1326507024  ;;  %v5287_v9 = vshrl.u32 %v4912_v13, 5  ;;  %v5290_v42 = vand.u32 3, %v5188_v40  ;;  %v3824_v41 = vmin.u32 %v810_v54, %v5252_v20 }
 0x173   :  { %v5295_v21 = vshll.u32 %v6932_v39, %v5001_v46  ;;  %v5299_v7 = vshll.u32 %v6926_v32, %v5001_v46  ;;  %v5302_v30 = vsub.s32 32, %v5259_v56  ;;  %v887_v13 = vsel %vm881_vm12, %v884_v29, %v886_v18 }
 0x174   :  { %v812_v37 = vclz %v3824_v41  ;;  %v830_v17 = vsub.s32 4, %v806_v35  ;;  %vm905_vm0 = vc.u32 %v5262_v16, %v5279_v15  ;;  %v5310_v40 = vand.u32 8388607, %v952_v5 }
 0x175   :  { %v5314_v58 = vshll.u32 %v6932_v39, %v5259_v56  ;;  %vm739_vm9 = vcmp.eq.s32.totalorder %v5277_v26, 2  ;;  %vm746_vm13 = vcmp.lt.s32.totalorder %v6976_v47, 0  ;;  %v906_v25 = vadd.s32 1, %v5280_v52 }
 0x176   :  { %vm736_vm1 = vcmp.eq.s32.totalorder %v5277_v26, 0  ;;  %vm2413_vm2 = vcmp.eq.s32.totalorder %v5290_v42, 0  ;;  %vm2416_vm4 = vcmp.eq.s32.totalorder %v5290_v42, 2  ;;  %v800_v53 = vadd.s32 %v5176_v28, %v5164_v22 }
 0x177   :  { %v3825_v0 = vadd.s32 4294967294, %v812_v37  ;;  %v903_v31 = vmul.u32 %v896_v49, %v887_v13  ;;  %vm735_vm5 = vcmp.lt.s32.totalorder %v5277_v26, 2  ;;  %vm2412_vm14 = vcmp.lt.s32.totalorder %v5290_v42, 2 }
 0x178   :  { %v907_v4 = vsel %vm905_vm0, %v906_v25, %v5280_v52  ;;  %v970_v6 = vshrl.u32 %v6958_v55, %v6995_v12  ;;  %v973_v51 = vshrl.u32 %v6964_v19, %v6995_v12  ;;  %v976_v8 = vshrl.u32 %v6932_v39, %v6995_v12 }
 0x179   :  { %vm732_vm6 = vweird.f32 %v4362_v11  ;;  %vm3826_vm10 = vcmp.lt.s32.totalorder %v3825_v0, 0  ;;  %v831_v22 = vsel %vm746_vm13, %v830_v17, %v806_v35  ;;  %v908_v28 = vadd.s32 %v907_v4, %v903_v31  ;;  %v6997_v4 = vld [vmem:[#allocation23_spill] sm:$0xff] }
 0x17a   :  { %v960_v45 = vor.u32 8388608, %v5310_v40  ;;  %v815_v14 = vsel %vm3826_vm10, 0, %v3825_v0  ;;  %v969_v49 = vshll.u32 %v6961_v3, %v6996_v36  ;;  %v972_v23 = vshll.u32 %v6958_v55, %v6996_v36 }
 0x17b   :  { %v975_v59 = vshll.u32 %v6964_v19, %v6996_v36  ;;  %v816_v50 = vsub.s32 32, %v815_v14  ;;  %v820_v54 = vsub.s32 4294967266, %v815_v14  ;;  %v909_v29 = vadd.s32 536870912, %v908_v28  ;;  %v4029_v35 = vpop.eup %4028 }
 0x17c   :  { %v968_v18 = vshrl.u32 %v6961_v3, %v6995_v12  ;;  %v817_v43 = vshll.u32 %v5252_v20, %v815_v14  ;;  %v971_v52 = vor.u32 %v970_v6, %v969_v49  ;;  %v974_v41 = vor.u32 %v973_v51, %v972_v23  ;;  %v4031_v37 = vpop.eup %4030 }
 0x17d   :  { %v977_v13 = vor.u32 %v976_v8, %v975_v59  ;;  %v740_v17 = vxor.u32 2147483648, %v4029_v35  ;;  %v818_v40 = vshrl.u32 %v800_v53, %v816_v50  ;;  %v821_v25 = vadd.s32 127, %v820_v54  ;;  %v6998_v50 = vld [vmem:[#allocation33_spill] sm:$0xff]  ;;  %v6999_v54 = vld [vmem:[#allocation24_spill] sm:$0xff] }
 0x17e   :  { %v5346_v0 = vshrl.u32 %v909_v29, 30  ;;  %v737_v31 = vxor.u32 2147483648, %v4031_v37  ;;  %vm984_vm11 = vcmp.lt.s32.totalorder %v6997_v4, 1  ;;  %vm985_vm12 = vcmp.lt.s32.totalorder %v6997_v4, 2 }
 0x17f   :  { %vm986_vm8 = vcmp.lt.s32.totalorder %v6997_v4, 3  ;;  %v741_v12 = vsel %vm739_vm9, %v740_v17, %v4031_v37  ;;  %v2418_v20 = vsel %vm2416_vm4, %v740_v17, %v4031_v37  ;;  %v819_v6 = vor.u32 %v818_v40, %v817_v43 }
 0x180   :  { %v822_v51 = vshll.u32 %v821_v25, 23  ;;  %v738_v53 = vsel %vm736_vm1, %v4029_v35, %v737_v31  ;;  %v2415_v8 = vsel %vm2413_vm2, %v4029_v35, %v737_v31  ;;  %v911_v14 = vshll.u32 %v5346_v0, 30  ;;  %v7000_v25 = vld [vmem:[#allocation31_spill] sm:$0xff] }
 0x181   :  { %v996_v36 = vsel %vm984_vm11, %v974_v41, %v977_v13  ;;  %v742_v49 = vsel %vm735_vm5, %v738_v53, %v741_v12  ;;  %v2419_v23 = vsel %vm2412_vm14, %v2415_v8, %v2418_v20  ;;  %v998_v29 = vsel %vm986_vm8, %v6999_v54, %v6998_v50 }
 0x182   :  { %v823_v59 = vor.u32 4788187, %v822_v51  ;;  %v743_v35 = vsel %vm732_vm6, nan, %v742_v49  ;;  %v2420_v43 = vsel %vm732_vm6, nan, %v2419_v23  ;;  %v5374_v37 = vsub.s32 %v908_v28, %v911_v14 }
 0x183   :  { %v989_v26 = vsel %vm987_vm15, %v977_v13, 2102212464  ;;  %1996 = vst.msk [vmem:[%s6810_s2 + $0x18] sm:$0xff] %vm1992_vm7, %v743_v35  ;;  %3679 = vrot.lane.b32.xlu1 %v2420_v43, %s4092_s15  ;;  %v826_v17 = vcvt.s32.f32 %v819_v6  ;;  %v992_v40 = vsel %vm984_vm11, %v971_v52, %v974_v41  ;;  %v994_v11 = vsel %vm986_vm8, %v977_v13, %v7000_v25  ;;  %v7004_v25 = vld [vmem:[#allocation26_spill] sm:$0xff] }
 0x184   :  { %v824_v42 = vand.u32 2147483647, %v823_v59  ;;  %v5390_v28 = vshll.u32 %v6926_v32, %v5259_v56  ;;  %vm5394_vm15 = vcmp.le.f32.partialorder %v744_v57, 0.7853982  ;;  %v914_v12 = vsub.s32 0, %v5374_v37  ;;  %v7022_v56 = vld [vmem:[#allocation36_spill] sm:$0xff] }
 0x185   :  { %v999_v20 = vsel %vm985_vm12, %v996_v36, %v998_v29  ;;  %v988_v51 = vsel %vm984_vm11, %v968_v18, %v971_v52  ;;  %v990_v13 = vsel %vm986_vm8, %v974_v41, %v989_v26  ;;  %v1000_v53 = vshll.u32 %v960_v45, 8  ;;  %v7003_v18 = vld [vmem:[#allocation6_spill] sm:$0xff] }
 0x186   :  { %v827_v6 = vmul.f32 %v826_v17, %v824_v42  ;;  %v5407_v8 = vshrl.u32 %v6926_v32, %v5284_v48  ;;  %v833_v57 = vsel %vm5394_vm15, 0, %v831_v22  ;;  %v3828_v14 = vmin.u32 %v914_v12, %v5374_v37 }
 0x187   :  { %v995_v36 = vsel %vm985_vm12, %v992_v40, %v994_v11  ;;  %v5414_v23 = vmul.u32.u64.low %v1000_v53, %v999_v20  ;;  %v5415_v59 = vmul.u32.u64.high %v1000_v53, %v999_v20, %v5414_v23  ;;  %v6905_v52 = vand.u32 2147483647, %v7003_v18  ;;  %v7005_v20 = vld [vmem:[#allocation32_spill] sm:$0xff] }
 0x188   :  { %v828_v49 = vxor.u32 2147483648, %v827_v6  ;;  %v5420_v45 = vshrl.u32 %v6930_v27, %v5284_v48  ;;  %v5423_v41 = vadd.s32 1, %v4845_v60  ;;  %v916_v50 = vclz %v3828_v14 }
 0x189   :  { %v991_v22 = vsel %vm985_vm12, %v988_v51, %v990_v13  ;;  %v5428_v54 = vadd.s32 1, %v4847_v34  ;;  %v5432_v35 = vmul.u32.u64.low %v1000_v53, %v995_v36  ;;  %v5433_v43 = vmul.u32.u64.high %v1000_v53, %v995_v36, %v5432_v35 }
 0x18a   :  { %v829_v29 = vsel %vm746_vm13, %v828_v49, %v827_v6  ;;  %v837_v60 = vadd.s32 3, %v833_v57  ;;  %v5439_v42 = vand.u32 3, %v833_v57  ;;  %v3829_v17 = vadd.s32 4294967294, %v916_v50 }
 0x18b   :  { %v832_v26 = vsel %vm5394_vm15, %v6976_v47, %v829_v29  ;;  %v904_v34 = vadd.s32 %v5279_v15, %v5262_v16  ;;  %v1007_v4 = vmul.u32 %v1000_v53, %v991_v22  ;;  %v1063_v40 = vand.u32 8388607, %v6905_v52  ;;  %v7021_v52 = vld [vmem:[#allocation41_spill] sm:$0xff] }
 0x18c   :  { %4032 = vcosq.f32 %v832_v26  ;;  %vm3830_vm0 = vcmp.lt.s32.totalorder %v3829_v17, 0  ;;  %vm1009_vm9 = vc.u32 %v5415_v59, %v5432_v35  ;;  %v1073_v11 = vshll.u32 %v6961_v3, %v7004_v25 }
 0x18d   :  { %4034 = vsinq.f32 %v832_v26  ;;  %v919_v31 = vsel %vm3830_vm0, 0, %v3829_v17  ;;  %v1010_v12 = vadd.s32 1, %v5433_v43  ;;  %v1074_v6 = vshrl.u32 %v6958_v55, %v7005_v20 }
 0x18e   :  { %v1076_v16 = vshll.u32 %v6958_v55, %v7004_v25  ;;  %vm850_vm13 = vcmp.lt.s32.totalorder %v6989_v1, 0  ;;  %v920_v15 = vsub.s32 32, %v919_v31  ;;  %v921_v51 = vshll.u32 %v5374_v37, %v919_v31 }
 0x18f   :  { %v924_v13 = vsub.s32 4294967266, %v919_v31  ;;  %v1077_v53 = vshrl.u32 %v6964_v19, %v7005_v20  ;;  %v1011_v57 = vsel %vm1009_vm9, %v1010_v12, %v5433_v43  ;;  %v1075_v14 = vor.u32 %v1074_v6, %v1073_v11  ;;  %v7008_v11 = vld [vmem:[#allocation37_spill] sm:$0xff] }
 0x190   :  { %v1079_v36 = vshll.u32 %v6964_v19, %v7004_v25  ;;  %v1080_v49 = vshrl.u32 %v6932_v39, %v7005_v20  ;;  %v922_v23 = vshrl.u32 %v904_v34, %v920_v15  ;;  %v1012_v22 = vadd.s32 %v1011_v57, %v1007_v4 }
 0x191   :  { %v925_v50 = vadd.s32 127, %v924_v13  ;;  %v1078_v29 = vor.u32 %v1077_v53, %v1076_v16  ;;  %v838_v26 = vand.u32 3, %v837_v60  ;;  %vm5465_vm1 = vcmp.le.f32.partialorder %v848_v61, 0.7853982  ;;  %v7009_v61 = vld [vmem:[#allocation43_spill] sm:$0xff]  ;;  %v7010_v13 = vld [vmem:[#allocation44_spill] sm:$0xff] }
 0x192   :  { %v1064_v17 = vor.u32 8388608, %v1063_v40  ;;  %v1081_v43 = vor.u32 %v1080_v49, %v1079_v36  ;;  %vm1088_vm2 = vcmp.lt.s32.totalorder %v7008_v11, 1  ;;  %v923_v31 = vor.u32 %v922_v23, %v921_v51  ;;  %v7011_v53 = vld [vmem:[#allocation39_spill] sm:$0xff] }
 0x193   :  { %v926_v25 = vshll.u32 %v925_v50, 23  ;;  %v1013_v12 = vadd.s32 536870912, %v1012_v22  ;;  %vm1090_vm4 = vcmp.lt.s32.totalorder %v7008_v11, 3  ;;  %vm2516_vm5 = vcmp.eq.s32.totalorder %v5439_v42, 0 }
 0x194   :  { %v934_v34 = vsub.s32 4, %v5346_v0  ;;  %v1096_v60 = vsel %vm1088_vm2, %v1075_v14, %v1078_v29  ;;  %v1098_v4 = vsel %vm1090_vm4, %v1081_v43, %v7009_v61  ;;  %v1100_v40 = vsel %vm1088_vm2, %v1078_v29, %v1081_v43 }
 0x195   :  { %vm2515_vm14 = vcmp.lt.s32.totalorder %v5439_v42, 2  ;;  %vm2519_vm6 = vcmp.eq.s32.totalorder %v5439_v42, 2  ;;  %v927_v6 = vor.u32 4788187, %v926_v25  ;;  %v5482_v16 = vshrl.u32 %v1013_v12, 30 }
 0x196   :  { %vm1089_vm10 = vcmp.lt.s32.totalorder %v7008_v11, 2  ;;  %vm839_vm11 = vcmp.lt.s32.totalorder %v838_v26, 2  ;;  %v930_v15 = vcvt.s32.f32 %v923_v31  ;;  %v1102_v57 = vsel %vm1090_vm4, %v7011_v53, %v7010_v13 }
 0x197   :  { %v1099_v51 = vsel %vm1089_vm10, %v1096_v60, %v1098_v4  ;;  %v928_v36 = vand.u32 2147483647, %v927_v6  ;;  %v1015_v49 = vshll.u32 %v5482_v16, 30  ;;  %v1103_v23 = vsel %vm1089_vm10, %v1100_v40, %v1102_v57 }
 0x198   :  { %v1104_v50 = vshll.u32 %v1064_v17, 8  ;;  %vm840_vm12 = vcmp.eq.s32.totalorder %v838_v26, 0  ;;  %vm843_vm8 = vcmp.eq.s32.totalorder %v838_v26, 2  ;;  %v935_v31 = vsel %vm850_vm13, %v934_v34, %v5346_v0 }
 0x199   :  { %vm7012_vm15 = vcmp.lt.s32.totalorder %v7008_v11, 4  ;;  %v4033_v12 = vpop.eup %4032  ;;  %v931_v60 = vmul.f32 %v930_v15, %v928_v36  ;;  %v5499_v61 = vsub.s32 %v1012_v22, %v1015_v49  ;;  %v1072_v17 = vshrl.u32 %v6961_v3, %v7005_v20 }
 0x19a   :  { %v1093_v25 = vsel %vm7012_vm15, %v1081_v43, 2102212464  ;;  %v5501_v4 = vmul.u32.u64.low %v1104_v50, %v1103_v23  ;;  %v5502_v6 = vmul.u32.u64.high %v1104_v50, %v1103_v23, %v5501_v4  ;;  %v4035_v13 = vpop.eup %4034  ;;  %v844_v53 = vxor.u32 2147483648, %v4033_v12 }
 0x19b   :  { %v5506_v40 = vmul.u32.u64.low %v1104_v50, %v1099_v51  ;;  %v5507_v57 = vmul.u32.u64.high %v1104_v50, %v1099_v51, %v5506_v40  ;;  %v841_v0 = vxor.u32 2147483648, %v4035_v13  ;;  %v932_v34 = vxor.u32 2147483648, %v931_v60 }
 0x19c   :  { %v937_v43 = vsel %vm5465_vm1, 0, %v935_v31  ;;  %v1018_v22 = vsub.s32 0, %v5499_v61  ;;  %v2521_v15 = vsel %vm2519_vm6, %v844_v53, %v4035_v13  ;;  %v845_v36 = vsel %vm843_vm8, %v844_v53, %v4035_v13 }
 0x19d   :  { %v1092_v49 = vsel %vm1088_vm2, %v1072_v17, %v1075_v14  ;;  %v1094_v20 = vsel %vm1090_vm4, %v1078_v29, %v1093_v25  ;;  %v2518_v51 = vsel %vm2516_vm5, %v4033_v12, %v841_v0  ;;  %v842_v23 = vsel %vm840_vm12, %v4033_v12, %v841_v0 }
 0x19e   :  { %v933_v31 = vsel %vm850_vm13, %v932_v34, %v931_v60  ;;  %v3832_v4 = vmin.u32 %v1018_v22, %v5499_v61  ;;  %vm836_vm0 = vweird.f32 %v6976_v47  ;;  %v2522_v13 = vsel %vm2515_vm14, %v2518_v51, %v2521_v15 }
 0x19f   :  { %v846_v14 = vsel %vm839_vm11, %v842_v23, %v845_v36  ;;  %v936_v29 = vsel %vm5465_vm1, %v6989_v1, %v933_v31  ;;  %v2523_v25 = vsel %vm836_vm0, nan, %v2522_v13  ;;  %v5535_v60 = vshrl.u32 %v6926_v32, %v5302_v30  ;;  %v7016_v13 = vld [vmem:[#allocation29_spill] sm:$0xff] }
 0x1a0   :  { %v847_v53 = vsel %vm836_vm0, nan, %v846_v14  ;;  %4036 = vcosq.f32 %v936_v29  ;;  %v1020_v12 = vclz %v3832_v4  ;;  %3681 = vrot.lane.b32.xlu0 %v2523_v25, %s4092_s15  ;;  %v941_v47 = vadd.s32 3, %v937_v43 }
 0x1a1   :  { %1997 = vst.msk [vmem:[%s6810_s2 + $0x20] sm:$0xff] %vm1992_vm7, %v847_v53  ;;  %4038 = vsinq.f32 %v936_v29  ;;  %v1095_v42 = vsel %vm1089_vm10, %v1092_v49, %v1094_v20  ;;  %v5546_v26 = vor.u32 %v5407_v8, %v5295_v21  ;;  %v5552_v17 = vshrl.u32 %v6930_v27, %v5302_v30  ;;  %v7015_v49 = vld [vmem:[#allocation5_spill] sm:$0xff] }
 0x1a2   :  { %v3833_v0 = vadd.s32 4294967294, %v1020_v12  ;;  %v5554_v34 = vand.u32 3, %v937_v43  ;;  %v1038_v22 = vsub.s32 4, %v5482_v16  ;;  %vm1113_vm9 = vc.u32 %v5502_v6, %v5506_v40 }
 0x1a3   :  { %v1114_v11 = vadd.s32 1, %v5507_v57  ;;  %vm5562_vm13 = vcmp.le.f32.partialorder %v952_v5, 0.7853982  ;;  %vm954_vm1 = vcmp.lt.s32.totalorder %v6993_v44, 0  ;;  %v1111_v8 = vmul.u32 %v1104_v50, %v1095_v42 }
 0x1a4   :  { %vm3834_vm2 = vcmp.lt.s32.totalorder %v3833_v0, 0  ;;  %v942_v15 = vand.u32 3, %v941_v47  ;;  %v6904_v20 = vand.u32 2147483647, %v7015_v49  ;;  %v1008_v51 = vadd.s32 %v5432_v35, %v5415_v59 }
 0x1a5   :  { %v1023_v43 = vsel %vm3834_vm2, 0, %v3833_v0  ;;  %v1115_v36 = vsel %vm1113_vm9, %v1114_v11, %v5507_v57  ;;  %vm2622_vm4 = vcmp.eq.s32.totalorder %v5554_v34, 2  ;;  %v1039_v5 = vsel %vm954_vm1, %v1038_v22, %v5482_v16  ;;  %v7017_v16 = vld [vmem:[#allocation21_spill] sm:$0xff] }
 0x1a6   :  { %v1024_v23 = vsub.s32 32, %v1023_v43  ;;  %v1028_v31 = vsub.s32 4294967266, %v1023_v43  ;;  %v1116_v4 = vadd.s32 %v1115_v36, %v1111_v8  ;;  %v1178_v50 = vshrl.u32 %v6958_v55, %v7016_v13 }
 0x1a7   :  { %v1181_v57 = vshrl.u32 %v6964_v19, %v7016_v13  ;;  %vm2619_vm5 = vcmp.eq.s32.totalorder %v5554_v34, 0  ;;  %v1025_v14 = vshll.u32 %v5499_v61, %v1023_v43  ;;  %vm943_vm14 = vcmp.lt.s32.totalorder %v942_v15, 2 }
 0x1a8   :  { %v1026_v59 = vshrl.u32 %v1008_v51, %v1024_v23  ;;  %v1029_v35 = vadd.s32 127, %v1028_v31  ;;  %v1117_v29 = vadd.s32 536870912, %v1116_v4  ;;  %vm2618_vm6 = vcmp.lt.s32.totalorder %v5554_v34, 2 }
 0x1a9   :  { %v1167_v25 = vand.u32 8388607, %v6904_v20  ;;  %v1177_v53 = vshll.u32 %v6961_v3, %v7017_v16  ;;  %v1180_v12 = vshll.u32 %v6958_v55, %v7017_v16  ;;  %v1184_v47 = vshrl.u32 %v6932_v39, %v7016_v13 }
 0x1aa   :  { %vm940_vm10 = vweird.f32 %v6989_v1  ;;  %vm944_vm11 = vcmp.eq.s32.totalorder %v942_v15, 0  ;;  %v1027_v61 = vor.u32 %v1026_v59, %v1025_v14  ;;  %v1030_v42 = vshll.u32 %v1029_v35, 23  ;;  %v7018_v35 = vld [vmem:[#allocation35_spill] sm:$0xff] }
 0x1ab   :  { %v1118_v0 = vshrl.u32 %v1117_v29, 30  ;;  %vm947_vm12 = vcmp.eq.s32.totalorder %v942_v15, 2  ;;  %v1179_v22 = vor.u32 %v1178_v50, %v1177_v53  ;;  %v1182_v11 = vor.u32 %v1181_v57, %v1180_v12 }
 0x1ac   :  { %v1183_v8 = vshll.u32 %v6964_v19, %v7017_v16  ;;  %v1031_v43 = vor.u32 4788187, %v1030_v42  ;;  %v1041_v36 = vsel %vm5562_vm13, 0, %v1039_v5  ;;  %v1176_v23 = vshrl.u32 %v6961_v3, %v7016_v13 }
 0x1ad   :  { %v1119_v51 = vshll.u32 %v1118_v0, 30  ;;  %v4037_v31 = vpop.eup %4036  ;;  %vm1058_vm8 = vcmp.lt.s32.totalorder %v7003_v18, 0  ;;  %v1168_v14 = vor.u32 8388608, %v1167_v25  ;;  %vm1192_vm15 = vcmp.lt.s32.totalorder %v7018_v35, 1 }
 0x1ae   :  { %v1185_v59 = vor.u32 %v1184_v47, %v1183_v8  ;;  %vm1193_vm0 = vcmp.lt.s32.totalorder %v7018_v35, 2  ;;  %v4039_v50 = vpop.eup %4038  ;;  %v948_v57 = vxor.u32 2147483648, %v4037_v31  ;;  %v1032_v29 = vand.u32 2147483647, %v1031_v43 }
 0x1af   :  { %v1034_v16 = vcvt.s32.f32 %v1027_v61  ;;  %v5600_v53 = vsub.s32 %v1116_v4, %v1119_v51  ;;  %v945_v5 = vxor.u32 2147483648, %v4039_v50  ;;  %v1142_v12 = vsub.s32 4, %v1118_v0  ;;  %v7020_v51 = vld [vmem:[#allocation40_spill] sm:$0xff] }
 0x1b0   :  { %vm1194_vm9 = vcmp.lt.s32.totalorder %v7018_v35, 3  ;;  %v1200_v13 = vsel %vm1192_vm15, %v1179_v22, %v1182_v11  ;;  %v949_v25 = vsel %vm947_vm12, %v948_v57, %v4039_v50  ;;  %v2624_v47 = vsel %vm2622_vm4, %v948_v57, %v4039_v50 }
 0x1b1   :  { %v1035_v42 = vmul.f32 %v1034_v16, %v1032_v29  ;;  %v1122_v8 = vsub.s32 0, %v5600_v53  ;;  %v946_v43 = vsel %vm944_vm11, %v4037_v31, %v945_v5  ;;  %v2621_v4 = vsel %vm2619_vm5, %v4037_v31, %v945_v5 }
 0x1b2   :  { %vm7019_vm2 = vcmp.lt.s32.totalorder %v7018_v35, 4  ;;  %v1202_v20 = vsel %vm1194_vm9, %v1185_v59, %v7020_v51  ;;  %v950_v37 = vsel %vm943_vm14, %v946_v43, %v949_v25  ;;  %v2625_v50 = vsel %vm2618_vm6, %v2621_v4, %v2624_v47 }
 0x1b3   :  { %v1197_v61 = vsel %vm7019_vm2, %v1185_v59, 2102212464  ;;  %v1036_v57 = vxor.u32 2147483648, %v1035_v42  ;;  %v3836_v29 = vmin.u32 %v1122_v8, %v5600_v53  ;;  %v951_v16 = vsel %vm940_vm10, nan, %v950_v37 }
 0x1b4   :  { %v2626_v31 = vsel %vm940_vm10, nan, %v2625_v50  ;;  %v1204_v5 = vsel %vm1192_vm15, %v1182_v11, %v1185_v59  ;;  %v1206_v15 = vsel %vm1194_vm9, %v7022_v56, %v7021_v52  ;;  %1998 = vst.msk [vmem:[%s6810_s2 + $0x28] sm:$0xff] %vm1992_vm7, %v951_v16  ;;  %v1196_v34 = vsel %vm1192_vm15, %v1176_v23, %v1179_v22 }
 0x1b5   :  { %3683 = vrot.lane.b32.xlu1 %v2626_v31, %s4092_s15  ;;  %v1037_v37 = vsel %vm954_vm1, %v1036_v57, %v1035_v42  ;;  %v1124_v1 = vclz %v3836_v29  ;;  %v1198_v59 = vsel %vm1194_vm9, %v1182_v11, %v1197_v61  ;;  %v1045_v52 = vadd.s32 3, %v1041_v36 }
 0x1b6   :  { %v1040_v56 = vsel %vm5562_vm13, %v6993_v44, %v1037_v37  ;;  %v1203_v25 = vsel %vm1193_vm0, %v1200_v13, %v1202_v20  ;;  %v1208_v47 = vshll.u32 %v1168_v14, 8  ;;  %v1143_v42 = vsel %vm1058_vm8, %v1142_v12, %v1118_v0  ;;  %v7023_v20 = vld [vmem:[#allocation8_spill] sm:$0xff]  ;;  %v7028_v37 = vld [vmem:[#allocation47_spill] sm:$0xff] }
 0x1b7   :  { %4040 = vcosq.f32 %v1040_v56  ;;  %v3837_v8 = vadd.s32 4294967294, %v1124_v1  ;;  %v1207_v22 = vsel %vm1193_vm0, %v1204_v5, %v1206_v15  ;;  %v1199_v11 = vsel %vm1193_vm0, %v1196_v34, %v1198_v59 }
 0x1b8   :  { %4042 = vsinq.f32 %v1040_v56  ;;  %v5653_v23 = vmul.u32.u64.low %v1208_v47, %v1207_v22  ;;  %v5654_v21 = vmul.u32.u64.high %v1208_v47, %v1207_v22, %v5653_v23  ;;  %v6910_v14 = vand.u32 2147483647, %v7023_v20 }
 0x1b9   :  { %vm3838_vm13 = vcmp.lt.s32.totalorder %v3837_v8, 0  ;;  %v5656_v43 = vmul.u32.u64.low %v1208_v47, %v1203_v25  ;;  %v5657_v4 = vmul.u32.u64.high %v1208_v47, %v1203_v25, %v5656_v43  ;;  %v5663_v0 = vor.u32 %v5535_v60, %v5314_v58 }
 0x1ba   :  { %v5665_v12 = vand.u32 3, %v1041_v36  ;;  %v7024_v13 = vand.u32 2147483647, %v7003_v18  ;;  %v1127_v61 = vsel %vm3838_vm13, 0, %v3837_v8  ;;  %v5673_v51 = vand.u32 3, %v1045_v52 }
 0x1bb   :  { %v1112_v50 = vadd.s32 %v5506_v40, %v5502_v6  ;;  %v1128_v57 = vsub.s32 32, %v1127_v61  ;;  %v1132_v29 = vsub.s32 4294967266, %v1127_v61  ;;  %v1129_v16 = vshll.u32 %v5600_v53, %v1127_v61  ;;  %v7027_v6 = vld [vmem:[#allocation49_spill] sm:$0xff] }
 0x1bc   :  { %vm5669_vm1 = vcmp.le.f32.partialorder %v7024_v13, 0.7853982  ;;  %v1215_v60 = vmul.u32 %v1208_v47, %v1199_v11  ;;  %vm1217_vm4 = vc.u32 %v5654_v21, %v5656_v43  ;;  %v1218_v5 = vadd.s32 1, %v5657_v4 }
 0x1bd   :  { %v5680_v58 = vsel %vm5669_vm1, 0, %v1143_v42  ;;  %v1130_v36 = vshrl.u32 %v1112_v50, %v1128_v57  ;;  %v1133_v31 = vadd.s32 127, %v1132_v29  ;;  %v1271_v15 = vand.u32 8388607, %v6910_v14 }
 0x1be   :  { %v1282_v40 = vshrl.u32 %v6958_v55, %v7027_v6  ;;  %v1284_v53 = vshll.u32 %v6958_v55, %v7028_v37  ;;  %v1285_v1 = vshrl.u32 %v6964_v19, %v7027_v6  ;;  %v1287_v34 = vshll.u32 %v6964_v19, %v7028_v37 }
 0x1bf   :  { %vm1048_vm5 = vcmp.eq.s32.totalorder %v5673_v51, 0  ;;  %v1131_v59 = vor.u32 %v1130_v36, %v1129_v16  ;;  %v1134_v56 = vshll.u32 %v1133_v31, 23  ;;  %v1219_v52 = vsel %vm1217_vm4, %v1218_v5, %v5657_v4 }
 0x1c0   :  { %v1288_v25 = vshrl.u32 %v6932_v39, %v7027_v6  ;;  %vm1047_vm14 = vcmp.lt.s32.totalorder %v5673_v51, 2  ;;  %vm1051_vm6 = vcmp.eq.s32.totalorder %v5673_v51, 2  ;;  %vm2721_vm10 = vcmp.lt.s32.totalorder %v5665_v12, 2 }
 0x1c1   :  { %v1220_v47 = vadd.s32 %v1219_v52, %v1215_v60  ;;  %v1281_v8 = vshll.u32 %v6961_v3, %v7028_v37  ;;  %vm1044_vm11 = vweird.f32 %v6993_v44  ;;  %vm2722_vm12 = vcmp.eq.s32.totalorder %v5665_v12, 0 }
 0x1c2   :  { %v1135_v42 = vor.u32 4788187, %v1134_v56  ;;  %v1286_v22 = vor.u32 %v1285_v1, %v1284_v53  ;;  %v1289_v11 = vor.u32 %v1288_v25, %v1287_v34  ;;  %vm1691_vm15 = vcmp.gt.s32.totalorder %v5423_v41, 0  ;;  %v7031_v25 = vld [vmem:[#allocation52_spill] sm:$0xff] }
 0x1c3   :  { %vm2725_vm9 = vcmp.eq.s32.totalorder %v5665_v12, 2  ;;  %v1149_v23 = vadd.s32 3, %v5680_v58  ;;  %v1221_v4 = vadd.s32 536870912, %v1220_v47  ;;  %v1283_v13 = vor.u32 %v1282_v40, %v1281_v8 }
 0x1c4   :  { %v1136_v61 = vand.u32 2147483647, %v1135_v42  ;;  %v1138_v50 = vcvt.s32.f32 %v1131_v59  ;;  %v1272_v57 = vor.u32 8388608, %v1271_v15  ;;  %v1280_v29 = vshrl.u32 %v6961_v3, %v7027_v6  ;;  %v4041_v16 = vpop.eup %4040  ;;  %v7029_v15 = vld [vmem:[#allocation51_spill] sm:$0xff] }
 0x1c5   :  { %vm1507_vm2 = vcmp.lt.s32.totalorder %v4933_v38, 4  ;;  %v1222_v60 = vshrl.u32 %v1221_v4, 30  ;;  %vm1296_vm13 = vcmp.lt.s32.totalorder %v4721_v63, 1  ;;  %vm1297_vm4 = vcmp.lt.s32.totalorder %v4721_v63, 2  ;;  %v4043_v36 = vpop.eup %4042 }
 0x1c6   :  { %vm1298_vm3 = vcmp.lt.s32.totalorder %v4721_v63, 3  ;;  %v1052_v31 = vxor.u32 2147483648, %v4041_v16  ;;  %v1139_v5 = vmul.f32 %v1138_v50, %v1136_v61  ;;  %v1308_v40 = vsel %vm1296_vm13, %v1286_v22, %v1289_v11 }
 0x1c7   :  { %v1310_v6 = vsel %vm1298_vm3, %v7029_v15, %v4927_v10  ;;  %v1049_v37 = vxor.u32 2147483648, %v4043_v36  ;;  %v1223_v53 = vshll.u32 %v1222_v60, 30  ;;  %vm7030_vm0 = vcmp.lt.s32.totalorder %v4721_v63, 4 }
 0x1c8   :  { %v1301_v1 = vsel %vm7030_vm0, %v1289_v11, 2102212464  ;;  %v1304_v34 = vsel %vm1296_vm13, %v1283_v13, %v1286_v22  ;;  %v2727_v59 = vsel %vm2725_vm9, %v1052_v31, %v4043_v36  ;;  %v1053_v56 = vsel %vm1051_vm6, %v1052_v31, %v4043_v36 }
 0x1c9   :  { %v1140_v52 = vxor.u32 2147483648, %v1139_v5  ;;  %v1306_v8 = vsel %vm1298_vm3, %v1289_v11, %v7031_v25  ;;  %v2724_v10 = vsel %vm2722_vm12, %v4041_v16, %v1049_v37  ;;  %v1050_v42 = vsel %vm1048_vm5, %v4041_v16, %v1049_v37 }
 0x1ca   :  { %v5737_v4 = vsub.s32 %v1220_v47, %v1223_v53  ;;  %v1311_v61 = vsel %vm1297_vm4, %v1308_v40, %v1310_v6  ;;  %v2728_v50 = vsel %vm2721_vm10, %v2724_v10, %v2727_v59  ;;  %v1054_v36 = vsel %vm1047_vm14, %v1050_v42, %v1053_v56 }
 0x1cb   :  { %v1141_v11 = vsel %vm1058_vm8, %v1140_v52, %v1139_v5  ;;  %v1312_v31 = vshll.u32 %v1272_v57, 8  ;;  %v2729_v15 = vsel %vm1044_vm11, nan, %v2728_v50  ;;  %v1055_v47 = vsel %vm1044_vm11, nan, %v1054_v36 }
 0x1cc   :  { %v1144_v16 = vsel %vm5669_vm1, %v7003_v18, %v1141_v11  ;;  %v1226_v12 = vsub.s32 0, %v5737_v4  ;;  %3685 = vrot.lane.b32.xlu0 %v2729_v15, %s4092_s15  ;;  %1999 = vst.msk [vmem:[%s6810_s2 + $0x30] sm:$0xff] %vm1992_vm7, %v1055_v47  ;;  %v1300_v51 = vsel %vm1296_vm13, %v1280_v29, %v1283_v13  ;;  %v1302_v44 = vsel %vm1298_vm3, %v1286_v22, %v1301_v1 }
 0x1cd   :  { %4044 = vcosq.f32 %v1144_v16  ;;  %v1307_v35 = vsel %vm1297_vm4, %v1304_v34, %v1306_v8  ;;  %v5767_v5 = vmul.u32.u64.low %v1312_v31, %v1311_v61  ;;  %v5768_v40 = vmul.u32.u64.high %v1312_v31, %v1311_v61, %v5767_v5 }
 0x1ce   :  { %4046 = vsinq.f32 %v1144_v16  ;;  %v3840_v57 = vmin.u32 %v1226_v12, %v5737_v4  ;;  %v5773_v6 = vsel %vm1507_vm2, %v5546_v26, 920167782  ;;  %v1692_v13 = vsel %vm1691_vm15, %v5423_v41, 0 }
 0x1cf   :  { %vm7032_vm3 = vcmp.gt.s32.totalorder %v5428_v54, 0  ;;  %v5784_v29 = vand.u32 3, %v5680_v58  ;;  %v1246_v53 = vsub.s32 4, %v1222_v60  ;;  %v7033_v59 = vor.u32 %v5420_v45, %v5299_v7  ;;  %v7034_v58 = vld [vmem:[#allocation7_spill] sm:$0xff] }
 0x1d0   :  { %v5781_v22 = vsel %vm7032_vm3, %v5428_v54, 0  ;;  %v1228_v37 = vclz %v3840_v57  ;;  %v5786_v1 = vmul.u32.u64.low %v1312_v31, %v1307_v35  ;;  %v5787_v34 = vmul.u32.u64.high %v1312_v31, %v1307_v35, %v5786_v1 }
 0x1d1   :  { %v5795_v41 = vsel %vm1507_vm2, %v7033_v59, 1326507024  ;;  %v5797_v56 = vand.u32 3, %v1149_v23  ;;  %v1303_v54 = vsel %vm1297_vm4, %v1300_v51, %v1302_v44  ;;  %v6909_v52 = vand.u32 2147483647, %v7034_v58  ;;  %v7039_v51 = vld [vmem:[#allocation30_spill] sm:$0xff] }
 0x1d2   :  { %v5802_v25 = vshrl.u32 %v1692_v13, 5  ;;  %v5804_v8 = vand.u32 31, %v1692_v13  ;;  %v5807_v10 = vand.u32 31, %v5781_v22  ;;  %v3841_v42 = vadd.s32 4294967294, %v1228_v37 }
 0x1d3   :  { %v7035_v7 = vand.u32 2147483647, %v7015_v49  ;;  %vm1162_vm1 = vcmp.lt.s32.totalorder %v7015_v49, 0  ;;  %v1216_v63 = vadd.s32 %v5656_v43, %v5654_v21  ;;  %vm1321_vm5 = vc.u32 %v5768_v40, %v5786_v1  ;;  %v7038_v43 = vld [vmem:[#allocation34_spill] sm:$0xff] }
 0x1d4   :  { %vm2828_vm14 = vcmp.eq.s32.totalorder %v5784_v29, 2  ;;  %vm3842_vm6 = vcmp.lt.s32.totalorder %v3841_v42, 0  ;;  %v1247_v23 = vsel %vm1162_vm1, %v1246_v53, %v1222_v60  ;;  %v1319_v61 = vmul.u32 %v1312_v31, %v1303_v54 }
 0x1d5   :  { %vm5811_vm8 = vcmp.le.f32.partialorder %v7035_v7, 0.7853982  ;;  %v1322_v50 = vadd.s32 1, %v5787_v34  ;;  %vm1152_vm10 = vcmp.eq.s32.totalorder %v5797_v56, 0  ;;  %vm2825_vm11 = vcmp.eq.s32.totalorder %v5784_v29, 0 }
 0x1d6   :  { %v1231_v36 = vsel %vm3842_vm6, 0, %v3841_v42  ;;  %v1375_v21 = vand.u32 8388607, %v6909_v52  ;;  %v1389_v11 = vshrl.u32 %v6964_v19, %v7038_v43  ;;  %v1392_v15 = vshrl.u32 %v6932_v39, %v7038_v43 }
 0x1d7   :  { %vm1151_vm12 = vcmp.lt.s32.totalorder %v5797_v56, 2  ;;  %vm2824_vm15 = vcmp.lt.s32.totalorder %v5784_v29, 2  ;;  %v1232_v60 = vsub.s32 32, %v1231_v36  ;;  %v1236_v31 = vsub.s32 4294967266, %v1231_v36 }
 0x1d8   :  { %v1323_v47 = vsel %vm1321_vm5, %v1322_v50, %v5787_v34  ;;  %v1386_v16 = vshrl.u32 %v6958_v55, %v7038_v43  ;;  %vm1148_vm0 = vweird.f32 %v7003_v18  ;;  %vm1155_vm9 = vcmp.eq.s32.totalorder %v5797_v56, 2 }
 0x1d9   :  { %v1324_v12 = vadd.s32 %v1323_v47, %v1319_v61  ;;  %v1388_v44 = vshll.u32 %v6958_v55, %v7039_v51  ;;  %v1391_v35 = vshll.u32 %v6964_v19, %v7039_v51  ;;  %v1233_v57 = vshll.u32 %v5737_v4, %v1231_v36 }
 0x1da   :  { %v1234_v5 = vshrl.u32 %v1216_v63, %v1232_v60  ;;  %v1237_v13 = vadd.s32 127, %v1236_v31  ;;  %v1385_v37 = vshll.u32 %v6961_v3, %v7039_v51  ;;  %v5851_v53 = vsel %vm5811_vm8, 0, %v1247_v23  ;;  %v4045_v42 = vpop.eup %4044  ;;  %v7040_v63 = vld [vmem:[#allocation38_spill] sm:$0xff] }
 0x1db   :  { %v1325_v34 = vadd.s32 536870912, %v1324_v12  ;;  %v1390_v59 = vor.u32 %v1389_v11, %v1388_v44  ;;  %v1393_v54 = vor.u32 %v1392_v15, %v1391_v35  ;;  %v1376_v50 = vor.u32 8388608, %v1375_v21  ;;  %v4047_v52 = vpop.eup %4046  ;;  %v7041_v35 = vld [vmem:[#allocation46_spill] sm:$0xff] }
 0x1dc   :  { %v1235_v7 = vor.u32 %v1234_v5, %v1233_v57  ;;  %v1238_v61 = vshll.u32 %v1237_v13, 23  ;;  %v1387_v47 = vor.u32 %v1386_v16, %v1385_v37  ;;  %v1156_v14 = vxor.u32 2147483648, %v4045_v42  ;;  %v7042_v57 = vld [vmem:[#allocation42_spill] sm:$0xff] }
 0x1dd   :  { %v1326_v4 = vshrl.u32 %v1325_v34, 30  ;;  %vm1400_vm13 = vcmp.lt.s32.totalorder %v7040_v63, 1  ;;  %vm1401_vm4 = vcmp.lt.s32.totalorder %v7040_v63, 2  ;;  %v1153_v36 = vxor.u32 2147483648, %v4047_v52 }
 0x1de   :  { %v1239_v60 = vor.u32 4788187, %v1238_v61  ;;  %v1242_v31 = vcvt.s32.f32 %v1235_v7  ;;  %vm1402_vm3 = vcmp.lt.s32.totalorder %v7040_v63, 3  ;;  %v1157_v23 = vsel %vm1155_vm9, %v1156_v14, %v4047_v52  ;;  %v7043_v61 = vld [vmem:[#allocation45_spill] sm:$0xff] }
 0x1df   :  { %v2830_v11 = vsel %vm2828_vm14, %v1156_v14, %v4047_v52  ;;  %v1327_v21 = vshll.u32 %v1326_v4, 30  ;;  %v1412_v15 = vsel %vm1400_vm13, %v1390_v59, %v1393_v54  ;;  %v1154_v16 = vsel %vm1152_vm10, %v4045_v42, %v1153_v36 }
 0x1e0   :  { %v2827_v51 = vsel %vm2825_vm11, %v4045_v42, %v1153_v36  ;;  %v1240_v44 = vand.u32 2147483647, %v1239_v60  ;;  %v1414_v5 = vsel %vm1402_vm3, %v7042_v57, %v7041_v35  ;;  %v1158_v13 = vsel %vm1151_vm12, %v1154_v16, %v1157_v23 }
 0x1e1   :  { %v2831_v14 = vsel %vm2824_vm15, %v2827_v51, %v2830_v11  ;;  %v5874_v52 = vsub.s32 %v1324_v12, %v1327_v21  ;;  %v1408_v37 = vsel %vm1400_vm13, %v1387_v47, %v1390_v59  ;;  %v1159_v34 = vsel %vm1148_vm0, nan, %v1158_v13 }
 0x1e2   :  { %v2832_v42 = vsel %vm1148_vm0, nan, %v2831_v14  ;;  %v1243_v7 = vmul.f32 %v1242_v31, %v1240_v44  ;;  %v1410_v56 = vsel %vm1402_vm3, %v1393_v54, %v7043_v61  ;;  %2000 = vst.msk [vmem:[%s6810_s2 + $0x38] sm:$0xff] %vm1992_vm7, %v1159_v34  ;;  %v1384_v12 = vshrl.u32 %v6961_v3, %v7038_v43 }
 0x1e3   :  { %3687 = vrot.lane.b32.xlu1 %v2832_v42, %s4092_s15  ;;  %v1330_v29 = vsub.s32 0, %v5874_v52  ;;  %vm7044_vm5 = vcmp.lt.s32.totalorder %v7040_v63, 4  ;;  %v1415_v36 = vsel %vm1401_vm4, %v1412_v15, %v1414_v5  ;;  %v5898_v60 = vsub.s32 32, %v5804_v8 }
 0x1e4   :  { %v1405_v18 = vsel %vm7044_vm5, %v1393_v54, 2102212464  ;;  %v5902_v31 = vshll.u32 %v6932_v39, %v5804_v8  ;;  %v1244_v23 = vxor.u32 2147483648, %v1243_v7  ;;  %v1416_v11 = vshll.u32 %v1376_v50, 8 }
 0x1e5   :  { %v1253_v21 = vadd.s32 3, %v5851_v53  ;;  %v3844_v16 = vmin.u32 %v1330_v29, %v5874_v52  ;;  %v1404_v43 = vsel %vm1400_vm13, %v1384_v12, %v1387_v47  ;;  %v1411_v54 = vsel %vm1401_vm4, %v1408_v37, %v1410_v56 }
 0x1e6   :  { %v1245_v15 = vsel %vm1162_vm1, %v1244_v23, %v1243_v7  ;;  %v1406_v51 = vsel %vm1402_vm3, %v1390_v59, %v1405_v18  ;;  %v5914_v44 = vmul.u32.u64.low %v1416_v11, %v1415_v36  ;;  %v5915_v35 = vmul.u32.u64.high %v1416_v11, %v1415_v36, %v5914_v44  ;;  %v7048_v36 = vld [vmem:[#allocation14_spill] sm:$0xff] }
 0x1e7   :  { %v5919_v50 = vshll.u32 %v6926_v32, %v5804_v8  ;;  %v1248_v47 = vsel %vm5811_vm8, %v7015_v49, %v1245_v15  ;;  %v1332_v57 = vclz %v3844_v16  ;;  %v1350_v5 = vsub.s32 4, %v1326_v4 }
 0x1e8   :  { %v5925_v13 = vsub.s32 32, %v5807_v10  ;;  %4048 = vcosq.f32 %v1248_v47  ;;  %v5927_v14 = vmul.u32.u64.low %v1416_v11, %v1411_v54  ;;  %v5928_v37 = vmul.u32.u64.high %v1416_v11, %v1411_v54, %v5927_v14 }
 0x1e9   :  { %v5933_v59 = vshrl.u32 %v6926_v32, %v5898_v60  ;;  %4050 = vsinq.f32 %v1248_v47  ;;  %v3845_v34 = vadd.s32 4294967294, %v1332_v57  ;;  %v1407_v45 = vsel %vm1401_vm4, %v1404_v43, %v1406_v51 }
 0x1ea   :  { %v5937_v42 = vand.u32 3, %v1253_v21  ;;  %v5940_v7 = vand.u32 3, %v5851_v53  ;;  %v7045_v61 = vand.u32 2147483647, %v7023_v20  ;;  %vm1266_vm1 = vcmp.lt.s32.totalorder %v7023_v20, 0 }
 0x1eb   :  { %v1320_v29 = vadd.s32 %v5786_v1, %v5768_v40  ;;  %vm3846_vm14 = vcmp.lt.s32.totalorder %v3845_v34, 0  ;;  %v1351_v63 = vsel %vm1266_vm1, %v1350_v5, %v1326_v4  ;;  %vm1425_vm6 = vc.u32 %v5915_v35, %v5927_v14 }
 0x1ec   :  { %vm5944_vm8 = vcmp.le.f32.partialorder %v7045_v61, 0.7853982  ;;  %v1335_v53 = vsel %vm3846_vm14, 0, %v3845_v34  ;;  %v1423_v12 = vmul.u32 %v1416_v11, %v1407_v45  ;;  %v1426_v18 = vadd.s32 1, %v5928_v37 }
 0x1ed   :  { %v1472_v23 = vand.u32 2147483647, %v7048_v36  ;;  %v1336_v21 = vsub.s32 32, %v1335_v53  ;;  %v1340_v16 = vsub.s32 4294967266, %v1335_v53  ;;  %v1490_v43 = vshrl.u32 %v6958_v55, %v5284_v48 }
 0x1ee   :  { %v1492_v40 = vshll.u32 %v6958_v55, %v5001_v46  ;;  %v1427_v1 = vsel %vm1425_vm6, %v1426_v18, %v5928_v37  ;;  %v1493_v4 = vshrl.u32 %v6964_v19, %v5284_v48  ;;  %v1495_v11 = vshll.u32 %v6964_v19, %v5001_v46 }
 0x1ef   :  { %v1496_v54 = vshrl.u32 %v6932_v39, %v5284_v48  ;;  %vm2931_vm10 = vcmp.eq.s32.totalorder %v5940_v7, 2  ;;  %v1337_v15 = vshll.u32 %v5874_v52, %v1335_v53  ;;  %v1338_v51 = vshrl.u32 %v1320_v29, %v1336_v21 }
 0x1f0   :  { %v1341_v44 = vadd.s32 127, %v1340_v16  ;;  %v1428_v47 = vadd.s32 %v1427_v1, %v1423_v12  ;;  %vm2928_vm11 = vcmp.eq.s32.totalorder %v5940_v7, 0  ;;  %v1479_v57 = vand.u32 8388607, %v1472_v23 }
 0x1f1   :  { %v1489_v5 = vshll.u32 %v6961_v3, %v5001_v46  ;;  %v1494_v37 = vor.u32 %v1493_v4, %v1492_v40  ;;  %v1497_v34 = vor.u32 %v1496_v54, %v1495_v11  ;;  %vm1255_vm12 = vcmp.lt.s32.totalorder %v5937_v42, 2 }
 0x1f2   :  { %vm1256_vm15 = vcmp.eq.s32.totalorder %v5937_v42, 0  ;;  %vm2927_vm0 = vcmp.lt.s32.totalorder %v5940_v7, 2  ;;  %v1339_v52 = vor.u32 %v1338_v51, %v1337_v15  ;;  %v1342_v45 = vshll.u32 %v1341_v44, 23 }
 0x1f3   :  { %v1429_v61 = vadd.s32 536870912, %v1428_v47  ;;  %vm1252_vm9 = vweird.f32 %v7015_v49  ;;  %vm1259_vm13 = vcmp.eq.s32.totalorder %v5937_v42, 2  ;;  %v1353_v29 = vsel %vm5944_vm8, 0, %v1351_v63 }
 0x1f4   :  { %v1488_v46 = vshrl.u32 %v6961_v3, %v5284_v48  ;;  %v1491_v53 = vor.u32 %v1490_v43, %v1489_v5  ;;  %v1343_v12 = vor.u32 4788187, %v1342_v45  ;;  %vm1504_vm4 = vcmp.lt.s32.totalorder %v4933_v38, 1 }
 0x1f5   :  { %v5984_v18 = vshrl.u32 %v1429_v61, 30  ;;  %vm1506_vm3 = vcmp.lt.s32.totalorder %v4933_v38, 3  ;;  %v1480_v21 = vor.u32 8388608, %v1479_v57  ;;  %vm1505_vm5 = vcmp.lt.s32.totalorder %v4933_v38, 2  ;;  %v4049_v40 = vpop.eup %4048 }
 0x1f6   :  { %v1516_v16 = vsel %vm1504_vm4, %v1494_v37, %v1497_v34  ;;  %v1518_v63 = vsel %vm1506_vm3, %v5546_v26, %v5795_v41  ;;  %v1344_v1 = vand.u32 2147483647, %v1343_v12  ;;  %v1346_v48 = vcvt.s32.f32 %v1339_v52  ;;  %v4051_v11 = vpop.eup %4050 }
 0x1f7   :  { %v1431_v43 = vshll.u32 %v5984_v18, 30  ;;  %v1509_v4 = vsel %vm1507_vm2, %v1497_v34, 2102212464  ;;  %v1260_v54 = vxor.u32 2147483648, %v4049_v40  ;;  %v1508_v15 = vsel %vm1504_vm4, %v1488_v46, %v1491_v53 }
 0x1f8   :  { %v1512_v51 = vsel %vm1504_vm4, %v1491_v53, %v1494_v37  ;;  %v1514_v44 = vsel %vm1506_vm3, %v1497_v34, %v5773_v6  ;;  %v1257_v57 = vxor.u32 2147483648, %v4051_v11  ;;  %v1347_v5 = vmul.f32 %v1346_v48, %v1344_v1 }
 0x1f9   :  { %v5999_v45 = vsub.s32 %v1428_v47, %v1431_v43  ;;  %v1519_v26 = vsel %vm1505_vm5, %v1516_v16, %v1518_v63  ;;  %v2933_v41 = vsel %vm2931_vm10, %v1260_v54, %v4051_v11  ;;  %v1261_v52 = vsel %vm1259_vm13, %v1260_v54, %v4051_v11 }
 0x1fa   :  { %v1510_v61 = vsel %vm1506_vm3, %v1494_v37, %v1509_v4  ;;  %v1520_v46 = vshll.u32 %v1480_v21, 8  ;;  %v2930_v6 = vsel %vm2928_vm11, %v4049_v40, %v1257_v57  ;;  %v1258_v47 = vsel %vm1256_vm15, %v4049_v40, %v1257_v57 }
 0x1fb   :  { %v1348_v34 = vxor.u32 2147483648, %v1347_v5  ;;  %v1434_v53 = vsub.s32 0, %v5999_v45  ;;  %v2934_v12 = vsel %vm2927_vm0, %v2930_v6, %v2933_v41  ;;  %v1262_v16 = vsel %vm1255_vm12, %v1258_v47, %v1261_v52 }
 0x1fc   :  { %v6018_v63 = vmul.u32.u64.low %v1520_v46, %v1519_v26  ;;  %v6019_v1 = vmul.u32.u64.high %v1520_v46, %v1519_v26, %v6018_v63  ;;  %v2935_v37 = vsel %vm1252_vm9, nan, %v2934_v12  ;;  %v1263_v21 = vsel %vm1252_vm9, nan, %v1262_v16 }
 0x1fd   :  { %v1349_v40 = vsel %vm1266_vm1, %v1348_v34, %v1347_v5  ;;  %v3848_v48 = vmin.u32 %v1434_v53, %v5999_v45  ;;  %v6030_v7 = vshrl.u32 %v6930_v27, %v5898_v60  ;;  %v6034_v42 = vshll.u32 %v6932_v39, %v5807_v10  ;;  %3689 = vrot.lane.b32.xlu0 %v2935_v37, %s4092_s15  ;;  %v7053_v53 = vld [vmem:[#allocation50_spill] sm:$0xff] }
 0x1fe   :  { %2001 = vst.msk [vmem:[%s6810_s2 + $0x40] sm:$0xff] %vm1992_vm7, %v1263_v21  ;;  %v1352_v49 = vsel %vm5944_vm8, %v7023_v20, %v1349_v40  ;;  %v1515_v43 = vsel %vm1505_vm5, %v1512_v51, %v1514_v44  ;;  %v6048_v4 = vshrl.u32 %v6926_v32, %v5925_v13  ;;  %v1357_v11 = vadd.s32 3, %v1353_v29  ;;  %v7049_v44 = vld [vmem:[#allocation9_spill] sm:$0xff] }
 0x1ff   :  { %4052 = vcosq.f32 %v1352_v49  ;;  %v1436_v54 = vclz %v3848_v48  ;;  %v6052_v57 = vor.u32 %v5933_v59, %v5902_v31  ;;  %v1454_v5 = vsub.s32 4, %v5984_v18 }
 0x200   :  { %4054 = vsinq.f32 %v1352_v49  ;;  %v1511_v56 = vsel %vm1505_vm5, %v1508_v15, %v1510_v61  ;;  %v6057_v41 = vmul.u32.u64.low %v1520_v46, %v1515_v43  ;;  %v6058_v51 = vmul.u32.u64.high %v1520_v46, %v1515_v43, %v6057_v41 }
 0x201   :  { %v3849_v26 = vadd.s32 4294967294, %v1436_v54  ;;  %v1576_v52 = vand.u32 2147483647, %v7049_v44  ;;  %v1711_v6 = vor.u32 %v6030_v7, %v5919_v50  ;;  %v6064_v47 = vand.u32 3, %v1353_v29 }
 0x202   :  { %v7050_v31 = vand.u32 2147483647, %v7034_v58  ;;  %vm1370_vm8 = vcmp.lt.s32.totalorder %v7034_v58, 0  ;;  %v6073_v38 = vand.u32 3, %v1357_v11  ;;  %v1424_v15 = vadd.s32 %v5927_v14, %v5915_v35 }
 0x203   :  { %vm3850_vm1 = vcmp.lt.s32.totalorder %v3849_v26, 0  ;;  %v1527_v61 = vmul.u32 %v1520_v46, %v1511_v56  ;;  %v1455_v29 = vsel %vm1370_vm8, %v1454_v5, %v5984_v18  ;;  %vm1529_vm14 = vc.u32 %v6019_v1, %v6057_v41  ;;  %v7054_v46 = vld [vmem:[#allocation48_spill] sm:$0xff] }
 0x204   :  { %vm6068_vm2 = vcmp.le.f32.partialorder %v7050_v31, 0.7853982  ;;  %v1439_v34 = vsel %vm3850_vm1, 0, %v3849_v26  ;;  %v1597_v12 = vshrl.u32 %v6964_v19, %v7053_v53  ;;  %v1530_v37 = vadd.s32 1, %v6058_v51 }
 0x205   :  { %v1440_v16 = vsub.s32 32, %v1439_v34  ;;  %v1444_v63 = vsub.s32 4294967266, %v1439_v34  ;;  %v1583_v35 = vand.u32 8388607, %v1576_v52  ;;  %v1594_v14 = vshrl.u32 %v6958_v55, %v7053_v53 }
 0x206   :  { %v1596_v21 = vshll.u32 %v6958_v55, %v7054_v46  ;;  %v1599_v18 = vshll.u32 %v6964_v19, %v7054_v46  ;;  %v1600_v40 = vshrl.u32 %v6932_v39, %v7053_v53  ;;  %v1441_v48 = vshll.u32 %v5999_v45, %v1439_v34 }
 0x207   :  { %v1442_v49 = vshrl.u32 %v1424_v15, %v1440_v16  ;;  %v1445_v43 = vadd.s32 127, %v1444_v63  ;;  %v1531_v11 = vsel %vm1529_vm14, %v1530_v37, %v6058_v51  ;;  %vm3030_vm6 = vcmp.lt.s32.totalorder %v6064_v47, 2 }
 0x208   :  { %v1532_v54 = vadd.s32 %v1531_v11, %v1527_v61  ;;  %v1593_v5 = vshll.u32 %v6961_v3, %v7054_v46  ;;  %v1598_v56 = vor.u32 %v1597_v12, %v1596_v21  ;;  %v1601_v26 = vor.u32 %v1600_v40, %v1599_v18 }
 0x209   :  { %vm1356_vm10 = vweird.f32 %v7023_v20  ;;  %vm3031_vm11 = vcmp.eq.s32.totalorder %v6064_v47, 0  ;;  %vm3034_vm12 = vcmp.eq.s32.totalorder %v6064_v47, 2  ;;  %v1443_v31 = vor.u32 %v1442_v49, %v1441_v48 }
 0x20a   :  { %v1446_v45 = vshll.u32 %v1445_v43, 23  ;;  %vm1359_vm15 = vcmp.lt.s32.totalorder %v6073_v38, 2  ;;  %vm1360_vm0 = vcmp.eq.s32.totalorder %v6073_v38, 0  ;;  %v1533_v51 = vadd.s32 536870912, %v1532_v54 }
 0x20b   :  { %v1595_v15 = vor.u32 %v1594_v14, %v1593_v5  ;;  %vm1363_vm9 = vcmp.eq.s32.totalorder %v6073_v38, 2  ;;  %v1457_v34 = vsel %vm6068_vm2, 0, %v1455_v29  ;;  %vm1608_vm13 = vcmp.lt.s32.totalorder %v4734_v62, 1 }
 0x20c   :  { %v1447_v61 = vor.u32 4788187, %v1446_v45  ;;  %v4053_v12 = vpop.eup %4052  ;;  %v6109_v16 = vshrl.u32 %v1533_v51, 30  ;;  %v1584_v63 = vor.u32 8388608, %v1583_v35  ;;  %vm1610_vm4 = vcmp.lt.s32.totalorder %v4734_v62, 3 }
 0x20d   :  { %v1620_v37 = vsel %vm1608_vm13, %v1598_v56, %v1601_v26  ;;  %v4055_v46 = vpop.eup %4054  ;;  %vm1715_vm3 = vcmp.lt.s32.totalorder %v5802_v25, 4  ;;  %v1364_v14 = vxor.u32 2147483648, %v4053_v12  ;;  %v1450_v18 = vcvt.s32.f32 %v1443_v31 }
 0x20e   :  { %v1448_v21 = vand.u32 2147483647, %v1447_v61  ;;  %v1622_v29 = vsel %vm1610_vm4, %v4903_v24, %v5275_v2  ;;  %v1361_v40 = vxor.u32 2147483648, %v4055_v46  ;;  %v1535_v48 = vshll.u32 %v6109_v16, 30 }
 0x20f   :  { %vm1609_vm5 = vcmp.lt.s32.totalorder %v4734_v62, 2  ;;  %v1616_v35 = vsel %vm1608_vm13, %v1595_v15, %v1598_v56  ;;  %v1365_v49 = vsel %vm1363_vm9, %v1364_v14, %v4055_v46  ;;  %v3036_v43 = vsel %vm3034_vm12, %v1364_v14, %v4055_v46 }
 0x210   :  { %v1451_v11 = vmul.f32 %v1450_v18, %v1448_v21  ;;  %v1618_v5 = vsel %vm1610_vm4, %v1601_v26, %v5240_v33  ;;  %v1362_v24 = vsel %vm1360_vm0, %v4053_v12, %v1361_v40  ;;  %v3033_v2 = vsel %vm3031_vm11, %v4053_v12, %v1361_v40 }
 0x211   :  { %v6134_v31 = vsub.s32 %v1532_v54, %v1535_v48  ;;  %v1623_v45 = vsel %vm1609_vm5, %v1620_v37, %v1622_v29  ;;  %v1366_v51 = vsel %vm1359_vm15, %v1362_v24, %v1365_v49  ;;  %v3037_v61 = vsel %vm3030_vm6, %v3033_v2, %v3036_v43  ;;  %v7056_v48 = vld [vmem:[#allocation17_spill] sm:$0xff] }
 0x212   :  { %v1452_v46 = vxor.u32 2147483648, %v1451_v11  ;;  %v1624_v14 = vshll.u32 %v1584_v63, 8  ;;  %v1367_v33 = vsel %vm1356_vm10, nan, %v1366_v51  ;;  %v3038_v21 = vsel %vm1356_vm10, nan, %v3037_v61 }
 0x213   :  { %v1538_v54 = vsub.s32 0, %v6134_v31  ;;  %vm7055_vm1 = vcmp.lt.s32.totalorder %v4734_v62, 4  ;;  %2002 = vst.msk [vmem:[%s6810_s2 + $0x48] sm:$0xff] %vm1992_vm7, %v1367_v33  ;;  %3691 = vrot.lane.b32.xlu1 %v3038_v21, %s4092_s15  ;;  %v1592_v38 = vshrl.u32 %v6961_v3, %v7053_v53  ;;  %v1461_v37 = vadd.s32 3, %v1457_v34 }
 0x214   :  { %v1613_v12 = vsel %vm7055_vm1, %v1601_v26, 2102212464  ;;  %v1453_v47 = vsel %vm1370_vm8, %v1452_v46, %v1451_v11  ;;  %v6158_v20 = vmul.u32.u64.low %v1624_v14, %v1623_v45  ;;  %v6159_v63 = vmul.u32.u64.high %v1624_v14, %v1623_v45, %v6158_v20  ;;  %v6211_v45 = vpop.permute.xlu0 %3738 }
 0x215   :  { %v1456_v26 = vsel %vm6068_vm2, %v7034_v58, %v1453_v47  ;;  %v3852_v18 = vmin.u32 %v1538_v54, %v6134_v31  ;;  %v1619_v29 = vsel %vm1609_vm5, %v1616_v35, %v1618_v5  ;;  %v1612_v40 = vsel %vm1608_vm13, %v1592_v38, %v1595_v15 }
 0x216   :  { %4056 = vcosq.f32 %v1456_v26  ;;  %v1614_v53 = vsel %vm1610_vm4, %v1598_v56, %v1613_v12  ;;  %v1680_v49 = vand.u32 2147483647, %v7056_v48  ;;  %v1721_v59 = vsel %vm1715_vm3, %v6052_v57, 920167782 }
 0x217   :  { %v6177_v43 = vshrl.u32 %v6930_v27, %v5925_v13  ;;  %4058 = vsinq.f32 %v1456_v26  ;;  %v1540_v11 = vclz %v3852_v18  ;;  %v1725_v15 = vsel %vm1715_vm3, %v1711_v6, 1326507024 }
 0x218   :  { %v6184_v35 = vand.u32 3, %v1457_v34  ;;  %v6186_v56 = vmul.u32.u64.low %v1624_v14, %v1619_v29  ;;  %v6187_v5 = vmul.u32.u64.high %v1624_v14, %v1619_v29, %v6186_v56  ;;  %v6190_v24 = vand.u32 3, %v1461_v37  ;;  %v6225_v37 = vpop.permute.xlu1 %3740 }
 0x219   :  { %vm1474_vm2 = vcmp.lt.s32.totalorder %v7048_v36, 0  ;;  %v1528_v27 = vadd.s32 %v6057_v41, %v6019_v1  ;;  %v3853_v2 = vadd.s32 4294967294, %v1540_v11  ;;  %v1615_v50 = vsel %vm1609_vm5, %v1612_v40, %v1614_v53  ;;  %v6235_v53 = vpop.permute.xlu0 %3742 }
 0x21a   :  { %vm1633_vm8 = vc.u32 %v6159_v63, %v6186_v56  ;;  %v1687_v7 = vand.u32 8388607, %v1680_v49  ;;  %v1697_v6 = vshll.u32 %v6961_v3, %v5804_v8  ;;  %v1698_v34 = vshrl.u32 %v6958_v55, %v5898_v60 }
 0x21b   :  { %vm3854_vm14 = vcmp.lt.s32.totalorder %v3853_v2, 0  ;;  %v1700_v1 = vshll.u32 %v6958_v55, %v5804_v8  ;;  %v1701_v62 = vshrl.u32 %v6964_v19, %v5898_v60  ;;  %v1703_v41 = vshll.u32 %v6964_v19, %v5804_v8 }
 0x21c   :  { %v1543_v51 = vsel %vm3854_vm14, 0, %v3853_v2  ;;  %v1634_v61 = vadd.s32 1, %v6187_v5  ;;  %v1699_v46 = vor.u32 %v1698_v34, %v1697_v6  ;;  %v1704_v33 = vshrl.u32 %v6932_v39, %v5898_v60 }
 0x21d   :  { %vm3137_vm6 = vcmp.eq.s32.totalorder %v6184_v35, 2  ;;  %v1544_v21 = vsub.s32 32, %v1543_v51  ;;  %v1548_v54 = vsub.s32 4294967266, %v1543_v51  ;;  %v1631_v12 = vmul.u32 %v1624_v14, %v1615_v50 }
 0x21e   :  { %v1702_v47 = vor.u32 %v1701_v62, %v1700_v1  ;;  %vm1464_vm10 = vcmp.eq.s32.totalorder %v6190_v24, 0  ;;  %vm3134_vm11 = vcmp.eq.s32.totalorder %v6184_v35, 0  ;;  %v1545_v8 = vshll.u32 %v6134_v31, %v1543_v51 }
 0x21f   :  { %v1558_v38 = vsub.s32 4, %v6109_v16  ;;  %v1635_v20 = vsel %vm1633_vm8, %v1634_v61, %v6187_v5  ;;  %v1705_v26 = vor.u32 %v1704_v33, %v1703_v41  ;;  %vm1463_vm12 = vcmp.lt.s32.totalorder %v6190_v24, 2 }
 0x220   :  { %vm3133_vm15 = vcmp.lt.s32.totalorder %v6184_v35, 2  ;;  %v1546_v14 = vshrl.u32 %v1528_v27, %v1544_v21  ;;  %v1549_v18 = vadd.s32 127, %v1548_v54  ;;  %v1636_v29 = vadd.s32 %v1635_v20, %v1631_v12 }
 0x221   :  { %vm1712_vm0 = vcmp.lt.s32.totalorder %v5802_v25, 1  ;;  %vm1460_vm9 = vweird.f32 %v7034_v58  ;;  %vm1467_vm13 = vcmp.eq.s32.totalorder %v6190_v24, 2  ;;  %v1688_v31 = vor.u32 8388608, %v1687_v7 }
 0x222   :  { %vm1714_vm4 = vcmp.lt.s32.totalorder %v5802_v25, 3  ;;  %v1720_v40 = vsel %vm1712_vm0, %v1699_v46, %v1702_v47  ;;  %vm6239_vm5 = vcmp.le.f32.partialorder %v1472_v23, 0.7853982  ;;  %v1547_v5 = vor.u32 %v1546_v14, %v1545_v8  ;;  %v6275_v14 = vpop.permute.xlu0 %3746 }
 0x223   :  { %v1550_v27 = vshll.u32 %v1549_v18, 23  ;;  %v1637_v2 = vadd.s32 536870912, %v1636_v29  ;;  %v1722_v50 = vsel %vm1714_vm4, %v1705_v26, %v1721_v59  ;;  %v1559_v7 = vsel %vm1474_vm2, %v1558_v38, %v6109_v16  ;;  %v4057_v34 = vpop.eup %4056 }
 0x224   :  { %vm1713_vm1 = vcmp.lt.s32.totalorder %v5802_v25, 2  ;;  %v1724_v6 = vsel %vm1712_vm0, %v1702_v47, %v1705_v26  ;;  %v1726_v23 = vsel %vm1714_vm4, %v6052_v57, %v1725_v15  ;;  %v1696_v59 = vshrl.u32 %v6961_v3, %v5898_v60  ;;  %v4059_v16 = vpop.eup %4058  ;;  %v6264_v57 = vpop.permute.xlu1 %3744 }
 0x225   :  { %v1551_v1 = vor.u32 4788187, %v1550_v27  ;;  %v6254_v62 = vshrl.u32 %v1637_v2, 30  ;;  %v1727_v41 = vsel %vm1713_vm1, %v1724_v6, %v1726_v23  ;;  %v1468_v51 = vxor.u32 2147483648, %v4057_v34 }
 0x226   :  { %v1717_v61 = vsel %vm1715_vm3, %v1705_v26, 2102212464  ;;  %v1723_v33 = vsel %vm1713_vm1, %v1720_v40, %v1722_v50  ;;  %v1728_v21 = vshll.u32 %v1688_v31, 8  ;;  %vm1819_vm8 = vcmp.lt.s32.totalorder %v5287_v9, 4 }
 0x227   :  { %v1465_v15 = vxor.u32 2147483648, %v4059_v16  ;;  %v1552_v54 = vand.u32 2147483647, %v1551_v1  ;;  %v1554_v12 = vcvt.s32.f32 %v1547_v5  ;;  %v1639_v60 = vshll.u32 %v6254_v62, 30 }
 0x228   :  { %v3139_v8 = vsel %vm3137_vm6, %v1468_v51, %v4059_v16  ;;  %v1469_v38 = vsel %vm1467_vm13, %v1468_v51, %v4059_v16  ;;  %v6272_v20 = vmul.u32.u64.low %v1728_v21, %v1727_v41  ;;  %v6273_v26 = vmul.u32.u64.high %v1728_v21, %v1727_v41, %v6272_v20  ;;  %v6309_v58 = vpop.permute.xlu1 %3748 }
 0x229   :  { %v3136_v18 = vsel %vm3134_vm11, %v4057_v34, %v1465_v15  ;;  %v1466_v31 = vsel %vm1464_vm10, %v4057_v34, %v1465_v15  ;;  %v1555_v40 = vmul.f32 %v1554_v12, %v1552_v54  ;;  %v6281_v5 = vsub.s32 %v1636_v29, %v1639_v60 }
 0x22a   :  { %v3140_v27 = vsel %vm3133_vm15, %v3136_v18, %v3139_v8  ;;  %v1470_v2 = vsel %vm1463_vm12, %v1466_v31, %v1469_v38  ;;  %v1716_v50 = vsel %vm1712_vm0, %v1696_v59, %v1699_v46  ;;  %v1718_v6 = vsel %vm1714_vm4, %v1702_v47, %v1717_v61  ;;  %v7059_v31 = vld [vmem:[#allocation15_spill] sm:$0xff] }
 0x22b   :  { %v3141_v23 = vsel %vm1460_vm9, nan, %v3140_v27  ;;  %v1471_v34 = vsel %vm1460_vm9, nan, %v1470_v2  ;;  %v1556_v29 = vxor.u32 2147483648, %v1555_v40  ;;  %v1642_v1 = vsub.s32 0, %v6281_v5 }
 0x22c   :  { %v1917_v35 = vshll.u32 %v6926_v32, %v5807_v10  ;;  %3693 = vrot.lane.b32.xlu0 %v3141_v23, %s4092_s15  ;;  %2003 = vst.msk [vmem:[%s6810_s2 + $0x50] sm:$0xff] %vm1992_vm7, %v1471_v34  ;;  %v1561_v24 = vsel %vm6239_vm5, 0, %v1559_v7  ;;  %v6305_v46 = vmul.u32.u64.low %v1728_v21, %v1723_v33  ;;  %v6306_v47 = vmul.u32.u64.high %v1728_v21, %v1723_v33, %v6305_v46  ;;  %v6354_v8 = vpop.permute.xlu1 %3752 }
 0x22d   :  { %v1815_v59 = vor.u32 %v5552_v17, %v5390_v28  ;;  %v6314_v32 = vshrl.u32 %v5781_v22, 5  ;;  %v1557_v41 = vsel %vm1474_vm2, %v1556_v29, %v1555_v40  ;;  %v3856_v16 = vmin.u32 %v1642_v1, %v6281_v5  ;;  %v6329_v17 = vpop.permute.xlu0 %3750  ;;  %v7060_v1 = vld [vmem:[#allocation22_spill] sm:$0xff] }
 0x22e   :  { %v6321_v7 = vor.u32 %v6048_v4, %v6034_v42  ;;  %v1919_v51 = vor.u32 %v6177_v43, %v1917_v35  ;;  %v1560_v61 = vsel %vm6239_vm5, %v7048_v36, %v1557_v41  ;;  %v1719_v28 = vsel %vm1713_vm1, %v1716_v50, %v1718_v6 }
 0x22f   :  { %4060 = vcosq.f32 %v1560_v61  ;;  %v1565_v22 = vadd.s32 3, %v1561_v24  ;;  %v1644_v33 = vclz %v3856_v16  ;;  %vm1737_vm3 = vc.u32 %v6273_v26, %v6305_v46 }
 0x230   :  { %v6336_v42 = vsel %vm1819_vm8, %v5663_v0, 920167782  ;;  %4062 = vsinq.f32 %v1560_v61  ;;  %v1738_v4 = vadd.s32 1, %v6306_v47  ;;  %v1829_v25 = vsel %vm1819_vm8, %v1815_v59, 1326507024 }
 0x231   :  { %vm1923_vm2 = vcmp.lt.s32.totalorder %v6314_v32, 4  ;;  %v3857_v43 = vadd.s32 4294967294, %v1644_v33  ;;  %v1735_v11 = vmul.u32 %v1728_v21, %v1719_v28  ;;  %v6351_v12 = vand.u32 3, %v1561_v24  ;;  %v6364_v2 = vpop.permute.xlu0 %3754 }
 0x232   :  { %v6345_v15 = vsel %vm1923_vm2, %v6321_v7, 920167782  ;;  %v6349_v54 = vsel %vm1923_vm2, %v1919_v51, 1326507024  ;;  %v1739_v60 = vsel %vm1737_vm3, %v1738_v4, %v6306_v47  ;;  %v6356_v38 = vand.u32 3, %v1565_v22  ;;  %v6385_v22 = vpop.permute.xlu1 %3756 }
 0x233   :  { %vm1578_vm14 = vcmp.lt.s32.totalorder %v7049_v44, 0  ;;  %vm3858_vm6 = vcmp.lt.s32.totalorder %v3857_v43, 0  ;;  %v1740_v21 = vadd.s32 %v1739_v60, %v1735_v11  ;;  %v1632_v20 = vadd.s32 %v6186_v56, %v6159_v63 }
 0x234   :  { %v1647_v18 = vsel %vm3858_vm6, 0, %v3857_v43  ;;  %v1784_v40 = vand.u32 2147483647, %v7059_v31  ;;  %v1805_v27 = vshrl.u32 %v6964_v19, %v5302_v30  ;;  %v1662_v23 = vsub.s32 4, %v6254_v62 }
 0x235   :  { %v1648_v50 = vsub.s32 32, %v1647_v18  ;;  %v1652_v6 = vsub.s32 4294967266, %v1647_v18  ;;  %v1741_v34 = vadd.s32 536870912, %v1740_v21  ;;  %vm3240_vm10 = vcmp.eq.s32.totalorder %v6351_v12, 2 }
 0x236   :  { %v1802_v29 = vshrl.u32 %v6958_v55, %v5302_v30  ;;  %v1804_v63 = vshll.u32 %v6958_v55, %v7060_v1  ;;  %v1807_v56 = vshll.u32 %v6964_v19, %v7060_v1  ;;  %v1808_v35 = vshrl.u32 %v6932_v39, %v5302_v30 }
 0x237   :  { %vm3237_vm11 = vcmp.eq.s32.totalorder %v6351_v12, 0  ;;  %v1649_v24 = vshll.u32 %v6281_v5, %v1647_v18  ;;  %v1650_v47 = vshrl.u32 %v1632_v20, %v1648_v50  ;;  %v1653_v59 = vadd.s32 127, %v1652_v6  ;;  %v6401_v20 = vpop.permute.xlu0 %3758 }
 0x238   :  { %v6378_v41 = vshrl.u32 %v1741_v34, 30  ;;  %vm3236_vm12 = vcmp.lt.s32.totalorder %v6351_v12, 2  ;;  %v1791_v16 = vand.u32 8388607, %v1784_v40  ;;  %v1801_v51 = vshll.u32 %v6961_v3, %v7060_v1 }
 0x239   :  { %v1806_v61 = vor.u32 %v1805_v27, %v1804_v63  ;;  %v1809_v28 = vor.u32 %v1808_v35, %v1807_v56  ;;  %vm1564_vm15 = vweird.f32 %v7048_v36  ;;  %vm1567_vm0 = vcmp.lt.s32.totalorder %v6356_v38, 2 }
 0x23a   :  { %v1651_v5 = vor.u32 %v1650_v47, %v1649_v24  ;;  %v1654_v33 = vshll.u32 %v1653_v59, 23  ;;  %v1743_v4 = vshll.u32 %v6378_v41, 30  ;;  %vm1568_vm9 = vcmp.eq.s32.totalorder %v6356_v38, 0  ;;  %v6421_v24 = vpop.permute.xlu1 %3760 }
 0x23b   :  { %vm1571_vm13 = vcmp.eq.s32.totalorder %v6356_v38, 2  ;;  %vm6394_vm4 = vcmp.le.f32.partialorder %v1576_v52, 0.7853982  ;;  %v1663_v11 = vsel %vm1578_vm14, %v1662_v23, %v6254_v62  ;;  %v1803_v60 = vor.u32 %v1802_v29, %v1801_v51 }
 0x23c   :  { %v1655_v18 = vor.u32 4788187, %v1654_v33  ;;  %v6403_v27 = vsub.s32 %v1740_v21, %v1743_v4  ;;  %vm1816_vm5 = vcmp.lt.s32.totalorder %v5287_v9, 1  ;;  %vm1818_vm1 = vcmp.lt.s32.totalorder %v5287_v9, 3  ;;  %v4061_v50 = vpop.eup %4060  ;;  %v6436_v33 = vpop.permute.xlu0 %3762 }
 0x23d   :  { %v1792_v6 = vor.u32 8388608, %v1791_v16  ;;  %v1800_v52 = vshrl.u32 %v6961_v3, %v5302_v30  ;;  %v1828_v34 = vsel %vm1816_vm5, %v1806_v61, %v1809_v28  ;;  %v1830_v62 = vsel %vm1818_vm1, %v5663_v0, %v1829_v25  ;;  %v4063_v23 = vpop.eup %4062 }
 0x23e   :  { %v1572_v29 = vxor.u32 2147483648, %v4061_v50  ;;  %v1656_v21 = vand.u32 2147483647, %v1655_v18  ;;  %v1658_v1 = vcvt.s32.f32 %v1651_v5  ;;  %v1746_v63 = vsub.s32 0, %v6403_v27 }
 0x23f   :  { %v1569_v56 = vxor.u32 2147483648, %v4063_v23  ;;  %vm1817_vm3 = vcmp.lt.s32.totalorder %v5287_v9, 2  ;;  %v1824_v35 = vsel %vm1816_vm5, %v1803_v60, %v1806_v61  ;;  %v1826_v30 = vsel %vm1818_vm1, %v1809_v28, %v6336_v42 }
 0x240   :  { %v1573_v0 = vsel %vm1571_vm13, %v1572_v29, %v4063_v23  ;;  %v3242_v25 = vsel %vm3240_vm10, %v1572_v29, %v4063_v23  ;;  %v1659_v47 = vmul.f32 %v1658_v1, %v1656_v21  ;;  %v3860_v59 = vmin.u32 %v1746_v63, %v6403_v27 }
 0x241   :  { %v1570_v16 = vsel %vm1568_vm9, %v4061_v50, %v1569_v56  ;;  %v3239_v51 = vsel %vm3237_vm11, %v4061_v50, %v1569_v56  ;;  %v1821_v42 = vsel %vm1819_vm8, %v1809_v28, 2102212464  ;;  %v1831_v5 = vsel %vm1817_vm3, %v1828_v34, %v1830_v62 }
 0x242   :  { %v1574_v4 = vsel %vm1567_vm0, %v1570_v16, %v1573_v0  ;;  %v3243_v18 = vsel %vm3236_vm12, %v3239_v51, %v3242_v25  ;;  %v1660_v23 = vxor.u32 2147483648, %v1659_v47  ;;  %v1748_v29 = vclz %v3860_v59  ;;  %v6475_v0 = vpop.permute.xlu0 %3673  ;;  %v7065_v16 = vld [vmem:[#allocation18_spill] sm:$0xff] }
 0x243   :  { %v1575_v21 = vsel %vm1564_vm15, nan, %v1574_v4  ;;  %v3244_v50 = vsel %vm1564_vm15, nan, %v3243_v18  ;;  %v1827_v28 = vsel %vm1817_vm3, %v1824_v35, %v1826_v30  ;;  %v1832_v34 = vshll.u32 %v1792_v6, 8  ;;  %v6467_v35 = vpop.permute.xlu1 %3764 }
 0x244   :  { %2004 = vst.msk [vmem:[%s6810_s2 + $0x58] sm:$0xff] %vm1992_vm7, %v1575_v21  ;;  %3695 = vrot.lane.b32.xlu1 %v3244_v50, %s4092_s15  ;;  %v1661_v12 = vsel %vm1578_vm14, %v1660_v23, %v1659_v47  ;;  %v1665_v38 = vsel %vm6394_vm4, 0, %v1663_v11  ;;  %v3861_v62 = vadd.s32 4294967294, %v1748_v29  ;;  %v1820_v36 = vsel %vm1816_vm5, %v1800_v52, %v1803_v60 }
 0x245   :  { %v1664_v6 = vsel %vm6394_vm4, %v7049_v44, %v1661_v12  ;;  %v1822_v1 = vsel %vm1818_vm1, %v1806_v61, %v1821_v42  ;;  %v6464_v63 = vmul.u32.u64.low %v1832_v34, %v1831_v5  ;;  %v6465_v56 = vmul.u32.u64.high %v1832_v34, %v1831_v5, %v6464_v63 }
 0x246   :  { %4064 = vcosq.f32 %v1664_v6  ;;  %vm3862_vm8 = vcmp.lt.s32.totalorder %v3861_v62, 0  ;;  %v6469_v30 = vmul.u32.u64.low %v1832_v34, %v1827_v28  ;;  %v6470_v11 = vmul.u32.u64.high %v1832_v34, %v1827_v28, %v6469_v30 }
 0x247   :  { %4066 = vsinq.f32 %v1664_v6  ;;  %v1669_v60 = vadd.s32 3, %v1665_v38  ;;  %v1736_v43 = vadd.s32 %v6305_v46, %v6273_v26  ;;  %v1751_v52 = vsel %vm3862_vm8, 0, %v3861_v62  ;;  %v6500_v21 = vpop.permute.xlu1 %3675 }
 0x248   :  { %vm6479_vm14 = vcmp.le.f32.partialorder %v1680_v49, 0.7853982  ;;  %v1752_v25 = vsub.s32 32, %v1751_v52  ;;  %v1756_v47 = vsub.s32 4294967266, %v1751_v52  ;;  %v1823_v59 = vsel %vm1817_vm3, %v1820_v36, %v1822_v1  ;;  %v6511_v36 = vpop.permute.xlu0 %3677 }
 0x249   :  { %v1888_v51 = vand.u32 2147483647, %v7065_v16  ;;  %v6486_v42 = vand.u32 3, %v1665_v38  ;;  %vm1682_vm6 = vcmp.lt.s32.totalorder %v7056_v48, 0  ;;  %v1766_v26 = vsub.s32 4, %v6378_v41 }
 0x24a   :  { %vm1841_vm10 = vc.u32 %v6465_v56, %v6469_v30  ;;  %v1753_v49 = vshll.u32 %v6403_v27, %v1751_v52  ;;  %v1754_v46 = vshrl.u32 %v1736_v43, %v1752_v25  ;;  %v1757_v5 = vadd.s32 127, %v1756_v47 }
 0x24b   :  { %v1842_v4 = vadd.s32 1, %v6470_v11  ;;  %v6494_v18 = vand.u32 3, %v1669_v60  ;;  %v1839_v9 = vmul.u32 %v1832_v34, %v1823_v59  ;;  %v1895_v23 = vand.u32 8388607, %v1888_v51  ;;  %v3680_v43 = vpop.permute.xlu1 %3679 }
 0x24c   :  { %v1906_v29 = vshrl.u32 %v6958_v55, %v5925_v13  ;;  %v1755_v50 = vor.u32 %v1754_v46, %v1753_v49  ;;  %v1758_v28 = vshll.u32 %v1757_v5, 23  ;;  %v1909_v27 = vshrl.u32 %v6964_v19, %v5925_v13 }
 0x24d   :  { %v1843_v12 = vsel %vm1841_vm10, %v1842_v4, %v6470_v11  ;;  %vm3343_vm11 = vcmp.eq.s32.totalorder %v6486_v42, 2  ;;  %v1767_v34 = vsel %vm1682_vm6, %v1766_v26, %v6378_v41  ;;  %v1908_v62 = vshll.u32 %v6958_v55, %v5807_v10 }
 0x24e   :  { %v1844_v38 = vadd.s32 %v1843_v12, %v1839_v9  ;;  %vm3340_vm12 = vcmp.eq.s32.totalorder %v6486_v42, 0  ;;  %v1759_v6 = vor.u32 4788187, %v1758_v28  ;;  %v1905_v1 = vshll.u32 %v6961_v3, %v5807_v10  ;;  %v3682_v9 = vpop.permute.xlu0 %3681 }
 0x24f   :  { %v1911_v63 = vshll.u32 %v6964_v19, %v5807_v10  ;;  %v1912_v11 = vshrl.u32 %v6932_v39, %v5925_v13  ;;  %vm1671_vm15 = vcmp.lt.s32.totalorder %v6494_v18, 2  ;;  %vm3339_vm0 = vcmp.lt.s32.totalorder %v6486_v42, 2 }
 0x250   :  { %v1845_v41 = vadd.s32 536870912, %v1844_v38  ;;  %v1896_v55 = vor.u32 8388608, %v1895_v23  ;;  %v1910_v60 = vor.u32 %v1909_v27, %v1908_v62  ;;  %vm1668_vm9 = vweird.f32 %v7049_v44 }
 0x251   :  { %v1760_v52 = vand.u32 2147483647, %v1759_v6  ;;  %v1762_v25 = vcvt.s32.f32 %v1755_v50  ;;  %v1907_v47 = vor.u32 %v1906_v29, %v1905_v1  ;;  %v1913_v59 = vor.u32 %v1912_v11, %v1911_v63 }
 0x252   :  { %vm1672_vm13 = vcmp.eq.s32.totalorder %v6494_v18, 0  ;;  %vm1675_vm4 = vcmp.eq.s32.totalorder %v6494_v18, 2  ;;  %v6527_v39 = vsel %vm6479_vm14, 0, %v1767_v34  ;;  %v6529_v19 = vshrl.u32 %v1845_v41, 30 }
 0x253   :  { %v1763_v10 = vmul.f32 %v1762_v25, %v1760_v52  ;;  %v1904_v26 = vshrl.u32 %v6961_v3, %v5925_v13  ;;  %vm1920_vm5 = vcmp.lt.s32.totalorder %v6314_v32, 1  ;;  %vm1922_vm1 = vcmp.lt.s32.totalorder %v6314_v32, 3  ;;  %v4065_v49 = vpop.eup %4064 }
 0x254   :  { %v1847_v46 = vshll.u32 %v6529_v19, 30  ;;  %vm1921_vm3 = vcmp.lt.s32.totalorder %v6314_v32, 2  ;;  %v1932_v5 = vsel %vm1920_vm5, %v1910_v60, %v1913_v59  ;;  %v1934_v4 = vsel %vm1922_vm1, %v6321_v7, %v6349_v54  ;;  %v4067_v23 = vpop.eup %4066  ;;  %v3684_v7 = vpop.permute.xlu1 %3683 }
 0x255   :  { %v1676_v3 = vxor.u32 2147483648, %v4065_v49  ;;  %v1764_v13 = vxor.u32 2147483648, %v1763_v10  ;;  %v1928_v29 = vsel %vm1920_vm5, %v1907_v47, %v1910_v60  ;;  %v6545_v50 = vshll.u32 %v1896_v55, 8 }
 0x256   :  { %v1673_v28 = vxor.u32 2147483648, %v4067_v23  ;;  %v6547_v12 = vsub.s32 %v1844_v38, %v1847_v46  ;;  %v1925_v27 = vsel %vm1923_vm2, %v1913_v59, 2102212464  ;;  %v1930_v34 = vsel %vm1922_vm1, %v1913_v59, %v6345_v15 }
 0x257   :  { %v3345_v54 = vsel %vm3343_vm11, %v1676_v3, %v4067_v23  ;;  %v1677_v62 = vsel %vm1675_vm4, %v1676_v3, %v4067_v23  ;;  %v1765_v6 = vsel %vm1682_vm6, %v1764_v13, %v1763_v10  ;;  %v1935_v38 = vsel %vm1921_vm3, %v1932_v5, %v1934_v4  ;;  %v3686_v10 = vpop.permute.xlu0 %3685 }
 0x258   :  { %v3342_v1 = vsel %vm3340_vm12, %v4065_v49, %v1673_v28  ;;  %v1674_v63 = vsel %vm1672_vm13, %v4065_v49, %v1673_v28  ;;  %v1768_v15 = vsel %vm6479_vm14, %v7056_v48, %v1765_v6  ;;  %v1850_v11 = vsub.s32 0, %v6547_v12  ;;  %v3688_v23 = vpop.permute.xlu1 %3687 }
 0x259   :  { %v3346_v41 = vsel %vm3339_vm0, %v3342_v1, %v3345_v54  ;;  %v1678_v55 = vsel %vm1671_vm15, %v1674_v63, %v1677_v62  ;;  %4068 = vcosq.f32 %v1768_v15  ;;  %v1931_v52 = vsel %vm1921_vm3, %v1928_v29, %v1930_v34 }
 0x25a   :  { %v3347_v25 = vsel %vm1668_vm9, nan, %v3346_v41  ;;  %v1679_v59 = vsel %vm1668_vm9, nan, %v1678_v55  ;;  %4070 = vsinq.f32 %v1768_v15  ;;  %v3864_v61 = vmin.u32 %v1850_v11, %v6547_v12 }
 0x25b   :  { %3697 = vrot.lane.b32.xlu0 %v3347_v25, %s4092_s15  ;;  %2005 = vst.msk [vmem:[%s6810_s2 + $0x60] sm:$0xff] %vm1992_vm7, %v1679_v59  ;;  %v1924_v42 = vsel %vm1920_vm5, %v1904_v26, %v1907_v47  ;;  %v1926_v18 = vsel %vm1922_vm1, %v1910_v60, %v1925_v27  ;;  %v6591_v44 = vmul.u32.u64.low %v6545_v50, %v1935_v38  ;;  %v6592_v49 = vmul.u32.u64.high %v6545_v50, %v1935_v38, %v6591_v44 }
 0x25c   :  { %v1852_v46 = vclz %v3864_v61  ;;  %v6595_v5 = vmul.u32.u64.low %v6545_v50, %v1931_v52  ;;  %v6596_v4 = vmul.u32.u64.high %v6545_v50, %v1931_v52, %v6595_v5  ;;  %vm3721_vm2 = vcmask 392384  }
 0x25d   :  { %3723 = vst.msk [vmem:[%s6810_s2 + $0x8] sm:$0xff] %vm3721_vm2, %v6500_v21  ;;  %3722 = vst.msk [vmem:[%s6810_s2] sm:$0xff] %vm3721_vm2, %v6475_v0  ;;  %v1927_v21 = vsel %vm1921_vm3, %v1924_v42, %v1926_v18  ;;  %vm3786_vm8 = vcmask 417152   ;;  %vm1772_vm13 = vweird.f32 %v7056_v48  ;;  %v1870_v25 = vsub.s32 4, %v6529_v19 }
 0x25e   :  { %3724 = vst.msk [vmem:[%s6810_s2 + $0x10] sm:$0xff] %vm3721_vm2, %v6511_v36  ;;  %3725 = vst.msk [vmem:[%s6810_s2 + $0x18] sm:$0xff] %vm3721_vm2, %v3680_v43  ;;  %v3865_v0 = vadd.s32 4294967294, %v1852_v46  ;;  %v1773_v36 = vadd.s32 3, %v6527_v39  ;;  %vm1945_vm14 = vc.u32 %v6592_v49, %v6595_v5  ;;  %vm1786_vm4 = vcmp.lt.s32.totalorder %v7059_v31, 0 }
 0x25f   :  { %3726 = vst.msk [vmem:[%s6810_s2 + $0x20] sm:$0xff] %vm3721_vm2, %v3682_v9  ;;  %3727 = vst.msk [vmem:[%s6810_s2 + $0x28] sm:$0xff] %vm3721_vm2, %v3684_v7  ;;  %vm1785_vm5 = vcmp.le.f32.partialorder %v1784_v40, 0.7853982  ;;  %v1871_v42 = vsel %vm1786_vm4, %v1870_v25, %v6529_v19  ;;  %v1944_v40 = vadd.s32 %v6595_v5, %v6592_v49  ;;  %vm1876_vm3 = vweird.f32 %v7059_v31 }
 0x260   :  { %3728 = vst.msk [vmem:[%s6810_s2 + $0x30] sm:$0xff] %vm3721_vm2, %v3686_v10  ;;  %3729 = vst.msk [vmem:[%s6810_s2 + $0x38] sm:$0xff] %vm3721_vm2, %v3688_v23  ;;  %vm3866_vm6 = vcmp.lt.s32.totalorder %v3865_v0, 0  ;;  %v1774_v60 = vand.u32 3, %v1773_v36  ;;  %v1873_v44 = vsel %vm1785_vm5, 0, %v1871_v42 }
 0x261   :  { %3788 = vst.msk [vmem:[%s6810_s2 + $0x8] sm:$0xff] %vm3786_vm8, %v6225_v37  ;;  %3787 = vst.msk [vmem:[%s6810_s2] sm:$0xff] %vm3786_vm8, %v6211_v45  ;;  %v1946_v45 = vadd.s32 1, %v6596_v4  ;;  %v3441_v37 = vand.u32 3, %v6527_v39  ;;  %v1877_v19 = vadd.s32 3, %v1873_v44 }
 0x262   :  { %3789 = vst.msk [vmem:[%s6810_s2 + $0x10] sm:$0xff] %vm3786_vm8, %v6235_v53  ;;  %3790 = vst.msk [vmem:[%s6810_s2 + $0x18] sm:$0xff] %vm3786_vm8, %v6264_v57  ;;  %v1855_v53 = vsel %vm3866_vm6, 0, %v3865_v0  ;;  %v1943_v57 = vmul.u32 %v6545_v50, %v1927_v21  ;;  %vm1775_vm11 = vcmp.lt.s32.totalorder %v1774_v60, 2  ;;  %vm1776_vm12 = vcmp.eq.s32.totalorder %v1774_v60, 0 }
 0x263   :  { %3791 = vst.msk [vmem:[%s6810_s2 + $0x20] sm:$0xff] %vm3786_vm8, %v6275_v14  ;;  %3792 = vst.msk [vmem:[%s6810_s2 + $0x28] sm:$0xff] %vm3786_vm8, %v6309_v58  ;;  %v1840_v14 = vadd.s32 %v6469_v30, %v6465_v56  ;;  %v1856_v58 = vsub.s32 32, %v1855_v53  ;;  %v1860_v32 = vsub.s32 4294967266, %v1855_v53  ;;  %v1857_v43 = vshll.u32 %v6547_v12, %v1855_v53 }
 0x264   :  { %3793 = vst.msk [vmem:[%s6810_s2 + $0x30] sm:$0xff] %vm3786_vm8, %v6329_v17  ;;  %3794 = vst.msk [vmem:[%s6810_s2 + $0x38] sm:$0xff] %vm3786_vm8, %v6354_v8  ;;  %v1947_v17 = vsel %vm1945_vm14, %v1946_v45, %v6596_v4  ;;  %vm3442_vm10 = vcmp.lt.s32.totalorder %v3441_v37, 2  ;;  %vm1779_vm15 = vcmp.eq.s32.totalorder %v1774_v60, 2  ;;  %vm3446_vm0 = vcmp.eq.s32.totalorder %v3441_v37, 2 }
 0x265   :  { %v1948_v8 = vadd.s32 %v1947_v17, %v1943_v57  ;;  %v1858_v47 = vshrl.u32 %v1840_v14, %v1856_v58  ;;  %v1861_v26 = vadd.s32 127, %v1860_v32  ;;  %vm3443_vm9 = vcmp.eq.s32.totalorder %v3441_v37, 0 }
 0x266   :  { %v4069_v9 = vpop.eup %4068  ;;  %v1878_v57 = vand.u32 3, %v1877_v19  ;;  %v3544_v14 = vand.u32 3, %v1873_v44 }
 0x267   :  { %v1949_v39 = vadd.s32 536870912, %v1948_v8  ;;  %v1859_v3 = vor.u32 %v1858_v47, %v1857_v43  ;;  %v1862_v13 = vshll.u32 %v1861_v26, 23  ;;  %v4071_v29 = vpop.eup %4070  ;;  %v1780_v56 = vxor.u32 2147483648, %v4069_v9 }
 0x268   :  { %v1777_v50 = vxor.u32 2147483648, %v4071_v29  ;;  %vm1879_vm14 = vcmp.lt.s32.totalorder %v1878_v57, 2  ;;  %vm1883_vm6 = vcmp.eq.s32.totalorder %v1878_v57, 2 }
 0x269   :  { %v6689_v30 = vshrl.u32 %v1949_v39, 30  ;;  %v1863_v28 = vor.u32 4788187, %v1862_v13  ;;  %v1781_v27 = vsel %vm1779_vm15, %v1780_v56, %v4071_v29  ;;  %v3448_v12 = vsel %vm3446_vm0, %v1780_v56, %v4071_v29 }
 0x26a   :  { %v1778_v7 = vsel %vm1776_vm12, %v4069_v9, %v1777_v50  ;;  %v3445_v54 = vsel %vm3443_vm9, %v4069_v9, %v1777_v50  ;;  %v1866_v6 = vcvt.s32.f32 %v1859_v3  ;;  %vm3546_vm12 = vcmp.eq.s32.totalorder %v3544_v14, 0 }
 0x26b   :  { %v1951_v34 = vshll.u32 %v6689_v30, 30  ;;  %v1864_v62 = vand.u32 2147483647, %v1863_v28  ;;  %v1782_v38 = vsel %vm1775_vm11, %v1778_v7, %v1781_v27  ;;  %v3449_v1 = vsel %vm3442_vm10, %v3445_v54, %v3448_v12 }
 0x26c   :  { %v1783_v15 = vsel %vm1772_vm13, nan, %v1782_v38  ;;  %v3450_v11 = vsel %vm1772_vm13, nan, %v3449_v1  ;;  %vm3549_vm10 = vcmp.eq.s32.totalorder %v3544_v14, 2  ;;  %vm1880_vm11 = vcmp.eq.s32.totalorder %v1878_v57, 0 }
 0x26d   :  { %v1952_v63 = vsub.s32 %v1948_v8, %v1951_v34  ;;  %v1867_v41 = vmul.f32 %v1866_v6, %v1864_v62  ;;  %2006 = vst.msk [vmem:[%s6810_s2 + $0x68] sm:$0xff] %vm1992_vm7, %v1783_v15  ;;  %3699 = vrot.lane.b32.xlu1 %v3450_v11, %s4092_s15  ;;  %vm3545_vm15 = vcmp.lt.s32.totalorder %v3544_v14, 2  ;;  %vm1890_vm0 = vcmp.lt.s32.totalorder %v7065_v16, 0 }
 0x26e   :  { %v1974_v29 = vsub.s32 4, %v6689_v30  ;;  %vm1889_vm9 = vcmp.le.f32.partialorder %v1888_v51, 0.7853982 }
 0x26f   :  { %v1954_v55 = vsub.s32 0, %v1952_v63  ;;  %v1868_v52 = vxor.u32 2147483648, %v1867_v41  ;;  %v3690_v46 = vpop.permute.xlu0 %3689 }
 0x270   :  { %3730 = vst.msk [vmem:[%s6810_s2 + $0x40] sm:$0xff] %vm3721_vm2, %v3690_v46  ;;  %v1975_v12 = vsel %vm1890_vm0, %v1974_v29, %v6689_v30 }
 0x271   :  { %v3868_v48 = vmin.u32 %v1954_v55, %v1952_v63  ;;  %v1869_v59 = vsel %vm1786_vm4, %v1868_v52, %v1867_v41  ;;  %3795 = vst.msk [vmem:[%s6810_s2 + $0x40] sm:$0xff] %vm3786_vm8, %v6364_v2  ;;  %v1977_v34 = vsel %vm1889_vm9, 0, %v1975_v12 }
 0x272   :  { %v1872_v61 = vsel %vm1785_vm5, %v7059_v31, %v1869_v59  ;;  %v4080_v31 = vld [vmem:[%s6808_s0 + $0x70] sm:$0xff]  ;;  %v1981_v30 = vadd.s32 3, %v1977_v34  ;;  %v3647_v54 = vand.u32 3, %v1977_v34 }
 0x273   :  { %v1956_v10 = vclz %v3868_v48  ;;  %4072 = vcosq.f32 %v1872_v61  ;;  %v4081_v48 = vld [vmem:[%s6808_s0 + $0x78] sm:$0xff] }
 0x274   :  { %4074 = vsinq.f32 %v1872_v61  ;;  %v1982_v7 = vand.u32 3, %v1981_v30  ;;  %vm3652_vm4 = vcmp.eq.s32.totalorder %v3647_v54, 2 }
 0x275   :  { %v3869_v18 = vadd.s32 4294967294, %v1956_v10 }
 0x276   :  { %vm1987_vm13 = vcmp.eq.s32.totalorder %v1982_v7, 2  ;;  %vm1984_vm5 = vcmp.eq.s32.totalorder %v1982_v7, 0 }
 0x277   :  { %vm3870_vm1 = vcmp.lt.s32.totalorder %v3869_v18, 0 }
 0x278   :  { %v1959_v4 = vsel %vm3870_vm1, 0, %v3869_v18  ;;  %vm3649_vm1 = vcmp.eq.s32.totalorder %v3647_v54, 0 }
 0x279   :  { %v1960_v23 = vsub.s32 32, %v1959_v4  ;;  %v1964_v0 = vsub.s32 4294967266, %v1959_v4  ;;  %v1961_v21 = vshll.u32 %v1952_v63, %v1959_v4 }
 0x27b   :  { %v1962_v36 = vshrl.u32 %v1944_v40, %v1960_v23  ;;  %v1965_v45 = vadd.s32 127, %v1964_v0 }
 0x27d   :  { %v1963_v37 = vor.u32 %v1962_v36, %v1961_v21  ;;  %v1966_v53 = vshll.u32 %v1965_v45, 23 }
 0x27f   :  { %v1967_v58 = vor.u32 4788187, %v1966_v53  ;;  %v1970_v49 = vcvt.s32.f32 %v1963_v37 }
 0x280   :  { %v4073_v32 = vpop.eup %4072 }
 0x281   :  { %v1968_v17 = vand.u32 2147483647, %v1967_v58  ;;  %v4075_v5 = vpop.eup %4074  ;;  %v1884_v60 = vxor.u32 2147483648, %v4073_v32 }
 0x282   :  { %v1881_v8 = vxor.u32 2147483648, %v4075_v5 }
 0x283   :  { %v1971_v2 = vmul.f32 %v1970_v49, %v1968_v17  ;;  %v3551_v43 = vsel %vm3549_vm10, %v1884_v60, %v4075_v5  ;;  %v1885_v47 = vsel %vm1883_vm6, %v1884_v60, %v4075_v5  ;;  %vm1980_vm6 = vweird.f32 %v7065_v16 }
 0x284   :  { %v3548_v26 = vsel %vm3546_vm12, %v4073_v32, %v1881_v8  ;;  %v1882_v39 = vsel %vm1880_vm11, %v4073_v32, %v1881_v8 }
 0x285   :  { %v1972_v9 = vxor.u32 2147483648, %v1971_v2  ;;  %v3552_v3 = vsel %vm3545_vm15, %v3548_v26, %v3551_v43  ;;  %v1886_v13 = vsel %vm1879_vm14, %v1882_v39, %v1885_v47  ;;  %v3692_v51 = vpop.permute.xlu1 %3691  ;;  %vm3648_vm14 = vcmp.lt.s32.totalorder %v3647_v54, 2 }
 0x286   :  { %v3553_v56 = vsel %vm1876_vm3, nan, %v3552_v3  ;;  %v1887_v50 = vsel %vm1876_vm3, nan, %v1886_v13  ;;  %3731 = vst.msk [vmem:[%s6810_s2 + $0x48] sm:$0xff] %vm3721_vm2, %v3692_v51  ;;  %vm1983_vm3 = vcmp.lt.s32.totalorder %v1982_v7, 2 }
 0x287   :  { %v1973_v28 = vsel %vm1890_vm0, %v1972_v9, %v1971_v2  ;;  %3701 = vrot.lane.b32.xlu0 %v3553_v56, %s4092_s15  ;;  %2007 = vst.msk [vmem:[%s6810_s2 + $0x70] sm:$0xff] %vm1992_vm7, %v1887_v50 }
 0x288   :  { %v1976_v27 = vsel %vm1889_vm9, %v7065_v16, %v1973_v28  ;;  %3796 = vst.msk [vmem:[%s6810_s2 + $0x48] sm:$0xff] %vm3786_vm8, %v6385_v22 }
 0x289   :  { %4076 = vcosq.f32 %v1976_v27 }
 0x28a   :  { %4078 = vsinq.f32 %v1976_v27 }
 0x28b   :  { %3766 = vrot.lane.b32.xlu0 %v4080_v31, %s4085_s1 }
 0x296   :  { %v4077_v62 = vpop.eup %4076 }
 0x297   :  { %v4079_v6 = vpop.eup %4078  ;;  %v1988_v38 = vxor.u32 2147483648, %v4077_v62 }
 0x298   :  { %v1985_v1 = vxor.u32 2147483648, %v4079_v6 }
 0x299   :  { %v1989_v63 = vsel %vm1987_vm13, %v1988_v38, %v4079_v6  ;;  %v3654_v15 = vsel %vm3652_vm4, %v1988_v38, %v4079_v6 }
 0x29a   :  { %v1986_v11 = vsel %vm1984_vm5, %v4077_v62, %v1985_v1  ;;  %v3651_v41 = vsel %vm3649_vm1, %v4077_v62, %v1985_v1 }
 0x29b   :  { %v1990_v22 = vsel %vm1983_vm3, %v1986_v11, %v1989_v63  ;;  %v3655_v55 = vsel %vm3648_vm14, %v3651_v41, %v3654_v15 }
 0x29c   :  { %v1991_v52 = vsel %vm1980_vm6, nan, %v1990_v22  ;;  %v3656_v25 = vsel %vm1980_vm6, nan, %v3655_v55 }
 0x29d   :  { %2008 = vst.msk [vmem:[%s6810_s2 + $0x78] sm:$0xff] %vm1992_vm7, %v1991_v52  ;;  %3703 = vrot.lane.b32.xlu1 %v3656_v25, %s4092_s15 }
 0x29e   :  { %v3694_v59 = vpop.permute.xlu0 %3693 }
 0x29f   :  { %3732 = vst.msk [vmem:[%s6810_s2 + $0x50] sm:$0xff] %vm3721_vm2, %v3694_v59 }
 0x2a0   :  { %3797 = vst.msk [vmem:[%s6810_s2 + $0x50] sm:$0xff] %vm3786_vm8, %v6401_v20 }
 0x2a1   :  { %3768 = vrot.lane.b32.xlu1 %v4081_v48, %s4085_s1 }
 0x2b6   :  { %v3696_v16 = vpop.permute.xlu1 %3695 }
 0x2b7   :  { %3733 = vst.msk [vmem:[%s6810_s2 + $0x58] sm:$0xff] %vm3721_vm2, %v3696_v16 }
 0x2b8   :  { %3798 = vst.msk [vmem:[%s6810_s2 + $0x58] sm:$0xff] %vm3786_vm8, %v6421_v24 }
 0x2cd   :  { %v3698_v61 = vpop.permute.xlu0 %3697 }
 0x2ce   :  { %3734 = vst.msk [vmem:[%s6810_s2 + $0x60] sm:$0xff] %vm3721_vm2, %v3698_v61 }
 0x2cf   :  { %3799 = vst.msk [vmem:[%s6810_s2 + $0x60] sm:$0xff] %vm3786_vm8, %v6436_v33 }
 0x2df   :  { %v3700_v20 = vpop.permute.xlu1 %3699 }
 0x2e0   :  { %3735 = vst.msk [vmem:[%s6810_s2 + $0x68] sm:$0xff] %vm3721_vm2, %v3700_v20 }
 0x2e1   :  { %3800 = vst.msk [vmem:[%s6810_s2 + $0x68] sm:$0xff] %vm3786_vm8, %v6467_v35 }
 0x2f9   :  { %v3702_v24 = vpop.permute.xlu0 %3701 }
 0x2fa   :  { %3736 = vst.msk [vmem:[%s6810_s2 + $0x70] sm:$0xff] %vm3721_vm2, %v3702_v24 }
 0x2fd   :  { %v3767_v10 = vpop.permute.xlu0 %3766 }
 0x2fe   :  { %3801 = vst.msk [vmem:[%s6810_s2 + $0x70] sm:$0xff] %vm3786_vm8, %v3767_v10 }
 0x30f   :  { %v3704_v33 = vpop.permute.xlu1 %3703 }
 0x310   :  { %3737 = vst.msk [vmem:[%s6810_s2 + $0x78] sm:$0xff] %vm3721_vm2, %v3704_v33 }
 0x313   :  { %v3769_v42 = vpop.permute.xlu1 %3768 }
 0x314   :  { %3802 = vst.msk [vmem:[%s6810_s2 + $0x78] sm:$0xff] %vm3786_vm8, %v3769_v42 }

</bundles_post_ra>
